<compile_context>
chip_gen: v7x
topology: tpu7x:2x2x1
jax: 0.10.0
libtpu: 0.0.40
codegen_flags: <defaults>
</compile_context>

<pallas_src>
import functools

import jax
import jax.numpy as jnp
import numpy as np
from jax import lax
from jax.experimental import pallas as pl
from jax.experimental.pallas import tpu as pltpu

# Tile targets.  TN: prefer 128 on v5e (4x128^2 MXU), 256 on v6e/v7x.
TM = 512
TN = 256
TK = 512
VMEM_LIMIT = 48 * 1024 * 1024  # explicit scoped-VMEM budget (< v7x 64 MiB)


def _pick_tile(dim, target, quantum):
    """Largest tile <= target (multiple of quantum) that divides dim; falls
    back to the full dim for small / awkward sizes (keeps blocks lane-legal
    via the 'full array dim' exemption)."""
    if dim <= target or dim % quantum != 0:
        return dim
    t = (target // quantum) * quantum
    while t > 0 and dim % t != 0:
        t -= quantum
    return t if t > 0 else dim


# --------------------------------------------------------------------------
# Kernel 1: tiled matmul + folded BN (+ ReLU)   (used for conv1)
# --------------------------------------------------------------------------
def _matmul_bn_direct_kernel(x_ref, w_ref, scale_ref, bias_ref, o_ref, *, relu):
    # Single-K-block fast path: no scratch, no init/finalize branches.
    y = jnp.dot(x_ref[...], w_ref[...], preferred_element_type=jnp.float32)
    y = y * scale_ref[...] + bias_ref[...]
    if relu:
        y = jnp.maximum(y, 0.0)
    o_ref[...] = y.astype(o_ref.dtype)


def _matmul_bn_acc_kernel(x_ref, w_ref, scale_ref, bias_ref, o_ref, acc_ref, *, relu):
    k = pl.program_id(2)

    @pl.when(k == 0)
    def _():
        acc_ref[...] = jnp.zeros_like(acc_ref)

    acc_ref[...] += jnp.dot(x_ref[...], w_ref[...],
                            preferred_element_type=jnp.float32)

    @pl.when(k == pl.num_programs(2) - 1)
    def _():
        y = acc_ref[...] * scale_ref[...] + bias_ref[...]
        if relu:
            y = jnp.maximum(y, 0.0)
        o_ref[...] = y.astype(o_ref.dtype)


def matmul_bn(x2d, w, scale, bias, *, relu, out_dtype=jnp.bfloat16):
    M, K = x2d.shape
    _, N = w.shape
    tm = _pick_tile(M, TM, 8)
    tn = _pick_tile(N, TN, 128)
    tk = _pick_tile(K, TK, 128)
    gk = K // tk
    out_isize = 2 if out_dtype == jnp.bfloat16 else 4
    cost = pl.CostEstimate(
        flops=2 * M * K * N, transcendentals=0,
        bytes_accessed=int(2 * M * K + 2 * K * N + out_isize * M * N + 8 * N))
    args = (x2d.astype(jnp.bfloat16), w.astype(jnp.bfloat16),
            scale.reshape(1, N).astype(jnp.float32),
            bias.reshape(1, N).astype(jnp.float32))

    if gk == 1:
        return pl.pallas_call(
            functools.partial(_matmul_bn_direct_kernel, relu=relu),
            out_shape=jax.ShapeDtypeStruct((M, N), out_dtype),
            grid=(M // tm, N // tn),
            in_specs=[
                pl.BlockSpec((tm, K), lambda i, j: (i, 0)),
                pl.BlockSpec((K, tn), lambda i, j: (0, j)),
                pl.BlockSpec((1, tn), lambda i, j: (0, j)),
                pl.BlockSpec((1, tn), lambda i, j: (0, j)),
            ],
            out_specs=pl.BlockSpec((tm, tn), lambda i, j: (i, j)),
            compiler_params=pltpu.CompilerParams(
                dimension_semantics=("parallel", "parallel"),
                vmem_limit_bytes=VMEM_LIMIT),
            cost_estimate=cost,
        )(*args)

    return pl.pallas_call(
        functools.partial(_matmul_bn_acc_kernel, relu=relu),
        out_shape=jax.ShapeDtypeStruct((M, N), out_dtype),
        grid=(M // tm, N // tn, gk),
        in_specs=[
            pl.BlockSpec((tm, tk), lambda i, j, k: (i, k)),
            pl.BlockSpec((tk, tn), lambda i, j, k: (k, j)),
            pl.BlockSpec((1, tn), lambda i, j, k: (0, j)),
            pl.BlockSpec((1, tn), lambda i, j, k: (0, j)),
        ],
        out_specs=pl.BlockSpec((tm, tn), lambda i, j, k: (i, j)),
        scratch_shapes=[pltpu.VMEM((tm, tn), jnp.float32)],
        compiler_params=pltpu.CompilerParams(
            dimension_semantics=("parallel", "parallel", "arbitrary"),
            vmem_limit_bytes=VMEM_LIMIT),
        cost_estimate=cost,
    )(*args)


# --------------------------------------------------------------------------
# Kernel 2: direct 3x3 conv + folded BN + ReLU (no im2col materialization)
# --------------------------------------------------------------------------
def _conv3x3_bn_relu_kernel(xph_ref, w_ref, scale_ref, bias_ref, o_ref, *,
                            stride, hout, wout):
    # xph_ref: (s*s, hneed, wneed, Cin) polyphase-padded image (one batch elem)
    # w_ref:   (3, 3, Cin, tn)
    # o_ref:   (hout, wout, tn)
    s = stride
    acc = None
    for kh in range(3):
        for kw in range(3):
            # output (i,j), tap (kh,kw) reads padded (s*i+kh, s*j+kw)
            #   = phase ((kh%s), (kw%s)) at within-phase offset (kh//s, kw//s)
            ph = (kh % s) * s + (kw % s)
            r0, c0 = kh // s, kw // s
            xt = xph_ref[ph, r0:r0 + hout, c0:c0 + wout, :]      # contiguous slice
            xt = xt.reshape(hout * wout, xt.shape[-1])
            d = jnp.dot(xt, w_ref[kh, kw], preferred_element_type=jnp.float32)
            acc = d if acc is None else acc + d
    y = acc * scale_ref[...] + bias_ref[...]
    y = jnp.maximum(y, 0.0)
    o_ref[...] = y.reshape(hout, wout, -1).astype(o_ref.dtype)


def conv3x3_bn_relu(x_nhwc, w_hwio, scale, bias, stride, *, out_dtype=jnp.bfloat16):
    N, H, W, P = x_nhwc.shape
    assert H % stride == 0 and W % stride == 0
    Hout, Wout = H // stride, W // stride
    Pout = w_hwio.shape[-1]
    s = stride
    s2 = s * s
    # largest within-phase row/col offset used by any tap is 2 // s
    hneed = Hout + 2 // s
    wneed = Wout + 2 // s

    x_bf = x_nhwc.astype(jnp.bfloat16)
    xp = jnp.pad(x_bf, ((0, 0), (1, 1), (1, 1), (0, 0)))
    if s == 1:
        xph = xp[:, None]                          # (N, 1, H+2, W+2, P)
    else:
        # Polyphase split (glue): one extra bf16 pass over the small conv2
        # input so every 3x3 tap becomes a contiguous in-VMEM slice inside the
        # kernel (avoids the 9x f32 im2col blow-up and strided in-kernel loads).
        phases = [xp[:, a::s, b::s, :][:, :hneed, :wneed, :]
                  for a in range(s) for b in range(s)]
        xph = jnp.stack(phases, axis=1)            # (N, s*s, hneed, wneed, P)

    tn = _pick_tile(Pout, TN, 128)
    grid = (N, Pout // tn)
    cost = pl.CostEstimate(
        flops=2 * N * Hout * Wout * 9 * P * Pout, transcendentals=0,
        bytes_accessed=int(2 * xph.size + 2 * w_hwio.size
                           + 2 * N * Hout * Wout * Pout + 8 * Pout))
    kern = functools.partial(_conv3x3_bn_relu_kernel,
                             stride=s, hout=Hout, wout=Wout)
    # TODO(synk): for very large images, tile Hout (with a 1-row halo) instead
    # of holding the whole padded image in VMEM; unnecessary at ResNet shapes.
    return pl.pallas_call(
        kern,
        out_shape=jax.ShapeDtypeStruct((N, Hout, Wout, Pout), out_dtype),
        grid=grid,
        in_specs=[
            pl.BlockSpec((None, s2, hneed, wneed, P), lambda b, j: (b, 0, 0, 0, 0)),
            pl.BlockSpec((3, 3, P, tn), lambda b, j: (0, 0, 0, j)),
            pl.BlockSpec((1, tn), lambda b, j: (0, j)),
            pl.BlockSpec((1, tn), lambda b, j: (0, j)),
        ],
        out_specs=pl.BlockSpec((None, Hout, Wout, tn), lambda b, j: (b, 0, 0, j)),
        compiler_params=pltpu.CompilerParams(
            dimension_semantics=("parallel", "parallel"),
            vmem_limit_bytes=VMEM_LIMIT),
        cost_estimate=cost,
    )(xph, w_hwio.astype(jnp.bfloat16),
      scale.reshape(1, Pout).astype(jnp.float32),
      bias.reshape(1, Pout).astype(jnp.float32))


# --------------------------------------------------------------------------
# Kernel 3: conv3 (1x1) + bn3 + shortcut + residual add + ReLU, fully fused
# --------------------------------------------------------------------------
def _conv3_shortcut_kernel(x_ref, w3_ref, s3_ref, b3_ref,
                           xs_ref, wsc_ref, ssc_ref, bsc_ref, o_ref):
    y = jnp.dot(x_ref[...], w3_ref[...], preferred_element_type=jnp.float32)
    y = y * s3_ref[...] + b3_ref[...]
    r = jnp.dot(xs_ref[...], wsc_ref[...], preferred_element_type=jnp.float32)
    r = r * ssc_ref[...] + bsc_ref[...]
    o_ref[...] = jnp.maximum(y + r, 0.0).astype(o_ref.dtype)


def _conv3_identity_kernel(x_ref, w3_ref, s3_ref, b3_ref, res_ref, o_ref):
    y = jnp.dot(x_ref[...], w3_ref[...], preferred_element_type=jnp.float32)
    y = y * s3_ref[...] + b3_ref[...] + res_ref[...].astype(jnp.float32)
    o_ref[...] = jnp.maximum(y, 0.0).astype(o_ref.dtype)


def conv3_bn_shortcut_relu(x2d, w3, s3, b3, xs2d, wsc, ssc, bsc, *,
                           out_dtype=jnp.float32):
    M, P = x2d.shape
    _, C4 = w3.shape
    Cin = xs2d.shape[1]
    tm = _pick_tile(M, TM, 8)
    tn = _pick_tile(C4, TN, 128)
    grid = (M // tm, C4 // tn)
    out_isize = 2 if out_dtype == jnp.bfloat16 else 4
    cost = pl.CostEstimate(
        flops=2 * M * C4 * (P + Cin), transcendentals=0,
        bytes_accessed=int(2 * M * (P + Cin) + 2 * C4 * (P + Cin)
                           + out_isize * M * C4 + 16 * C4))
    return pl.pallas_call(
        _conv3_shortcut_kernel,
        out_shape=jax.ShapeDtypeStruct((M, C4), out_dtype),
        grid=grid,
        in_specs=[
            pl.BlockSpec((tm, P), lambda i, j: (i, 0)),
            pl.BlockSpec((P, tn), lambda i, j: (0, j)),
            pl.BlockSpec((1, tn), lambda i, j: (0, j)),
            pl.BlockSpec((1, tn), lambda i, j: (0, j)),
            pl.BlockSpec((tm, Cin), lambda i, j: (i, 0)),
            pl.BlockSpec((Cin, tn), lambda i, j: (0, j)),
            pl.BlockSpec((1, tn), lambda i, j: (0, j)),
            pl.BlockSpec((1, tn), lambda i, j: (0, j)),
        ],
        out_specs=pl.BlockSpec((tm, tn), lambda i, j: (i, j)),
        compiler_params=pltpu.CompilerParams(
            dimension_semantics=("parallel", "parallel"),
            vmem_limit_bytes=VMEM_LIMIT),
        cost_estimate=cost,
    )(x2d.astype(jnp.bfloat16), w3.astype(jnp.bfloat16),
      s3.reshape(1, C4).astype(jnp.float32), b3.reshape(1, C4).astype(jnp.float32),
      xs2d.astype(jnp.bfloat16), wsc.astype(jnp.bfloat16),
      ssc.reshape(1, C4).astype(jnp.float32), bsc.reshape(1, C4).astype(jnp.float32))


def conv3_bn_identity_relu(x2d, w3, s3, b3, res2d, *, out_dtype=jnp.float32):
    M, P = x2d.shape
    _, C4 = w3.shape
    tm = _pick_tile(M, TM, 8)
    tn = _pick_tile(C4, TN, 128)
    grid = (M // tm, C4 // tn)
    out_isize = 2 if out_dtype == jnp.bfloat16 else 4
    cost = pl.CostEstimate(
        flops=2 * M * C4 * P, transcendentals=0,
        bytes_accessed=int(2 * M * P + 2 * P * C4 + 2 * M * C4
                           + out_isize * M * C4 + 8 * C4))
    return pl.pallas_call(
        _conv3_identity_kernel,
        out_shape=jax.ShapeDtypeStruct((M, C4), out_dtype),
        grid=grid,
        in_specs=[
            pl.BlockSpec((tm, P), lambda i, j: (i, 0)),
            pl.BlockSpec((P, tn), lambda i, j: (0, j)),
            pl.BlockSpec((1, tn), lambda i, j: (0, j)),
            pl.BlockSpec((1, tn), lambda i, j: (0, j)),
            pl.BlockSpec((tm, tn), lambda i, j: (i, j)),
        ],
        out_specs=pl.BlockSpec((tm, tn), lambda i, j: (i, j)),
        compiler_params=pltpu.CompilerParams(
            dimension_semantics=("parallel", "parallel"),
            vmem_limit_bytes=VMEM_LIMIT),
        cost_estimate=cost,
    )(x2d.astype(jnp.bfloat16), w3.astype(jnp.bfloat16),
      s3.reshape(1, C4).astype(jnp.float32), b3.reshape(1, C4).astype(jnp.float32),
      res2d.astype(jnp.bfloat16))


# --------------------------------------------------------------------------
# Bottleneck forward (NCHW in / NCHW out, matching the PyTorch module)
# --------------------------------------------------------------------------
def bottleneck_forward(x_nchw, params, stride):
    x = jnp.transpose(x_nchw, (0, 2, 3, 1)).astype(jnp.bfloat16)   # NHWC, bf16
    N, H, W, Cin = x.shape
    assert H % stride == 0 and W % stride == 0
    planes = params["w1"].shape[1]
    C4 = params["w3"].shape[1]
    Hout, Wout = H // stride, W // stride

    # conv1 (1x1) + bn1 + relu
    out1 = matmul_bn(x.reshape(N * H * W, Cin), params["w1"],
                     params["s1"], params["b1"], relu=True,
                     out_dtype=jnp.bfloat16)
    out1 = out1.reshape(N, H, W, planes)

    # conv2 (3x3, stride, pad=1) + bn2 + relu  -- direct conv, no im2col in HBM
    out2 = conv3x3_bn_relu(out1, params["w2"], params["s2"], params["b2"],
                           stride, out_dtype=jnp.bfloat16)
    out2_2d = out2.reshape(N * Hout * Wout, planes)

    # conv3 (1x1) + bn3 + shortcut + residual add + relu (single fused kernel)
    if "w_sc" in params:
        # Strided 1x1-conv shortcut input: small (M_out x Cin) bf16 gather in
        # glue.  (Could be folded into the kernel via an
        # (N*Hout, s, Wout, s*Cin) BlockSpec view; kept in glue for clarity.)
        xs = x[:, ::stride, ::stride, :].reshape(N * Hout * Wout, Cin)
        out = conv3_bn_shortcut_relu(out2_2d, params["w3"], params["s3"],
                                     params["b3"], xs, params["w_sc"],
                                     params["s_sc"], params["b_sc"],
                                     out_dtype=jnp.float32)
    else:
        res = x.reshape(N * H * W, Cin)
        out = conv3_bn_identity_relu(out2_2d, params["w3"], params["s3"],
                                     params["b3"], res, out_dtype=jnp.float32)

    out = out.reshape(N, Hout, Wout, C4)
    return jnp.transpose(out, (0, 3, 1, 2))   # -> NCHW


# --------------------------------------------------------------------------
# Deterministic parameter construction + folded BN
# --------------------------------------------------------------------------
def fold_bn(gamma, beta, mean, var, eps=1e-5):
    scale = gamma / jnp.sqrt(var + eps)
    bias = beta - mean * scale
    return scale, bias


def make_params(key, in_planes, planes, stride, expansion=4):
    out_planes = expansion * planes
    keys = jax.random.split(key, 20)

    def bn(i, c):
        gamma = 1.0 + 0.1 * jax.random.normal(keys[i], (c,), jnp.float32)
        beta = 0.1 * jax.random.normal(keys[i + 1], (c,), jnp.float32)
        mean = 0.05 * jax.random.normal(keys[i + 2], (c,), jnp.float32)
        var = jnp.abs(1.0 + 0.1 * jax.random.normal(keys[i + 3], (c,), jnp.float32))
        return fold_bn(gamma, beta, mean, var)

    p = {}
    p["w1"] = 0.2 * jax.random.normal(keys[0], (in_planes, planes), jnp.float32)
    p["s1"], p["b1"] = bn(1, planes)
    p["w2"] = 0.2 * jax.random.normal(keys[5], (3, 3, planes, planes), jnp.float32)
    p["s2"], p["b2"] = bn(6, planes)
    p["w3"] = 0.2 * jax.random.normal(keys[10], (planes, out_planes), jnp.float32)
    p["s3"], p["b3"] = bn(11, out_planes)
    if stride != 1 or in_planes != out_planes:
        p["w_sc"] = 0.2 * jax.random.normal(keys[15], (in_planes, out_planes), jnp.float32)
        p["s_sc"], p["b_sc"] = bn(16, out_planes)
    return p


# --------------------------------------------------------------------------
# Pure-JAX reference (lax.conv) for correctness check
# --------------------------------------------------------------------------
def reference_forward(x_nchw, params, stride, *, match_bf16=False):
    dn = ("NHWC", "HWIO", "NHWC")
    if match_bf16:
        f = lambda a: a.astype(jnp.bfloat16).astype(jnp.float32)  # noqa: E731
    else:
        f = lambda a: a.astype(jnp.float32)                        # noqa: E731
    in_planes, planes = params["w1"].shape
    out_planes = params["w3"].shape[1]

    def conv(a, w_hwio, s, pad):
        return lax.conv_general_dilated(
            f(a), f(w_hwio), (s, s), pad, dimension_numbers=dn,
            preferred_element_type=jnp.float32)

    x = jnp.transpose(x_nchw, (0, 2, 3, 1))
    o = conv(x, params["w1"].reshape(1, 1, in_planes, planes), 1, "VALID")
    o = jnp.maximum(o * params["s1"] + params["b1"], 0.0)
    o = conv(o, params["w2"], stride, [(1, 1), (1, 1)])
    o = jnp.maximum(o * params["s2"] + params["b2"], 0.0)
    o3 = conv(o, params["w3"].reshape(1, 1, planes, out_planes), 1, "VALID")
    o3 = o3 * params["s3"] + params["b3"]
    if "w_sc" in params:
        sc = conv(x, params["w_sc"].reshape(1, 1, in_planes, out_planes), stride, "VALID")
        sc = sc * params["s_sc"] + params["b_sc"]
    else:
        sc = f(x)
    o3 = jnp.maximum(o3 + sc, 0.0)
    return jnp.transpose(o3, (0, 3, 1, 2))


# --------------------------------------------------------------------------
def _run_case(key, N, in_planes, planes, stride, H, W):
    kx, kp = jax.random.split(key)
    x = jax.random.normal(kx, (N, in_planes, H, W), jnp.float32)  # NCHW like PyTorch
    params = make_params(kp, in_planes, planes, stride)

    fwd = jax.jit(functools.partial(bottleneck_forward, stride=stride))
    out = jax.block_until_ready(fwd(x, params))
    assert out.shape == (N, 4 * planes, H // stride, W // stride)

    # Tight check vs. lax.conv reference run at matched bf16-input / f32-acc precision.
    ref_bf = jax.block_until_ready(reference_forward(x, params, stride, match_bf16=True))
    np.testing.assert_allclose(np.asarray(out), np.asarray(ref_bf), atol=1e-2, rtol=1e-2)

    # Aggregate sanity vs. the pure-f32 reference (bf16 MXU inputs => loose bound).
    ref32 = np.asarray(jax.block_until_ready(
        reference_forward(x, params, stride, match_bf16=False)))
    rel = np.linalg.norm(np.asarray(out) - ref32) / np.linalg.norm(ref32)
    assert rel < 0.1, f"relative error vs f32 reference too large: {rel}"


if __name__ == "__main__":
    # TODO(synk): BatchNorm here uses inference-mode (running-stat) semantics;
    # PyTorch training-mode batch-statistics BN is not reproduced.
    key = jax.random.PRNGKey(0)
    k1, k2 = jax.random.split(key)
    # Downsample block: stride 2 with conv+BN shortcut (exercises multi-M-tile
    # conv1, stride-2 polyphase conv2, fused-shortcut conv3).
    _run_case(k1, N=2, in_planes=16, planes=8, stride=2, H=32, W=32)
    # Identity block: stride 1, in_planes == 4*planes (identity residual path).
    _run_case(k2, N=2, in_planes=32, planes=8, stride=1, H=16, W=16)
    print("KERNEL_OK")
</pallas_src>

<mosaic_0001>
module attributes {stable_mosaic.version = 11 : i64} {
  func.func @_matmul_bn_direct_kernel(%arg0: i32, %arg1: i32, %arg2: memref<512x16xbf16, #tpu.memory_space<vmem>>, %arg3: memref<16x8xbf16, #tpu.memory_space<vmem>>, %arg4: memref<1x8xf32, #tpu.memory_space<vmem>>, %arg5: memref<1x8xf32, #tpu.memory_space<vmem>>, %arg6: memref<512x8xbf16, #tpu.memory_space<vmem>>) attributes {dimension_semantics = [#tpu.dimension_semantics<parallel>, #tpu.dimension_semantics<parallel>], iteration_bounds = array<i64: 4, 1>, scalar_prefetch = 0 : i64, scratch_operands = 0 : i64, tpu.core_type = #tpu.core_type<tc>, window_params = [{transform_indices = @transform_0, window_bounds = array<i64: 512, 16>}, {transform_indices = @transform_1, window_bounds = array<i64: 16, 8>}, {transform_indices = @transform_2, window_bounds = array<i64: 1, 8>}, {transform_indices = @transform_3, window_bounds = array<i64: 1, 8>}, {transform_indices = @transform_4, window_bounds = array<i64: 512, 8>}]} {
    %c0 = arith.constant 0 : index
    %c0_0 = arith.constant 0 : index
    %0 = vector.load %arg2[%c0, %c0_0] : memref<512x16xbf16, #tpu.memory_space<vmem>>, vector<512x16xbf16>
    %c0_1 = arith.constant 0 : index
    %c0_2 = arith.constant 0 : index
    %1 = vector.load %arg3[%c0_1, %c0_2] : memref<16x8xbf16, #tpu.memory_space<vmem>>, vector<16x8xbf16>
    %cst = arith.constant dense<0.000000e+00> : vector<512x8xf32>
    %2 = tpu.matmul %0, %1, %cst {dimension_numbers = #tpu.dot_dimension_numbers<[1], [0], [0], [1], [0, 0, 1, 1], [], []>} : vector<512x16xbf16>, vector<16x8xbf16>, vector<512x8xf32> -> vector<512x8xf32>
    %c0_3 = arith.constant 0 : index
    %c0_4 = arith.constant 0 : index
    %3 = vector.load %arg4[%c0_3, %c0_4] : memref<1x8xf32, #tpu.memory_space<vmem>>, vector<1x8xf32>
    %4 = vector.broadcast %3 : vector<1x8xf32> to vector<512x8xf32>
    %5 = arith.mulf %2, %4 : vector<512x8xf32>
    %c0_5 = arith.constant 0 : index
    %c0_6 = arith.constant 0 : index
    %6 = vector.load %arg5[%c0_5, %c0_6] : memref<1x8xf32, #tpu.memory_space<vmem>>, vector<1x8xf32>
    %7 = vector.broadcast %6 : vector<1x8xf32> to vector<512x8xf32>
    %8 = arith.addf %5, %7 : vector<512x8xf32>
    %cst_7 = arith.constant 0.000000e+00 : f32
    %9 = vector.broadcast %cst_7 : f32 to vector<512x8xf32>
    %10 = arith.maximumf %8, %9 : vector<512x8xf32>
    %11 = arith.truncf %10 : vector<512x8xf32> to vector<512x8xbf16>
    %c0_8 = arith.constant 0 : index
    %c0_9 = arith.constant 0 : index
    %12 = vector.load %arg6[%c0_8, %c0_9] : memref<512x8xbf16, #tpu.memory_space<vmem>>, vector<512x8xbf16>
    tpu.vector_store %arg6[%c0_8, %c0_9], %11 {strides = array<i32>} : memref<512x8xbf16, #tpu.memory_space<vmem>>, vector<512x8xbf16>,
    return
  }
  func.func @transform_0(%arg0: i32, %arg1: i32) -> (i32, i32) {
    %c0_i32 = arith.constant 0 : i32
    %c0_i32_0 = arith.constant 0 : i32
    return %arg0, %c0_i32 : i32, i32
  }
  func.func @transform_1(%arg0: i32, %arg1: i32) -> (i32, i32) {
    %c0_i32 = arith.constant 0 : i32
    %c0_i32_0 = arith.constant 0 : i32
    return %c0_i32, %arg1 : i32, i32
  }
  func.func @transform_2(%arg0: i32, %arg1: i32) -> (i32, i32) {
    %c0_i32 = arith.constant 0 : i32
    %c0_i32_0 = arith.constant 0 : i32
    return %c0_i32, %arg1 : i32, i32
  }
  func.func @transform_3(%arg0: i32, %arg1: i32) -> (i32, i32) {
    %c0_i32 = arith.constant 0 : i32
    %c0_i32_0 = arith.constant 0 : i32
    return %c0_i32, %arg1 : i32, i32
  }
  func.func @transform_4(%arg0: i32, %arg1: i32) -> (i32, i32) {
    %c0_i32 = arith.constant 0 : i32
    return %arg0, %arg1 : i32, i32
  }
}

module attributes {stable_mosaic.version = 11 : i64} {
  func.func @_conv3x3_bn_relu_kernel(%arg0: i32, %arg1: i32, %arg2: memref<1x4x17x17x8xbf16, #tpu.memory_space<vmem>>, %arg3: memref<3x3x8x8xbf16, #tpu.memory_space<vmem>>, %arg4: memref<1x8xf32, #tpu.memory_space<vmem>>, %arg5: memref<1x8xf32, #tpu.memory_space<vmem>>, %arg6: memref<1x16x16x8xbf16, #tpu.memory_space<vmem>>) attributes {dimension_semantics = [#tpu.dimension_semantics<parallel>, #tpu.dimension_semantics<parallel>], iteration_bounds = array<i64: 2, 1>, scalar_prefetch = 0 : i64, scratch_operands = 0 : i64, tpu.core_type = #tpu.core_type<tc>, window_params = [{transform_indices = @transform_0, window_bounds = array<i64: 1, 4, 17, 17, 8>}, {transform_indices = @transform_1, window_bounds = array<i64: 3, 3, 8, 8>}, {transform_indices = @transform_2, window_bounds = array<i64: 1, 8>}, {transform_indices = @transform_3, window_bounds = array<i64: 1, 8>}, {transform_indices = @transform_4, window_bounds = array<i64: 1, 16, 16, 8>}]} {
    %c0 = arith.constant 0 : index
    %c0_0 = arith.constant 0 : index
    %c0_1 = arith.constant 0 : index
    %c0_2 = arith.constant 0 : index
    %c0_3 = arith.constant 0 : index
    %0 = vector.load %arg2[%c0, %c0_0, %c0_1, %c0_2, %c0_3] : memref<1x4x17x17x8xbf16, #tpu.memory_space<vmem>>, vector<1x1x16x16x8xbf16>
    %1 = vector.shape_cast %0 : vector<1x1x16x16x8xbf16> to vector<16x16x8xbf16>
    %2 = vector.shape_cast %1 : vector<16x16x8xbf16> to vector<256x8xbf16>
    %c0_4 = arith.constant 0 : index
    %c0_5 = arith.constant 0 : index
    %c0_6 = arith.constant 0 : index
    %c0_7 = arith.constant 0 : index
    %3 = vector.load %arg3[%c0_4, %c0_5, %c0_6, %c0_7] : memref<3x3x8x8xbf16, #tpu.memory_space<vmem>>, vector<1x1x8x8xbf16>
    %4 = vector.shape_cast %3 : vector<1x1x8x8xbf16> to vector<8x8xbf16>
    %cst = arith.constant dense<0.000000e+00> : vector<256x8xf32>
    %5 = tpu.matmul %2, %4, %cst {dimension_numbers = #tpu.dot_dimension_numbers<[1], [0], [0], [1], [0, 0, 1, 1], [], []>} : vector<256x8xbf16>, vector<8x8xbf16>, vector<256x8xf32> -> vector<256x8xf32>
    %c0_8 = arith.constant 0 : index
    %c1 = arith.constant 1 : index
    %c0_9 = arith.constant 0 : index
    %c0_10 = arith.constant 0 : index
    %c0_11 = arith.constant 0 : index
    %6 = vector.load %arg2[%c0_8, %c1, %c0_9, %c0_10, %c0_11] : memref<1x4x17x17x8xbf16, #tpu.memory_space<vmem>>, vector<1x1x16x16x8xbf16>
    %7 = vector.shape_cast %6 : vector<1x1x16x16x8xbf16> to vector<16x16x8xbf16>
    %8 = vector.shape_cast %7 : vector<16x16x8xbf16> to vector<256x8xbf16>
    %c0_12 = arith.constant 0 : index
    %c1_13 = arith.constant 1 : index
    %c0_14 = arith.constant 0 : index
    %c0_15 = arith.constant 0 : index
    %9 = vector.load %arg3[%c0_12, %c1_13, %c0_14, %c0_15] : memref<3x3x8x8xbf16, #tpu.memory_space<vmem>>, vector<1x1x8x8xbf16>
    %10 = vector.shape_cast %9 : vector<1x1x8x8xbf16> to vector<8x8xbf16>
    %cst_16 = arith.constant dense<0.000000e+00> : vector<256x8xf32>
    %11 = tpu.matmul %8, %10, %cst_16 {dimension_numbers = #tpu.dot_dimension_numbers<[1], [0], [0], [1], [0, 0, 1, 1], [], []>} : vector<256x8xbf16>, vector<8x8xbf16>, vector<256x8xf32> -> vector<256x8xf32>
    %12 = arith.addf %5, %11 : vector<256x8xf32>
    %c0_17 = arith.constant 0 : index
    %c0_18 = arith.constant 0 : index
    %c0_19 = arith.constant 0 : index
    %c1_20 = arith.constant 1 : index
    %c0_21 = arith.constant 0 : index
    %13 = vector.load %arg2[%c0_17, %c0_18, %c0_19, %c1_20, %c0_21] : memref<1x4x17x17x8xbf16, #tpu.memory_space<vmem>>, vector<1x1x16x16x8xbf16>
    %14 = vector.shape_cast %13 : vector<1x1x16x16x8xbf16> to vector<16x16x8xbf16>
    %15 = vector.shape_cast %14 : vector<16x16x8xbf16> to vector<256x8xbf16>
    %c0_22 = arith.constant 0 : index
    %c2 = arith.constant 2 : index
    %c0_23 = arith.constant 0 : index
    %c0_24 = arith.constant 0 : index
    %16 = vector.load %arg3[%c0_22, %c2, %c0_23, %c0_24] : memref<3x3x8x8xbf16, #tpu.memory_space<vmem>>, vector<1x1x8x8xbf16>
    %17 = vector.shape_cast %16 : vector<1x1x8x8xbf16> to vector<8x8xbf16>
    %cst_25 = arith.constant dense<0.000000e+00> : vector<256x8xf32>
    %18 = tpu.matmul %15, %17, %cst_25 {dimension_numbers = #tpu.dot_dimension_numbers<[1], [0], [0], [1], [0, 0, 1, 1], [], []>} : vector<256x8xbf16>, vector<8x8xbf16>, vector<256x8xf32> -> vector<256x8xf32>
    %19 = arith.addf %12, %18 : vector<256x8xf32>
    %c0_26 = arith.constant 0 : index
    %c2_27 = arith.constant 2 : index
    %c0_28 = arith.constant 0 : index
    %c0_29 = arith.constant 0 : index
    %c0_30 = arith.constant 0 : index
    %20 = vector.load %arg2[%c0_26, %c2_27, %c0_28, %c0_29, %c0_30] : memref<1x4x17x17x8xbf16, #tpu.memory_space<vmem>>, vector<1x1x16x16x8xbf16>
    %21 = vector.shape_cast %20 : vector<1x1x16x16x8xbf16> to vector<16x16x8xbf16>
    %22 = vector.shape_cast %21 : vector<16x16x8xbf16> to vector<256x8xbf16>
    %c1_31 = arith.constant 1 : index
    %c0_32 = arith.constant 0 : index
    %c0_33 = arith.constant 0 : index
    %c0_34 = arith.constant 0 : index
    %23 = vector.load %arg3[%c1_31, %c0_32, %c0_33, %c0_34] : memref<3x3x8x8xbf16, #tpu.memory_space<vmem>>, vector<1x1x8x8xbf16>
    %24 = vector.shape_cast %23 : vector<1x1x8x8xbf16> to vector<8x8xbf16>
    %cst_35 = arith.constant dense<0.000000e+00> : vector<256x8xf32>
    %25 = tpu.matmul %22, %24, %cst_35 {dimension_numbers = #tpu.dot_dimension_numbers<[1], [0], [0], [1], [0, 0, 1, 1], [], []>} : vector<256x8xbf16>, vector<8x8xbf16>, vector<256x8xf32> -> vector<256x8xf32>
    %26 = arith.addf %19, %25 : vector<256x8xf32>
    %c0_36 = arith.constant 0 : index
    %c3 = arith.constant 3 : index
    %c0_37 = arith.constant 0 : index
    %c0_38 = arith.constant 0 : index
    %c0_39 = arith.constant 0 : index
    %27 = vector.load %arg2[%c0_36, %c3, %c0_37, %c0_38, %c0_39] : memref<1x4x17x17x8xbf16, #tpu.memory_space<vmem>>, vector<1x1x16x16x8xbf16>
    %28 = vector.shape_cast %27 : vector<1x1x16x16x8xbf16> to vector<16x16x8xbf16>
    %29 = vector.shape_cast %28 : vector<16x16x8xbf16> to vector<256x8xbf16>
    %c1_40 = arith.constant 1 : index
    %c1_41 = arith.constant 1 : index
    %c0_42 = arith.constant 0 : index
    %c0_43 = arith.constant 0 : index
    %30 = vector.load %arg3[%c1_40, %c1_41, %c0_42, %c0_43] : memref<3x3x8x8xbf16, #tpu.memory_space<vmem>>, vector<1x1x8x8xbf16>
    %31 = vector.shape_cast %30 : vector<1x1x8x8xbf16> to vector<8x8xbf16>
    %cst_44 = arith.constant dense<0.000000e+00> : vector<256x8xf32>
    %32 = tpu.matmul %29, %31, %cst_44 {dimension_numbers = #tpu.dot_dimension_numbers<[1], [0], [0], [1], [0, 0, 1, 1], [], []>} : vector<256x8xbf16>, vector<8x8xbf16>, vector<256x8xf32> -> vector<256x8xf32>
    %33 = arith.addf %26, %32 : vector<256x8xf32>
    %c0_45 = arith.constant 0 : index
    %c2_46 = arith.constant 2 : index
    %c0_47 = arith.constant 0 : index
    %c1_48 = arith.constant 1 : index
    %c0_49 = arith.constant 0 : index
    %34 = vector.load %arg2[%c0_45, %c2_46, %c0_47, %c1_48, %c0_49] : memref<1x4x17x17x8xbf16, #tpu.memory_space<vmem>>, vector<1x1x16x16x8xbf16>
    %35 = vector.shape_cast %34 : vector<1x1x16x16x8xbf16> to vector<16x16x8xbf16>
    %36 = vector.shape_cast %35 : vector<16x16x8xbf16> to vector<256x8xbf16>
    %c1_50 = arith.constant 1 : index
    %c2_51 = arith.constant 2 : index
    %c0_52 = arith.constant 0 : index
    %c0_53 = arith.constant 0 : index
    %37 = vector.load %arg3[%c1_50, %c2_51, %c0_52, %c0_53] : memref<3x3x8x8xbf16, #tpu.memory_space<vmem>>, vector<1x1x8x8xbf16>
    %38 = vector.shape_cast %37 : vector<1x1x8x8xbf16> to vector<8x8xbf16>
    %cst_54 = arith.constant dense<0.000000e+00> : vector<256x8xf32>
    %39 = tpu.matmul %36, %38, %cst_54 {dimension_numbers = #tpu.dot_dimension_numbers<[1], [0], [0], [1], [0, 0, 1, 1], [], []>} : vector<256x8xbf16>, vector<8x8xbf16>, vector<256x8xf32> -> vector<256x8xf32>
    %40 = arith.addf %33, %39 : vector<256x8xf32>
    %c0_55 = arith.constant 0 : index
    %c0_56 = arith.constant 0 : index
    %c1_57 = arith.constant 1 : index
    %c0_58 = arith.constant 0 : index
    %c0_59 = arith.constant 0 : index
    %41 = vector.load %arg2[%c0_55, %c0_56, %c1_57, %c0_58, %c0_59] : memref<1x4x17x17x8xbf16, #tpu.memory_space<vmem>>, vector<1x1x16x16x8xbf16>
    %42 = vector.shape_cast %41 : vector<1x1x16x16x8xbf16> to vector<16x16x8xbf16>
    %43 = vector.shape_cast %42 : vector<16x16x8xbf16> to vector<256x8xbf16>
    %c2_60 = arith.constant 2 : index
    %c0_61 = arith.constant 0 : index
    %c0_62 = arith.constant 0 : index
    %c0_63 = arith.constant 0 : index
    %44 = vector.load %arg3[%c2_60, %c0_61, %c0_62, %c0_63] : memref<3x3x8x8xbf16, #tpu.memory_space<vmem>>, vector<1x1x8x8xbf16>
    %45 = vector.shape_cast %44 : vector<1x1x8x8xbf16> to vector<8x8xbf16>
    %cst_64 = arith.constant dense<0.000000e+00> : vector<256x8xf32>
    %46 = tpu.matmul %43, %45, %cst_64 {dimension_numbers = #tpu.dot_dimension_numbers<[1], [0], [0], [1], [0, 0, 1, 1], [], []>} : vector<256x8xbf16>, vector<8x8xbf16>, vector<256x8xf32> -> vector<256x8xf32>
    %47 = arith.addf %40, %46 : vector<256x8xf32>
    %c0_65 = arith.constant 0 : index
    %c1_66 = arith.constant 1 : index
    %c1_67 = arith.constant 1 : index
    %c0_68 = arith.constant 0 : index
    %c0_69 = arith.constant 0 : index
    %48 = vector.load %arg2[%c0_65, %c1_66, %c1_67, %c0_68, %c0_69] : memref<1x4x17x17x8xbf16, #tpu.memory_space<vmem>>, vector<1x1x16x16x8xbf16>
    %49 = vector.shape_cast %48 : vector<1x1x16x16x8xbf16> to vector<16x16x8xbf16>
    %50 = vector.shape_cast %49 : vector<16x16x8xbf16> to vector<256x8xbf16>
    %c2_70 = arith.constant 2 : index
    %c1_71 = arith.constant 1 : index
    %c0_72 = arith.constant 0 : index
    %c0_73 = arith.constant 0 : index
    %51 = vector.load %arg3[%c2_70, %c1_71, %c0_72, %c0_73] : memref<3x3x8x8xbf16, #tpu.memory_space<vmem>>, vector<1x1x8x8xbf16>
    %52 = vector.shape_cast %51 : vector<1x1x8x8xbf16> to vector<8x8xbf16>
    %cst_74 = arith.constant dense<0.000000e+00> : vector<256x8xf32>
    %53 = tpu.matmul %50, %52, %cst_74 {dimension_numbers = #tpu.dot_dimension_numbers<[1], [0], [0], [1], [0, 0, 1, 1], [], []>} : vector<256x8xbf16>, vector<8x8xbf16>, vector<256x8xf32> -> vector<256x8xf32>
    %54 = arith.addf %47, %53 : vector<256x8xf32>
    %c0_75 = arith.constant 0 : index
    %c0_76 = arith.constant 0 : index
    %c1_77 = arith.constant 1 : index
    %c1_78 = arith.constant 1 : index
    %c0_79 = arith.constant 0 : index
    %55 = vector.load %arg2[%c0_75, %c0_76, %c1_77, %c1_78, %c0_79] : memref<1x4x17x17x8xbf16, #tpu.memory_space<vmem>>, vector<1x1x16x16x8xbf16>
    %56 = vector.shape_cast %55 : vector<1x1x16x16x8xbf16> to vector<16x16x8xbf16>
    %57 = vector.shape_cast %56 : vector<16x16x8xbf16> to vector<256x8xbf16>
    %c2_80 = arith.constant 2 : index
    %c2_81 = arith.constant 2 : index
    %c0_82 = arith.constant 0 : index
    %c0_83 = arith.constant 0 : index
    %58 = vector.load %arg3[%c2_80, %c2_81, %c0_82, %c0_83] : memref<3x3x8x8xbf16, #tpu.memory_space<vmem>>, vector<1x1x8x8xbf16>
    %59 = vector.shape_cast %58 : vector<1x1x8x8xbf16> to vector<8x8xbf16>
    %cst_84 = arith.constant dense<0.000000e+00> : vector<256x8xf32>
    %60 = tpu.matmul %57, %59, %cst_84 {dimension_numbers = #tpu.dot_dimension_numbers<[1], [0], [0], [1], [0, 0, 1, 1], [], []>} : vector<256x8xbf16>, vector<8x8xbf16>, vector<256x8xf32> -> vector<256x8xf32>
    %61 = arith.addf %54, %60 : vector<256x8xf32>
    %c0_85 = arith.constant 0 : index
    %c0_86 = arith.constant 0 : index
    %62 = vector.load %arg4[%c0_85, %c0_86] : memref<1x8xf32, #tpu.memory_space<vmem>>, vector<1x8xf32>
    %63 = vector.broadcast %62 : vector<1x8xf32> to vector<256x8xf32>
    %64 = arith.mulf %61, %63 : vector<256x8xf32>
    %c0_87 = arith.constant 0 : index
    %c0_88 = arith.constant 0 : index
    %65 = vector.load %arg5[%c0_87, %c0_88] : memref<1x8xf32, #tpu.memory_space<vmem>>, vector<1x8xf32>
    %66 = vector.broadcast %65 : vector<1x8xf32> to vector<256x8xf32>
    %67 = arith.addf %64, %66 : vector<256x8xf32>
    %cst_89 = arith.constant 0.000000e+00 : f32
    %68 = vector.broadcast %cst_89 : f32 to vector<256x8xf32>
    %69 = arith.maximumf %67, %68 : vector<256x8xf32>
    %70 = vector.shape_cast %69 : vector<256x8xf32> to vector<16x16x8xf32>
    %71 = arith.truncf %70 : vector<16x16x8xf32> to vector<16x16x8xbf16>
    %c0_90 = arith.constant 0 : index
    %c0_91 = arith.constant 0 : index
    %c0_92 = arith.constant 0 : index
    %c0_93 = arith.constant 0 : index
    %72 = vector.load %arg6[%c0_90, %c0_91, %c0_92, %c0_93] : memref<1x16x16x8xbf16, #tpu.memory_space<vmem>>, vector<1x16x16x8xbf16>
    %73 = vector.shape_cast %72 : vector<1x16x16x8xbf16> to vector<16x16x8xbf16>
    %74 = vector.shape_cast %71 : vector<16x16x8xbf16> to vector<1x16x16x8xbf16>
    tpu.vector_store %arg6[%c0_90, %c0_91, %c0_92, %c0_93], %74 {strides = array<i32>} : memref<1x16x16x8xbf16, #tpu.memory_space<vmem>>, vector<1x16x16x8xbf16>,
    return
  }
  func.func @transform_0(%arg0: i32, %arg1: i32) -> (i32, i32, i32, i32, i32) {
    %c0_i32 = arith.constant 0 : i32
    %c0_i32_0 = arith.constant 0 : i32
    %c0_i32_1 = arith.constant 0 : i32
    %c0_i32_2 = arith.constant 0 : i32
    %c0_i32_3 = arith.constant 0 : i32
    return %arg0, %c0_i32, %c0_i32_0, %c0_i32_1, %c0_i32_2 : i32, i32, i32, i32, i32
  }
  func.func @transform_1(%arg0: i32, %arg1: i32) -> (i32, i32, i32, i32) {
    %c0_i32 = arith.constant 0 : i32
    %c0_i32_0 = arith.constant 0 : i32
    %c0_i32_1 = arith.constant 0 : i32
    %c0_i32_2 = arith.constant 0 : i32
    return %c0_i32, %c0_i32_0, %c0_i32_1, %arg1 : i32, i32, i32, i32
  }
  func.func @transform_2(%arg0: i32, %arg1: i32) -> (i32, i32) {
    %c0_i32 = arith.constant 0 : i32
    %c0_i32_0 = arith.constant 0 : i32
    return %c0_i32, %arg1 : i32, i32
  }
  func.func @transform_3(%arg0: i32, %arg1: i32) -> (i32, i32) {
    %c0_i32 = arith.constant 0 : i32
    %c0_i32_0 = arith.constant 0 : i32
    return %c0_i32, %arg1 : i32, i32
  }
  func.func @transform_4(%arg0: i32, %arg1: i32) -> (i32, i32, i32, i32) {
    %c0_i32 = arith.constant 0 : i32
    %c0_i32_0 = arith.constant 0 : i32
    %c0_i32_1 = arith.constant 0 : i32
    return %arg0, %c0_i32, %c0_i32_0, %arg1 : i32, i32, i32, i32
  }
}

module attributes {stable_mosaic.version = 11 : i64} {
  func.func @_conv3_shortcut_kernel(%arg0: i32, %arg1: i32, %arg2: memref<512x8xbf16, #tpu.memory_space<vmem>>, %arg3: memref<8x32xbf16, #tpu.memory_space<vmem>>, %arg4: memref<1x32xf32, #tpu.memory_space<vmem>>, %arg5: memref<1x32xf32, #tpu.memory_space<vmem>>, %arg6: memref<512x16xbf16, #tpu.memory_space<vmem>>, %arg7: memref<16x32xbf16, #tpu.memory_space<vmem>>, %arg8: memref<1x32xf32, #tpu.memory_space<vmem>>, %arg9: memref<1x32xf32, #tpu.memory_space<vmem>>, %arg10: memref<512x32xf32, #tpu.memory_space<vmem>>) attributes {dimension_semantics = [#tpu.dimension_semantics<parallel>, #tpu.dimension_semantics<parallel>], iteration_bounds = array<i64: 1, 1>, scalar_prefetch = 0 : i64, scratch_operands = 0 : i64, tpu.core_type = #tpu.core_type<tc>, window_params = [{transform_indices = @transform_0, window_bounds = array<i64: 512, 8>}, {transform_indices = @transform_1, window_bounds = array<i64: 8, 32>}, {transform_indices = @transform_2, window_bounds = array<i64: 1, 32>}, {transform_indices = @transform_3, window_bounds = array<i64: 1, 32>}, {transform_indices = @transform_4, window_bounds = array<i64: 512, 16>}, {transform_indices = @transform_5, window_bounds = array<i64: 16, 32>}, {transform_indices = @transform_6, window_bounds = array<i64: 1, 32>}, {transform_indices = @transform_7, window_bounds = array<i64: 1, 32>}, {transform_indices = @transform_8, window_bounds = array<i64: 512, 32>}]} {
    %c0 = arith.constant 0 : index
    %c0_0 = arith.constant 0 : index
    %0 = vector.load %arg2[%c0, %c0_0] : memref<512x8xbf16, #tpu.memory_space<vmem>>, vector<512x8xbf16>
    %c0_1 = arith.constant 0 : index
    %c0_2 = arith.constant 0 : index
    %1 = vector.load %arg3[%c0_1, %c0_2] : memref<8x32xbf16, #tpu.memory_space<vmem>>, vector<8x32xbf16>
    %cst = arith.constant dense<0.000000e+00> : vector<512x32xf32>
    %2 = tpu.matmul %0, %1, %cst {dimension_numbers = #tpu.dot_dimension_numbers<[1], [0], [0], [1], [0, 0, 1, 1], [], []>} : vector<512x8xbf16>, vector<8x32xbf16>, vector<512x32xf32> -> vector<512x32xf32>
    %c0_3 = arith.constant 0 : index
    %c0_4 = arith.constant 0 : index
    %3 = vector.load %arg4[%c0_3, %c0_4] : memref<1x32xf32, #tpu.memory_space<vmem>>, vector<1x32xf32>
    %4 = vector.broadcast %3 : vector<1x32xf32> to vector<512x32xf32>
    %5 = arith.mulf %2, %4 : vector<512x32xf32>
    %c0_5 = arith.constant 0 : index
    %c0_6 = arith.constant 0 : index
    %6 = vector.load %arg5[%c0_5, %c0_6] : memref<1x32xf32, #tpu.memory_space<vmem>>, vector<1x32xf32>
    %7 = vector.broadcast %6 : vector<1x32xf32> to vector<512x32xf32>
    %8 = arith.addf %5, %7 : vector<512x32xf32>
    %c0_7 = arith.constant 0 : index
    %c0_8 = arith.constant 0 : index
    %9 = vector.load %arg6[%c0_7, %c0_8] : memref<512x16xbf16, #tpu.memory_space<vmem>>, vector<512x16xbf16>
    %c0_9 = arith.constant 0 : index
    %c0_10 = arith.constant 0 : index
    %10 = vector.load %arg7[%c0_9, %c0_10] : memref<16x32xbf16, #tpu.memory_space<vmem>>, vector<16x32xbf16>
    %cst_11 = arith.constant dense<0.000000e+00> : vector<512x32xf32>
    %11 = tpu.matmul %9, %10, %cst_11 {dimension_numbers = #tpu.dot_dimension_numbers<[1], [0], [0], [1], [0, 0, 1, 1], [], []>} : vector<512x16xbf16>, vector<16x32xbf16>, vector<512x32xf32> -> vector<512x32xf32>
    %c0_12 = arith.constant 0 : index
    %c0_13 = arith.constant 0 : index
    %12 = vector.load %arg8[%c0_12, %c0_13] : memref<1x32xf32, #tpu.memory_space<vmem>>, vector<1x32xf32>
    %13 = vector.broadcast %12 : vector<1x32xf32> to vector<512x32xf32>
    %14 = arith.mulf %11, %13 : vector<512x32xf32>
    %c0_14 = arith.constant 0 : index
    %c0_15 = arith.constant 0 : index
    %15 = vector.load %arg9[%c0_14, %c0_15] : memref<1x32xf32, #tpu.memory_space<vmem>>, vector<1x32xf32>
    %16 = vector.broadcast %15 : vector<1x32xf32> to vector<512x32xf32>
    %17 = arith.addf %14, %16 : vector<512x32xf32>
    %18 = arith.addf %8, %17 : vector<512x32xf32>
    %cst_16 = arith.constant 0.000000e+00 : f32
    %19 = vector.broadcast %cst_16 : f32 to vector<512x32xf32>
    %20 = arith.maximumf %18, %19 : vector<512x32xf32>
    %c0_17 = arith.constant 0 : index
    %c0_18 = arith.constant 0 : index
    %21 = vector.load %arg10[%c0_17, %c0_18] : memref<512x32xf32, #tpu.memory_space<vmem>>, vector<512x32xf32>
    tpu.vector_store %arg10[%c0_17, %c0_18], %20 {strides = array<i32>} : memref<512x32xf32, #tpu.memory_space<vmem>>, vector<512x32xf32>,
    return
  }
  func.func @transform_0(%arg0: i32, %arg1: i32) -> (i32, i32) {
    %c0_i32 = arith.constant 0 : i32
    %c0_i32_0 = arith.constant 0 : i32
    return %arg0, %c0_i32 : i32, i32
  }
  func.func @transform_1(%arg0: i32, %arg1: i32) -> (i32, i32) {
    %c0_i32 = arith.constant 0 : i32
    %c0_i32_0 = arith.constant 0 : i32
    return %c0_i32, %arg1 : i32, i32
  }
  func.func @transform_2(%arg0: i32, %arg1: i32) -> (i32, i32) {
    %c0_i32 = arith.constant 0 : i32
    %c0_i32_0 = arith.constant 0 : i32
    return %c0_i32, %arg1 : i32, i32
  }
  func.func @transform_3(%arg0: i32, %arg1: i32) -> (i32, i32) {
    %c0_i32 = arith.constant 0 : i32
    %c0_i32_0 = arith.constant 0 : i32
    return %c0_i32, %arg1 : i32, i32
  }
  func.func @transform_4(%arg0: i32, %arg1: i32) -> (i32, i32) {
    %c0_i32 = arith.constant 0 : i32
    %c0_i32_0 = arith.constant 0 : i32
    return %arg0, %c0_i32 : i32, i32
  }
  func.func @transform_5(%arg0: i32, %arg1: i32) -> (i32, i32) {
    %c0_i32 = arith.constant 0 : i32
    %c0_i32_0 = arith.constant 0 : i32
    return %c0_i32, %arg1 : i32, i32
  }
  func.func @transform_6(%arg0: i32, %arg1: i32) -> (i32, i32) {
    %c0_i32 = arith.constant 0 : i32
    %c0_i32_0 = arith.constant 0 : i32
    return %c0_i32, %arg1 : i32, i32
  }
  func.func @transform_7(%arg0: i32, %arg1: i32) -> (i32, i32) {
    %c0_i32 = arith.constant 0 : i32
    %c0_i32_0 = arith.constant 0 : i32
    return %c0_i32, %arg1 : i32, i32
  }
  func.func @transform_8(%arg0: i32, %arg1: i32) -> (i32, i32) {
    %c0_i32 = arith.constant 0 : i32
    return %arg0, %arg1 : i32, i32
  }
}

</mosaic_0001>

<bundles_post_ra>
// kernel: bottleneck_forward.3
= control target key start
LH: loop header
LB: loop body
LE: loop exit
PB: predicated region body
PF: predicated region fallthrough
CT: control target
= control target key end

     0   :  { %s1942_s15 = smov 0   ;;  %s1944_s16 = smov 0   ;;  %s2319_s0 = inlined_call_operand.vmem [shape: bf16[2048,16], index: 0, kind: input, shape index: {}]   ;;  %s2320_s1 = inlined_call_operand.vmem [shape: bf16[16,8], index: 1, kind: input, shape index: {}]   ;;  %s2321_s2 = inlined_call_operand.vmem [shape: f32[1,8], index: 2, kind: input, shape index: {}]   ;;  %s2322_s3 = inlined_call_operand.vmem [shape: f32[1,8], index: 3, kind: input, shape index: {}]   ;;  %s2323_s4 = inlined_call_operand.vmem [shape: bf16[2048,8], index: 4, kind: output, shape index: {}]  }
   0x1   :  { %s1946_s17 = smov 0  }
   0x2 LB: > { %s26_s18 = sadd.s32 1, %s1911_s16  ;;  %p1533_p0 = scmp.ge.s32.totalorder %s1915_s17, 1  ;;  %s1915_s17 = sphi %s1946_s17, %s14_s17   ;;  %s1911_s16 = sphi %s1944_s16, %s2325_s16   ;;  %s1907_s15 = sphi %s1942_s15, %s2324_s15  }
   0x3   : > { %p28_p1 = scmp.ge.s32.totalorder %s26_s18, 4  ;;  %p202_p2 = scmp.lt.s32.totalorder %s1915_s17, 5 }
   0x5   : > { %s2327_s18 = smov (%p28_p1, %s26_s18), 0  ;;  %p203_p3 = pnand %p1533_p0, %p202_p2 }
   0x6   : > { %v1860_v0 = vld [vmem:[%s2320_s1] sm:$0xff] (!%p203_p3)   ;;  %s1534_s21 = sshll.u32 (!%p203_p3), %s1907_s15, 6  ;;  %vm499_vm0 = vcmask (!%p203_p3), 130048   ;;  %vm1347_vm1 = vcmask (!%p203_p3), 60416  }
   0x7   : > { %206 = sbr.rel (%p203_p3) target bundleno = 303 (0x12f), region = 36  ;;  %p242_p4 = scmp.lt.s32.totalorder (!%p203_p3), %s1534_s21, 255  ;;  %1768 = vmatprep.subr.bf16.mxu0 (!%p203_p3), %v1860_v0  ;;  %1834 = vmatprep.subr.bf16.mxu1 (!%p203_p3), %v1860_v0  ;;  %v2040_v33 = vld [vmem:[%s2321_s2] ss:$0 sm:$0xff] (!%p203_p3) }
   0x8   : > { %1769 = vmatpush3.bf16.msra.mxu0 (!%p203_p3), %v1860_v0  ;;  %1835 = vmatpush3.bf16.msra.mxu1 (!%p203_p3), %v1860_v0  ;;  %v2045_v35 = vld [vmem:[%s2322_s3] ss:$0 sm:$0xff] (!%p203_p3) }
   0xe   : > { %s2329_s21 = smov (!%p242_p4, %s1534_s21), 255 }
   0xf   : > { %s1535_s22 = sshll.u32 %s2329_s21, 2 }
  0x10   : > { %s1971_s25 = scalar_lea.vmem %s2319_s0, %s1535_s22  ;;  %s2065_s6 = scalar_lea.vmem %s2323_s4, %s1535_s22 }
  0x11   : > { %v1861_v1 = vld [vmem:[%s1971_s25] sm:$0xff]   ;;  %v1863_v3 = vld [vmem:[%s1971_s25 + $0x8] sm:$0xff]   ;;  %v1865_v5 = vld [vmem:[%s1971_s25 + $0x10] sm:$0xff]  }
  0x12   : > { %v1862_v2 = vld [vmem:[%s1971_s25 + $0x80] sm:$0xff]   ;;  %1770 = vmatprep.mubr.msk.bf16.mxu0 %vm499_vm0, %v1861_v1  ;;  %v1864_v4 = vld [vmem:[%s1971_s25 + $0x88] sm:$0xff]   ;;  %v1866_v6 = vld [vmem:[%s1971_s25 + $0x90] sm:$0xff]  }
  0x13   : > { %1802 = vmatprep.mubr.msk.bf16.mxu1 %vm499_vm0, %v1862_v2  ;;  %1771 = vmatmul.mubr.msk.bf16.vlgmr.msra.gmra.mrb[0].mxu0 %vm499_vm0, %v1863_v3  ;;  %v1867_v7 = vld [vmem:[%s1971_s25 + $0x18] sm:$0xff]   ;;  %v1869_v9 = vld [vmem:[%s1971_s25 + $0x20] sm:$0xff]   ;;  %v1871_v11 = vld [vmem:[%s1971_s25 + $0x28] sm:$0xff]  }
  0x14   : > { %1803 = vmatmul.mubr.msk.bf16.vlgmr.msra.gmra.mrb[0].mxu1 %vm499_vm0, %v1864_v4  ;;  %1774 = vmatprep.mubr.msk.bf16.mxu0 %vm499_vm0, %v1865_v5  ;;  %v1868_v8 = vld [vmem:[%s1971_s25 + $0x98] sm:$0xff]   ;;  %v1870_v10 = vld [vmem:[%s1971_s25 + $0xa0] sm:$0xff]   ;;  %v1872_v12 = vld [vmem:[%s1971_s25 + $0xa8] sm:$0xff]  }
  0x15   : > { %1806 = vmatprep.mubr.msk.bf16.mxu1 %vm499_vm0, %v1866_v6  ;;  %v1873_v13 = vld [vmem:[%s1971_s25 + $0x30] sm:$0xff]   ;;  %v1875_v15 = vld [vmem:[%s1971_s25 + $0x38] sm:$0xff]   ;;  %v1877_v17 = vld [vmem:[%s1971_s25 + $0x40] sm:$0xff]  }
  0x16   : > { %v1874_v14 = vld [vmem:[%s1971_s25 + $0xb0] sm:$0xff]   ;;  %v1876_v16 = vld [vmem:[%s1971_s25 + $0xb8] sm:$0xff]   ;;  %v1878_v18 = vld [vmem:[%s1971_s25 + $0xc0] sm:$0xff]  }
  0x17   : > { %v1879_v19 = vld [vmem:[%s1971_s25 + $0x48] sm:$0xff]   ;;  %v1881_v21 = vld [vmem:[%s1971_s25 + $0x50] sm:$0xff]   ;;  %v1883_v23 = vld [vmem:[%s1971_s25 + $0x58] sm:$0xff]  }
  0x18   : > { %v1880_v20 = vld [vmem:[%s1971_s25 + $0xc8] sm:$0xff]   ;;  %v1882_v22 = vld [vmem:[%s1971_s25 + $0xd0] sm:$0xff]   ;;  %v1884_v24 = vld [vmem:[%s1971_s25 + $0xd8] sm:$0xff]  }
  0x19   : > { %v1885_v25 = vld [vmem:[%s1971_s25 + $0x60] sm:$0xff]   ;;  %v1887_v27 = vld [vmem:[%s1971_s25 + $0x68] sm:$0xff]   ;;  %v1889_v29 = vld [vmem:[%s1971_s25 + $0x70] sm:$0xff]  }
  0x1a   : > { %v1886_v26 = vld [vmem:[%s1971_s25 + $0xe0] sm:$0xff]   ;;  %v1888_v28 = vld [vmem:[%s1971_s25 + $0xe8] sm:$0xff]   ;;  %v1890_v30 = vld [vmem:[%s1971_s25 + $0xf0] sm:$0xff]  }
  0x1b   : > { %1775 = vmatmul.mubr.msk.bf16.gmra.mrb[4].mxu0 %vm499_vm0, %v1867_v7  ;;  %v1891_v31 = vld [vmem:[%s1971_s25 + $0x78] sm:$0xff]  }
  0x1c   : > { %1807 = vmatmul.mubr.msk.bf16.gmra.mrb[4].mxu1 %vm499_vm0, %v1868_v8  ;;  %1778 = vmatprep.mubr.msk.bf16.mxu0 %vm499_vm0, %v1869_v9  ;;  %v1892_v32 = vld [vmem:[%s1971_s25 + $0xf8] sm:$0xff]  }
  0x1d   : > { %1810 = vmatprep.mubr.msk.bf16.mxu1 %vm499_vm0, %v1870_v10 }
  0x23   : > { %1779 = vmatmul.mubr.msk.bf16.gmra.mrb[8].mxu0 %vm499_vm0, %v1871_v11 }
  0x24   : > { %1811 = vmatmul.mubr.msk.bf16.gmra.mrb[8].mxu1 %vm499_vm0, %v1872_v12  ;;  %1782 = vmatprep.mubr.msk.bf16.mxu0 %vm499_vm0, %v1873_v13 }
  0x25   : > { %1814 = vmatprep.mubr.msk.bf16.mxu1 %vm499_vm0, %v1874_v14 }
  0x2b   : > { %1783 = vmatmul.mubr.msk.bf16.gmra.mrb[12].mxu0 %vm499_vm0, %v1875_v15 }
  0x2c   : > { %1815 = vmatmul.mubr.msk.bf16.gmra.mrb[12].mxu1 %vm499_vm0, %v1876_v16  ;;  %1786 = vmatprep.mubr.msk.bf16.mxu0 %vm499_vm0, %v1877_v17 }
  0x2d   : > { %1818 = vmatprep.mubr.msk.bf16.mxu1 %vm499_vm0, %v1878_v18 }
  0x33   : > { %1787 = vmatmul.mubr.msk.bf16.gmra.mrb[16].mxu0 %vm499_vm0, %v1879_v19 }
  0x34   : > { %1819 = vmatmul.mubr.msk.bf16.gmra.mrb[16].mxu1 %vm499_vm0, %v1880_v20  ;;  %1790 = vmatprep.mubr.msk.bf16.mxu0 %vm499_vm0, %v1881_v21 }
  0x35   : > { %1822 = vmatprep.mubr.msk.bf16.mxu1 %vm499_vm0, %v1882_v22 }
  0x3b   : > { %1791 = vmatmul.mubr.msk.bf16.gmra.mrb[20].mxu0 %vm499_vm0, %v1883_v23 }
  0x3c   : > { %1823 = vmatmul.mubr.msk.bf16.gmra.mrb[20].mxu1 %vm499_vm0, %v1884_v24  ;;  %1794 = vmatprep.mubr.msk.bf16.mxu0 %vm499_vm0, %v1885_v25 }
  0x3d   : > { %1826 = vmatprep.mubr.msk.bf16.mxu1 %vm499_vm0, %v1886_v26 }
  0x43   : > { %1795 = vmatmul.mubr.msk.bf16.gmra.mrb[24].mxu0 %vm499_vm0, %v1887_v27 }
  0x44   : > { %1827 = vmatmul.mubr.msk.bf16.gmra.mrb[24].mxu1 %vm499_vm0, %v1888_v28  ;;  %1798 = vmatprep.mubr.msk.bf16.mxu0 %vm499_vm0, %v1889_v29 }
  0x45   : > { %1830 = vmatprep.mubr.msk.bf16.mxu1 %vm499_vm0, %v1890_v30 }
  0x4b   : > { %1799 = vmatmul.mubr.msk.bf16.gmra.mrb[28].mxu0 %vm499_vm0, %v1891_v31 }
  0x4c   : > { %1831 = vmatmul.mubr.msk.bf16.gmra.mrb[28].mxu1 %vm499_vm0, %v1892_v32 }
  0xe6   : > { %v1772_v34 = vpop.f32.mrb[0].mxu0 }
  0xe7   : > { %v894_v36 = vmul.f32 %v1772_v34, %v2040_v33  ;;  %v1804_v37 = vpop.f32.mrb[0].mxu1  ;;  %v630_v38 = vpop.f32.mrb[1].mxu0 }
  0xe8   : > { %v926_v39 = vmul.f32 %v1804_v37, %v2040_v33  ;;  %v892_v40 = vmul.f32 %v2040_v33, %v630_v38  ;;  %v758_v41 = vpop.f32.mrb[1].mxu1  ;;  %v1773_v42 = vpop.f32.mrb[2].mxu0 }
  0xe9   : > { %v965_v43 = vadd.f32 %v2045_v35, %v894_v36  ;;  %v924_v44 = vmul.f32 %v2040_v33, %v758_v41  ;;  %v895_v45 = vmul.f32 %v1773_v42, %v2040_v33  ;;  %v1805_v46 = vpop.f32.mrb[2].mxu1  ;;  %v633_v47 = vpop.f32.mrb[3].mxu0 }
  0xea   : > { %v997_v48 = vadd.f32 %v2045_v35, %v926_v39  ;;  %v963_v49 = vadd.f32 %v2045_v35, %v892_v40  ;;  %v927_v50 = vmul.f32 %v1805_v46, %v2040_v33  ;;  %v893_v51 = vmul.f32 %v2040_v33, %v633_v47  ;;  %v761_v52 = vpop.f32.mrb[3].mxu1 }
  0xeb   : > { %v1029_v53 = vmax.f32 %v965_v43, 0.0  ;;  %v995_v54 = vadd.f32 %v2045_v35, %v924_v44  ;;  %v966_v55 = vadd.f32 %v2045_v35, %v895_v45  ;;  %v925_v56 = vmul.f32 %v2040_v33, %v761_v52 }
  0xec   : > { %v1061_v57 = vmax.f32 %v997_v48, 0.0  ;;  %v1027_v58 = vmax.f32 %v963_v49, 0.0  ;;  %v998_v59 = vadd.f32 %v2045_v35, %v927_v50  ;;  %v964_v60 = vadd.f32 %v2045_v35, %v893_v51 }
  0xed   : > { %v1673_v61 = vpack.c.bf16 %v1029_v53, %v1029_v53  ;;  %v1059_v62 = vmax.f32 %v995_v54, 0.0  ;;  %v1030_v63 = vmax.f32 %v966_v55, 0.0  ;;  %v996_v0 = vadd.f32 %v2045_v35, %v925_v56 }
  0xee   : > { %v1705_v1 = vpack.c.bf16 %v1061_v57, %v1061_v57  ;;  %v1671_v2 = vpack.c.bf16 %v1027_v58, %v1027_v58  ;;  %v1062_v3 = vmax.f32 %v998_v59, 0.0  ;;  %v1028_v4 = vmax.f32 %v964_v60, 0.0  ;;  %v1776_v5 = vpop.f32.mrb[4].mxu0 }
  0xef   : > { %1350 = vst.msk [vmem:[%s2065_s6 + $0x8] sm:$0xf] %vm1347_vm1, %v1673_v61  ;;  %v1703_v6 = vpack.c.bf16 %v1059_v62, %v1059_v62  ;;  %v1674_v7 = vpack.c.bf16 %v1030_v63, %v1030_v63  ;;  %v1060_v8 = vmax.f32 %v996_v0, 0.0  ;;  %v898_v9 = vmul.f32 %v1776_v5, %v2040_v33  ;;  %v1808_v10 = vpop.f32.mrb[4].mxu1  ;;  %v646_v11 = vpop.f32.mrb[5].mxu0 }
  0xf0   : > { %1382 = vst.msk [vmem:[%s2065_s6 + $0x88] sm:$0xf] %vm1347_vm1, %v1705_v1  ;;  %1348 = vst.msk [vmem:[%s2065_s6] sm:$0xf] %vm1347_vm1, %v1671_v2  ;;  %v1706_v12 = vpack.c.bf16 %v1062_v3, %v1062_v3  ;;  %v1672_v13 = vpack.c.bf16 %v1028_v4, %v1028_v4  ;;  %v930_v14 = vmul.f32 %v1808_v10, %v2040_v33  ;;  %v774_v16 = vpop.f32.mrb[5].mxu1  ;;  %v1777_v17 = vpop.f32.mrb[6].mxu0 }
  0xf1   : > { %v896_v15 = vmul.f32 %v2040_v33, %v646_v11  ;;  %1380 = vst.msk [vmem:[%s2065_s6 + $0x80] sm:$0xf] %vm1347_vm1, %v1703_v6  ;;  %1351 = vst.msk [vmem:[%s2065_s6 + $0xc] sm:$0xf] %vm1347_vm1, %v1674_v7  ;;  %v1704_v18 = vpack.c.bf16 %v1060_v8, %v1060_v8  ;;  %v969_v19 = vadd.f32 %v2045_v35, %v898_v9  ;;  %v1809_v22 = vpop.f32.mrb[6].mxu1  ;;  %v649_v23 = vpop.f32.mrb[7].mxu0 }
  0xf2   : > { %v928_v20 = vmul.f32 %v2040_v33, %v774_v16  ;;  %v899_v21 = vmul.f32 %v1777_v17, %v2040_v33  ;;  %1383 = vst.msk [vmem:[%s2065_s6 + $0x8c] sm:$0xf] %vm1347_vm1, %v1706_v12  ;;  %1349 = vst.msk [vmem:[%s2065_s6 + $0x4] sm:$0xf] %vm1347_vm1, %v1672_v13  ;;  %v1001_v24 = vadd.f32 %v2045_v35, %v930_v14  ;;  %v777_v28 = vpop.f32.mrb[7].mxu1 }
  0xf3   : > { %v967_v25 = vadd.f32 %v2045_v35, %v896_v15  ;;  %v931_v26 = vmul.f32 %v1809_v22, %v2040_v33  ;;  %v897_v27 = vmul.f32 %v2040_v33, %v649_v23  ;;  %1381 = vst.msk [vmem:[%s2065_s6 + $0x84] sm:$0xf] %vm1347_vm1, %v1704_v18  ;;  %v1033_v29 = vmax.f32 %v969_v19, 0.0 }
  0xf4   : > { %v999_v30 = vadd.f32 %v2045_v35, %v928_v20  ;;  %v970_v31 = vadd.f32 %v2045_v35, %v899_v21  ;;  %v929_v32 = vmul.f32 %v2040_v33, %v777_v28  ;;  %v1065_v34 = vmax.f32 %v1001_v24, 0.0 }
  0xf5   : > { %v1031_v36 = vmax.f32 %v967_v25, 0.0  ;;  %v1002_v37 = vadd.f32 %v2045_v35, %v931_v26  ;;  %v968_v38 = vadd.f32 %v2045_v35, %v897_v27  ;;  %v1677_v39 = vpack.c.bf16 %v1033_v29, %v1033_v29 }
  0xf6   : > { %v1063_v40 = vmax.f32 %v999_v30, 0.0  ;;  %v1034_v41 = vmax.f32 %v970_v31, 0.0  ;;  %v1000_v42 = vadd.f32 %v2045_v35, %v929_v32  ;;  %v1709_v43 = vpack.c.bf16 %v1065_v34, %v1065_v34  ;;  %v1780_v47 = vpop.f32.mrb[8].mxu0 }
  0xf7   : > { %v1675_v44 = vpack.c.bf16 %v1031_v36, %v1031_v36  ;;  %v1066_v45 = vmax.f32 %v1002_v37, 0.0  ;;  %v1032_v46 = vmax.f32 %v968_v38, 0.0  ;;  %1354 = vst.msk [vmem:[%s2065_s6 + $0x18] sm:$0xf] %vm1347_vm1, %v1677_v39  ;;  %v902_v51 = vmul.f32 %v1780_v47, %v2040_v33  ;;  %v1812_v52 = vpop.f32.mrb[8].mxu1  ;;  %v662_v53 = vpop.f32.mrb[9].mxu0 }
  0xf8   : > { %v1707_v48 = vpack.c.bf16 %v1063_v40, %v1063_v40  ;;  %v1678_v49 = vpack.c.bf16 %v1034_v41, %v1034_v41  ;;  %v1064_v50 = vmax.f32 %v1000_v42, 0.0  ;;  %1386 = vst.msk [vmem:[%s2065_s6 + $0x98] sm:$0xf] %vm1347_vm1, %v1709_v43  ;;  %v934_v56 = vmul.f32 %v1812_v52, %v2040_v33  ;;  %v790_v58 = vpop.f32.mrb[9].mxu1  ;;  %v1781_v59 = vpop.f32.mrb[10].mxu0 }
  0xf9   : > { %1352 = vst.msk [vmem:[%s2065_s6 + $0x10] sm:$0xf] %vm1347_vm1, %v1675_v44  ;;  %v1710_v54 = vpack.c.bf16 %v1066_v45, %v1066_v45  ;;  %v1676_v55 = vpack.c.bf16 %v1032_v46, %v1032_v46  ;;  %v900_v57 = vmul.f32 %v2040_v33, %v662_v53  ;;  %v973_v61 = vadd.f32 %v2045_v35, %v902_v51  ;;  %v1813_v0 = vpop.f32.mrb[10].mxu1  ;;  %v665_v1 = vpop.f32.mrb[11].mxu0 }
  0xfa   : > { %1384 = vst.msk [vmem:[%s2065_s6 + $0x90] sm:$0xf] %vm1347_vm1, %v1707_v48  ;;  %1355 = vst.msk [vmem:[%s2065_s6 + $0x1c] sm:$0xf] %vm1347_vm1, %v1678_v49  ;;  %v1708_v60 = vpack.c.bf16 %v1064_v50, %v1064_v50  ;;  %v932_v62 = vmul.f32 %v2040_v33, %v790_v58  ;;  %v903_v63 = vmul.f32 %v1781_v59, %v2040_v33  ;;  %v793_v6 = vpop.f32.mrb[11].mxu1 }
  0xfb   : > { %1387 = vst.msk [vmem:[%s2065_s6 + $0x9c] sm:$0xf] %vm1347_vm1, %v1710_v54  ;;  %1353 = vst.msk [vmem:[%s2065_s6 + $0x14] sm:$0xf] %vm1347_vm1, %v1676_v55  ;;  %v1005_v2 = vadd.f32 %v2045_v35, %v934_v56  ;;  %v971_v3 = vadd.f32 %v2045_v35, %v900_v57  ;;  %v935_v4 = vmul.f32 %v1813_v0, %v2040_v33  ;;  %v1037_v7 = vmax.f32 %v973_v61, 0.0 }
  0xfc   : > { %v901_v5 = vmul.f32 %v2040_v33, %v665_v1  ;;  %1385 = vst.msk [vmem:[%s2065_s6 + $0x94] sm:$0xf] %vm1347_vm1, %v1708_v60  ;;  %v1003_v8 = vadd.f32 %v2045_v35, %v932_v62  ;;  %v974_v9 = vadd.f32 %v2045_v35, %v903_v63  ;;  %v933_v10 = vmul.f32 %v2040_v33, %v793_v6 }
  0xfd   : > { %v1069_v11 = vmax.f32 %v1005_v2, 0.0  ;;  %v1035_v12 = vmax.f32 %v971_v3, 0.0  ;;  %v1006_v13 = vadd.f32 %v2045_v35, %v935_v4  ;;  %v1681_v15 = vpack.c.bf16 %v1037_v7, %v1037_v7 }
  0xfe   : > { %v972_v14 = vadd.f32 %v2045_v35, %v901_v5  ;;  %v1067_v16 = vmax.f32 %v1003_v8, 0.0  ;;  %v1038_v17 = vmax.f32 %v974_v9, 0.0  ;;  %v1004_v18 = vadd.f32 %v2045_v35, %v933_v10  ;;  %v1784_v23 = vpop.f32.mrb[12].mxu0 }
  0xff   : > { %v1713_v19 = vpack.c.bf16 %v1069_v11, %v1069_v11  ;;  %v1679_v20 = vpack.c.bf16 %v1035_v12, %v1035_v12  ;;  %v1070_v21 = vmax.f32 %v1006_v13, 0.0  ;;  %1358 = vst.msk [vmem:[%s2065_s6 + $0x28] sm:$0xf] %vm1347_vm1, %v1681_v15  ;;  %v906_v27 = vmul.f32 %v1784_v23, %v2040_v33  ;;  %v1816_v28 = vpop.f32.mrb[12].mxu1  ;;  %v678_v29 = vpop.f32.mrb[13].mxu0 }
 0x100   : > { %v1036_v22 = vmax.f32 %v972_v14, 0.0  ;;  %v1711_v24 = vpack.c.bf16 %v1067_v16, %v1067_v16  ;;  %v1682_v25 = vpack.c.bf16 %v1038_v17, %v1038_v17  ;;  %v1068_v26 = vmax.f32 %v1004_v18, 0.0  ;;  %v806_v36 = vpop.f32.mrb[13].mxu1  ;;  %v1785_v37 = vpop.f32.mrb[14].mxu0 }
 0x101   : > { %1390 = vst.msk [vmem:[%s2065_s6 + $0xa8] sm:$0xf] %vm1347_vm1, %v1713_v19  ;;  %1356 = vst.msk [vmem:[%s2065_s6 + $0x20] sm:$0xf] %vm1347_vm1, %v1679_v20  ;;  %v1714_v30 = vpack.c.bf16 %v1070_v21, %v1070_v21  ;;  %v938_v32 = vmul.f32 %v1816_v28, %v2040_v33  ;;  %v904_v34 = vmul.f32 %v2040_v33, %v678_v29  ;;  %v1817_v42 = vpop.f32.mrb[14].mxu1  ;;  %v681_v43 = vpop.f32.mrb[15].mxu0 }
 0x102   : > { %v1680_v31 = vpack.c.bf16 %v1036_v22, %v1036_v22  ;;  %1388 = vst.msk [vmem:[%s2065_s6 + $0xa0] sm:$0xf] %vm1347_vm1, %v1711_v24  ;;  %1359 = vst.msk [vmem:[%s2065_s6 + $0x2c] sm:$0xf] %vm1347_vm1, %v1682_v25  ;;  %v1712_v38 = vpack.c.bf16 %v1068_v26, %v1068_v26  ;;  %v977_v39 = vadd.f32 %v2045_v35, %v906_v27  ;;  %v809_v48 = vpop.f32.mrb[15].mxu1 }
 0x103   : > { %v936_v40 = vmul.f32 %v2040_v33, %v806_v36  ;;  %v907_v41 = vmul.f32 %v1785_v37, %v2040_v33  ;;  %1391 = vst.msk [vmem:[%s2065_s6 + $0xac] sm:$0xf] %vm1347_vm1, %v1714_v30  ;;  %v1009_v44 = vadd.f32 %v2045_v35, %v938_v32  ;;  %v975_v45 = vadd.f32 %v2045_v35, %v904_v34 }
 0x104   : > { %1357 = vst.msk [vmem:[%s2065_s6 + $0x24] sm:$0xf] %vm1347_vm1, %v1680_v31  ;;  %v939_v46 = vmul.f32 %v1817_v42, %v2040_v33  ;;  %v905_v47 = vmul.f32 %v2040_v33, %v681_v43  ;;  %1389 = vst.msk [vmem:[%s2065_s6 + $0xa4] sm:$0xf] %vm1347_vm1, %v1712_v38  ;;  %v1041_v49 = vmax.f32 %v977_v39, 0.0  ;;  %v937_v52 = vmul.f32 %v2040_v33, %v809_v48 }
 0x105   : > { %v1007_v50 = vadd.f32 %v2045_v35, %v936_v40  ;;  %v978_v51 = vadd.f32 %v2045_v35, %v907_v41  ;;  %v1073_v53 = vmax.f32 %v1009_v44, 0.0  ;;  %v1039_v54 = vmax.f32 %v975_v45, 0.0 }
 0x106   : > { %v1010_v55 = vadd.f32 %v2045_v35, %v939_v46  ;;  %v976_v56 = vadd.f32 %v2045_v35, %v905_v47  ;;  %v1685_v57 = vpack.c.bf16 %v1041_v49, %v1041_v49  ;;  %v1008_v60 = vadd.f32 %v2045_v35, %v937_v52  ;;  %v1788_v1 = vpop.f32.mrb[16].mxu0 }
 0x107   : > { %v1071_v58 = vmax.f32 %v1007_v50, 0.0  ;;  %v1042_v59 = vmax.f32 %v978_v51, 0.0  ;;  %v1717_v61 = vpack.c.bf16 %v1073_v53, %v1073_v53  ;;  %v1683_v62 = vpack.c.bf16 %v1039_v54, %v1039_v54  ;;  %v1820_v6 = vpop.f32.mrb[16].mxu1  ;;  %v694_v7 = vpop.f32.mrb[17].mxu0 }
 0x108   : > { %v1074_v63 = vmax.f32 %v1010_v55, 0.0  ;;  %v1040_v0 = vmax.f32 %v976_v56, 0.0  ;;  %1362 = vst.msk [vmem:[%s2065_s6 + $0x38] sm:$0xf] %vm1347_vm1, %v1685_v57  ;;  %v1072_v4 = vmax.f32 %v1008_v60, 0.0  ;;  %v910_v5 = vmul.f32 %v1788_v1, %v2040_v33  ;;  %v822_v12 = vpop.f32.mrb[17].mxu1 }
 0x109   : > { %v1715_v2 = vpack.c.bf16 %v1071_v58, %v1071_v58  ;;  %v1686_v3 = vpack.c.bf16 %v1042_v59, %v1042_v59  ;;  %1394 = vst.msk [vmem:[%s2065_s6 + $0xb8] sm:$0xf] %vm1347_vm1, %v1717_v61  ;;  %1360 = vst.msk [vmem:[%s2065_s6 + $0x30] sm:$0xf] %vm1347_vm1, %v1683_v62  ;;  %v942_v10 = vmul.f32 %v1820_v6, %v2040_v33  ;;  %v1789_v13 = vpop.f32.mrb[18].mxu0  ;;  %v1821_v18 = vpop.f32.mrb[18].mxu1 }
 0x10a   : > { %v1718_v8 = vpack.c.bf16 %v1074_v63, %v1074_v63  ;;  %v1684_v9 = vpack.c.bf16 %v1040_v0, %v1040_v0  ;;  %v908_v11 = vmul.f32 %v2040_v33, %v694_v7  ;;  %v1716_v14 = vpack.c.bf16 %v1072_v4, %v1072_v4  ;;  %v697_v19 = vpop.f32.mrb[19].mxu0  ;;  %v825_v24 = vpop.f32.mrb[19].mxu1 }
 0x10b   : > { %1392 = vst.msk [vmem:[%s2065_s6 + $0xb0] sm:$0xf] %vm1347_vm1, %v1715_v2  ;;  %1363 = vst.msk [vmem:[%s2065_s6 + $0x3c] sm:$0xf] %vm1347_vm1, %v1686_v3  ;;  %v981_v15 = vadd.f32 %v2045_v35, %v910_v5  ;;  %v940_v16 = vmul.f32 %v2040_v33, %v822_v12  ;;  %v911_v17 = vmul.f32 %v1789_v13, %v2040_v33 }
 0x10c   : > { %1395 = vst.msk [vmem:[%s2065_s6 + $0xbc] sm:$0xf] %vm1347_vm1, %v1718_v8  ;;  %1361 = vst.msk [vmem:[%s2065_s6 + $0x34] sm:$0xf] %vm1347_vm1, %v1684_v9  ;;  %v1013_v20 = vadd.f32 %v2045_v35, %v942_v10  ;;  %v979_v21 = vadd.f32 %v2045_v35, %v908_v11  ;;  %v943_v22 = vmul.f32 %v1821_v18, %v2040_v33 }
 0x10d   : > { %v909_v23 = vmul.f32 %v2040_v33, %v697_v19  ;;  %1393 = vst.msk [vmem:[%s2065_s6 + $0xb4] sm:$0xf] %vm1347_vm1, %v1716_v14  ;;  %v1045_v25 = vmax.f32 %v981_v15, 0.0  ;;  %v1011_v26 = vadd.f32 %v2045_v35, %v940_v16  ;;  %v982_v27 = vadd.f32 %v2045_v35, %v911_v17 }
 0x10e   : > { %v941_v28 = vmul.f32 %v2040_v33, %v825_v24  ;;  %v1077_v29 = vmax.f32 %v1013_v20, 0.0  ;;  %v1043_v30 = vmax.f32 %v979_v21, 0.0  ;;  %v1014_v31 = vadd.f32 %v2045_v35, %v943_v22  ;;  %v1792_v43 = vpop.f32.mrb[20].mxu0 }
 0x10f   : > { %v980_v32 = vadd.f32 %v2045_v35, %v909_v23  ;;  %v1689_v34 = vpack.c.bf16 %v1045_v25, %v1045_v25  ;;  %v1075_v36 = vmax.f32 %v1011_v26, 0.0  ;;  %v1046_v37 = vmax.f32 %v982_v27, 0.0  ;;  %v1824_v48 = vpop.f32.mrb[20].mxu1  ;;  %v710_v49 = vpop.f32.mrb[21].mxu0 }
 0x110   : > { %v1012_v38 = vadd.f32 %v2045_v35, %v941_v28  ;;  %v1721_v39 = vpack.c.bf16 %v1077_v29, %v1077_v29  ;;  %v1687_v40 = vpack.c.bf16 %v1043_v30, %v1043_v30  ;;  %v1078_v41 = vmax.f32 %v1014_v31, 0.0  ;;  %v838_v54 = vpop.f32.mrb[21].mxu1  ;;  %v1793_v55 = vpop.f32.mrb[22].mxu0 }
 0x111   : > { %v1044_v42 = vmax.f32 %v980_v32, 0.0  ;;  %1366 = vst.msk [vmem:[%s2065_s6 + $0x48] sm:$0xf] %vm1347_vm1, %v1689_v34  ;;  %v1719_v44 = vpack.c.bf16 %v1075_v36, %v1075_v36  ;;  %v1690_v45 = vpack.c.bf16 %v1046_v37, %v1046_v37  ;;  %v914_v47 = vmul.f32 %v1792_v43, %v2040_v33  ;;  %v1825_v60 = vpop.f32.mrb[22].mxu1  ;;  %v713_v61 = vpop.f32.mrb[23].mxu0 }
 0x112   : > { %v1076_v46 = vmax.f32 %v1012_v38, 0.0  ;;  %1398 = vst.msk [vmem:[%s2065_s6 + $0xc8] sm:$0xf] %vm1347_vm1, %v1721_v39  ;;  %1364 = vst.msk [vmem:[%s2065_s6 + $0x40] sm:$0xf] %vm1347_vm1, %v1687_v40  ;;  %v1722_v50 = vpack.c.bf16 %v1078_v41, %v1078_v41  ;;  %v946_v52 = vmul.f32 %v1824_v48, %v2040_v33  ;;  %v912_v53 = vmul.f32 %v2040_v33, %v710_v49  ;;  %v841_v2 = vpop.f32.mrb[23].mxu1 }
 0x113   : > { %v1688_v51 = vpack.c.bf16 %v1044_v42, %v1044_v42  ;;  %1396 = vst.msk [vmem:[%s2065_s6 + $0xc0] sm:$0xf] %vm1347_vm1, %v1719_v44  ;;  %1367 = vst.msk [vmem:[%s2065_s6 + $0x4c] sm:$0xf] %vm1347_vm1, %v1690_v45  ;;  %v985_v57 = vadd.f32 %v2045_v35, %v914_v47  ;;  %v944_v58 = vmul.f32 %v2040_v33, %v838_v54 }
 0x114   : > { %v1720_v56 = vpack.c.bf16 %v1076_v46, %v1076_v46  ;;  %v915_v59 = vmul.f32 %v1793_v55, %v2040_v33  ;;  %1399 = vst.msk [vmem:[%s2065_s6 + $0xcc] sm:$0xf] %vm1347_vm1, %v1722_v50  ;;  %v1017_v62 = vadd.f32 %v2045_v35, %v946_v52  ;;  %v983_v63 = vadd.f32 %v2045_v35, %v912_v53 }
 0x115   : > { %1365 = vst.msk [vmem:[%s2065_s6 + $0x44] sm:$0xf] %vm1347_vm1, %v1688_v51  ;;  %v947_v0 = vmul.f32 %v1825_v60, %v2040_v33  ;;  %v913_v1 = vmul.f32 %v2040_v33, %v713_v61  ;;  %v1049_v3 = vmax.f32 %v985_v57, 0.0  ;;  %v1015_v4 = vadd.f32 %v2045_v35, %v944_v58 }
 0x116   : > { %1397 = vst.msk [vmem:[%s2065_s6 + $0xc4] sm:$0xf] %vm1347_vm1, %v1720_v56  ;;  %v986_v5 = vadd.f32 %v2045_v35, %v915_v59  ;;  %v945_v6 = vmul.f32 %v2040_v33, %v841_v2  ;;  %v1081_v7 = vmax.f32 %v1017_v62, 0.0  ;;  %v1047_v8 = vmax.f32 %v983_v63, 0.0  ;;  %v1796_v19 = vpop.f32.mrb[24].mxu0 }
 0x117   : > { %v1018_v9 = vadd.f32 %v2045_v35, %v947_v0  ;;  %v984_v10 = vadd.f32 %v2045_v35, %v913_v1  ;;  %v1693_v11 = vpack.c.bf16 %v1049_v3, %v1049_v3  ;;  %v1079_v12 = vmax.f32 %v1015_v4, 0.0  ;;  %v1828_v24 = vpop.f32.mrb[24].mxu1  ;;  %v726_v25 = vpop.f32.mrb[25].mxu0 }
 0x118   : > { %v1050_v13 = vmax.f32 %v986_v5, 0.0  ;;  %v1016_v14 = vadd.f32 %v2045_v35, %v945_v6  ;;  %v1725_v15 = vpack.c.bf16 %v1081_v7, %v1081_v7  ;;  %v1691_v16 = vpack.c.bf16 %v1047_v8, %v1047_v8  ;;  %v854_v30 = vpop.f32.mrb[25].mxu1  ;;  %v1797_v31 = vpop.f32.mrb[26].mxu0 }
 0x119   : > { %v1082_v17 = vmax.f32 %v1018_v9, 0.0  ;;  %v1048_v18 = vmax.f32 %v984_v10, 0.0  ;;  %1370 = vst.msk [vmem:[%s2065_s6 + $0x58] sm:$0xf] %vm1347_vm1, %v1693_v11  ;;  %v1723_v20 = vpack.c.bf16 %v1079_v12, %v1079_v12  ;;  %v918_v23 = vmul.f32 %v1796_v19, %v2040_v33  ;;  %v1829_v38 = vpop.f32.mrb[26].mxu1  ;;  %v729_v39 = vpop.f32.mrb[27].mxu0 }
 0x11a   : > { %v1694_v21 = vpack.c.bf16 %v1050_v13, %v1050_v13  ;;  %v1080_v22 = vmax.f32 %v1016_v14, 0.0  ;;  %1402 = vst.msk [vmem:[%s2065_s6 + $0xd8] sm:$0xf] %vm1347_vm1, %v1725_v15  ;;  %1368 = vst.msk [vmem:[%s2065_s6 + $0x50] sm:$0xf] %vm1347_vm1, %v1691_v16  ;;  %v950_v28 = vmul.f32 %v1828_v24, %v2040_v33  ;;  %v916_v29 = vmul.f32 %v2040_v33, %v726_v25  ;;  %v857_v44 = vpop.f32.mrb[27].mxu1 }
 0x11b   : > { %v1726_v26 = vpack.c.bf16 %v1082_v17, %v1082_v17  ;;  %v1692_v27 = vpack.c.bf16 %v1048_v18, %v1048_v18  ;;  %1400 = vst.msk [vmem:[%s2065_s6 + $0xd0] sm:$0xf] %vm1347_vm1, %v1723_v20  ;;  %v989_v34 = vadd.f32 %v2045_v35, %v918_v23  ;;  %v948_v36 = vmul.f32 %v2040_v33, %v854_v30 }
 0x11c   : > { %1371 = vst.msk [vmem:[%s2065_s6 + $0x5c] sm:$0xf] %vm1347_vm1, %v1694_v21  ;;  %v1724_v32 = vpack.c.bf16 %v1080_v22, %v1080_v22  ;;  %v919_v37 = vmul.f32 %v1797_v31, %v2040_v33  ;;  %v1021_v40 = vadd.f32 %v2045_v35, %v950_v28  ;;  %v987_v41 = vadd.f32 %v2045_v35, %v916_v29 }
 0x11d   : > { %1403 = vst.msk [vmem:[%s2065_s6 + $0xdc] sm:$0xf] %vm1347_vm1, %v1726_v26  ;;  %1369 = vst.msk [vmem:[%s2065_s6 + $0x54] sm:$0xf] %vm1347_vm1, %v1692_v27  ;;  %v951_v42 = vmul.f32 %v1829_v38, %v2040_v33  ;;  %v917_v43 = vmul.f32 %v2040_v33, %v729_v39  ;;  %v1053_v45 = vmax.f32 %v989_v34, 0.0  ;;  %v1019_v46 = vadd.f32 %v2045_v35, %v948_v36 }
 0x11e   : > { %1401 = vst.msk [vmem:[%s2065_s6 + $0xd4] sm:$0xf] %vm1347_vm1, %v1724_v32  ;;  %v990_v47 = vadd.f32 %v2045_v35, %v919_v37  ;;  %v949_v48 = vmul.f32 %v2040_v33, %v857_v44  ;;  %v1085_v49 = vmax.f32 %v1021_v40, 0.0  ;;  %v1051_v50 = vmax.f32 %v987_v41, 0.0  ;;  %v1800_v61 = vpop.f32.mrb[28].mxu0 }
 0x11f   : > { %v1022_v51 = vadd.f32 %v2045_v35, %v951_v42  ;;  %v988_v52 = vadd.f32 %v2045_v35, %v917_v43  ;;  %v1697_v53 = vpack.c.bf16 %v1053_v45, %v1053_v45  ;;  %v1083_v54 = vmax.f32 %v1019_v46, 0.0  ;;  %v1832_v2 = vpop.f32.mrb[28].mxu1  ;;  %v742_v3 = vpop.f32.mrb[29].mxu0 }
 0x120   : > { %v1054_v55 = vmax.f32 %v990_v47, 0.0  ;;  %v1020_v56 = vadd.f32 %v2045_v35, %v949_v48  ;;  %v1729_v57 = vpack.c.bf16 %v1085_v49, %v1085_v49  ;;  %v1695_v58 = vpack.c.bf16 %v1051_v50, %v1051_v50  ;;  %v870_v8 = vpop.f32.mrb[29].mxu1  ;;  %v1801_v9 = vpop.f32.mrb[30].mxu0 }
 0x121   : > { %v1086_v59 = vmax.f32 %v1022_v51, 0.0  ;;  %v1052_v60 = vmax.f32 %v988_v52, 0.0  ;;  %1374 = vst.msk [vmem:[%s2065_s6 + $0x68] sm:$0xf] %vm1347_vm1, %v1697_v53  ;;  %v1727_v62 = vpack.c.bf16 %v1083_v54, %v1083_v54  ;;  %v922_v1 = vmul.f32 %v1800_v61, %v2040_v33  ;;  %v1833_v14 = vpop.f32.mrb[30].mxu1  ;;  %v745_v15 = vpop.f32.mrb[31].mxu0 }
 0x122   : > { %v1698_v63 = vpack.c.bf16 %v1054_v55, %v1054_v55  ;;  %v1084_v0 = vmax.f32 %v1020_v56, 0.0  ;;  %1406 = vst.msk [vmem:[%s2065_s6 + $0xe8] sm:$0xf] %vm1347_vm1, %v1729_v57  ;;  %1372 = vst.msk [vmem:[%s2065_s6 + $0x60] sm:$0xf] %vm1347_vm1, %v1695_v58  ;;  %v954_v6 = vmul.f32 %v1832_v2, %v2040_v33  ;;  %v920_v7 = vmul.f32 %v2040_v33, %v742_v3  ;;  %v873_v20 = vpop.f32.mrb[31].mxu1 }
 0x123   : > { %v1730_v4 = vpack.c.bf16 %v1086_v59, %v1086_v59  ;;  %v1696_v5 = vpack.c.bf16 %v1052_v60, %v1052_v60  ;;  %1404 = vst.msk [vmem:[%s2065_s6 + $0xe0] sm:$0xf] %vm1347_vm1, %v1727_v62  ;;  %v993_v11 = vadd.f32 %v2045_v35, %v922_v1  ;;  %v952_v12 = vmul.f32 %v2040_v33, %v870_v8 }
 0x124   : > { %1375 = vst.msk [vmem:[%s2065_s6 + $0x6c] sm:$0xf] %vm1347_vm1, %v1698_v63  ;;  %v1728_v10 = vpack.c.bf16 %v1084_v0, %v1084_v0  ;;  %v923_v13 = vmul.f32 %v1801_v9, %v2040_v33  ;;  %v1025_v16 = vadd.f32 %v2045_v35, %v954_v6  ;;  %v991_v17 = vadd.f32 %v2045_v35, %v920_v7 }
 0x125   : > { %1407 = vst.msk [vmem:[%s2065_s6 + $0xec] sm:$0xf] %vm1347_vm1, %v1730_v4  ;;  %1373 = vst.msk [vmem:[%s2065_s6 + $0x64] sm:$0xf] %vm1347_vm1, %v1696_v5  ;;  %v955_v18 = vmul.f32 %v1833_v14, %v2040_v33  ;;  %v921_v19 = vmul.f32 %v2040_v33, %v745_v15  ;;  %v1057_v21 = vmax.f32 %v993_v11, 0.0  ;;  %v1023_v22 = vadd.f32 %v2045_v35, %v952_v12 }
 0x126   : > { %1405 = vst.msk [vmem:[%s2065_s6 + $0xe4] sm:$0xf] %vm1347_vm1, %v1728_v10  ;;  %v994_v23 = vadd.f32 %v2045_v35, %v923_v13  ;;  %v953_v24 = vmul.f32 %v2040_v33, %v873_v20  ;;  %v1089_v25 = vmax.f32 %v1025_v16, 0.0  ;;  %v1055_v26 = vmax.f32 %v991_v17, 0.0 }
 0x127   : > { %v1026_v27 = vadd.f32 %v2045_v35, %v955_v18  ;;  %v992_v28 = vadd.f32 %v2045_v35, %v921_v19  ;;  %v1701_v29 = vpack.c.bf16 %v1057_v21, %v1057_v21  ;;  %v1087_v30 = vmax.f32 %v1023_v22, 0.0 }
 0x128   : > { %v1058_v31 = vmax.f32 %v994_v23, 0.0  ;;  %v1024_v32 = vadd.f32 %v2045_v35, %v953_v24  ;;  %v1733_v34 = vpack.c.bf16 %v1089_v25, %v1089_v25  ;;  %v1699_v36 = vpack.c.bf16 %v1055_v26, %v1055_v26 }
 0x129   : > { %v1090_v33 = vmax.f32 %v1026_v27, 0.0  ;;  %v1056_v37 = vmax.f32 %v992_v28, 0.0  ;;  %1378 = vst.msk [vmem:[%s2065_s6 + $0x78] sm:$0xf] %vm1347_vm1, %v1701_v29  ;;  %v1731_v38 = vpack.c.bf16 %v1087_v30, %v1087_v30 }
 0x12a   : > { %v1702_v39 = vpack.c.bf16 %v1058_v31, %v1058_v31  ;;  %v1088_v40 = vmax.f32 %v1024_v32, 0.0  ;;  %1410 = vst.msk [vmem:[%s2065_s6 + $0xf8] sm:$0xf] %vm1347_vm1, %v1733_v34  ;;  %1376 = vst.msk [vmem:[%s2065_s6 + $0x70] sm:$0xf] %vm1347_vm1, %v1699_v36 }
 0x12b   : > { %v1734_v41 = vpack.c.bf16 %v1090_v33, %v1090_v33  ;;  %v1700_v42 = vpack.c.bf16 %v1056_v37, %v1056_v37  ;;  %1408 = vst.msk [vmem:[%s2065_s6 + $0xf0] sm:$0xf] %vm1347_vm1, %v1731_v38 }
 0x12c   : > { %1379 = vst.msk [vmem:[%s2065_s6 + $0x7c] sm:$0xf] %vm1347_vm1, %v1702_v39  ;;  %v1732_v35 = vpack.c.bf16 %v1088_v40, %v1088_v40 }
 0x12d   : > { %1411 = vst.msk [vmem:[%s2065_s6 + $0xfc] sm:$0xf] %vm1347_vm1, %v1734_v41  ;;  %1377 = vst.msk [vmem:[%s2065_s6 + $0x74] sm:$0xf] %vm1347_vm1, %v1700_v42 }
 0x12e   : > { %1409 = vst.msk [vmem:[%s2065_s6 + $0xf4] sm:$0xf] %vm1347_vm1, %v1732_v35 }
 0x12f PF: > { %s14_s17 = sadd.s32 1, %s1915_s17   ;;  %s2324_s15 = smov %s1911_s16 }
 0x130   : > { %p11_p5 = scmp.ge.s32.totalorder %s14_s17, 6   ;;  %s2325_s16 = smov %s2327_s18 }
 0x132   :  { %13 = sbr.rel (!%p11_p5) target bundleno = 2 (0x2), region = 75 }

// kernel: bottleneck_forward.5
= control target key start
LH: loop header
LB: loop body
LE: loop exit
PB: predicated region body
PF: predicated region fallthrough
CT: control target
= control target key end

     0   :  { %vm353_vm0 = vcmask 1043456   ;;  %vm256_vm1 = vcmask 64512   ;;  %vm1020_vm2 = vcmask 130048   ;;  %s2831_s0 = inlined_call_operand.vmem [shape: bf16[512,8], index: 0, kind: input, shape index: {}]   ;;  %s2832_s1 = inlined_call_operand.vmem [shape: bf16[8,32], index: 1, kind: input, shape index: {}]   ;;  %s2833_s2 = inlined_call_operand.vmem [shape: f32[1,32], index: 2, kind: input, shape index: {}]   ;;  %s2834_s3 = inlined_call_operand.vmem [shape: f32[1,32], index: 3, kind: input, shape index: {}]   ;;  %s2835_s4 = inlined_call_operand.vmem [shape: bf16[512,16], index: 4, kind: input, shape index: {}]   ;;  %s2836_s5 = inlined_call_operand.vmem [shape: bf16[16,32], index: 5, kind: input, shape index: {}]   ;;  %s2837_s6 = inlined_call_operand.vmem [shape: f32[1,32], index: 6, kind: input, shape index: {}]   ;;  %s2838_s7 = inlined_call_operand.vmem [shape: f32[1,32], index: 7, kind: input, shape index: {}]   ;;  %s2839_s8 = inlined_call_operand.hbm [shape: f32[512,32], index: 8, kind: output, shape index: {}]  }
   0x1   :  { %v95_v0 = vld [vmem:[%s2832_s1] sm:$0xf]  ;;  %v2094_v4 = vld [vmem:[%s2831_s0 + $0x8] sm:$0xff]   ;;  %v2097_v7 = vld [vmem:[%s2831_s0 + $0x10] sm:$0xff]  }
   0x2   :  { %v2092_v1 = vld [vmem:[%s2836_s5] sm:$0xff]   ;;  %2088 = vmatprep.subr.msk.bf16.mxu0 %vm353_vm0, %v95_v0  ;;  %v355_v2 = vsel %vm353_vm0, %v95_v0, 0  ;;  %v2096_v6 = vld [vmem:[%s2835_s4 + $0x8] sm:$0xff]   ;;  %v2099_v8 = vld [vmem:[%s2835_s4 + $0x10] sm:$0xff]  }
   0x3   :  { %v2093_v3 = vld [vmem:[%s2831_s0] sm:$0xff]   ;;  %1957 = vmatpush3.bf16.msra.mxu0 %v355_v2  ;;  %2022 = vmatprep.subr.bf16.mxu1 %v2092_v1  ;;  %v2098_v9 = vld [vmem:[%s2831_s0 + $0x18] sm:$0xff]   ;;  %v2102_v13 = vld [vmem:[%s2831_s0 + $0x28] sm:$0xff]  }
   0x4   :  { %1958 = vmatprep.mubr.msk.bf16.mxu0 %vm256_vm1, %v2093_v3  ;;  %2023 = vmatpush3.bf16.msra.mxu1 %v2092_v1  ;;  %v2095_v5 = vld [vmem:[%s2835_s4] sm:$0xff]   ;;  %v2100_v11 = vld [vmem:[%s2835_s4 + $0x18] sm:$0xff]   ;;  %v2105_v14 = vld [vmem:[%s2831_s0 + $0x30] sm:$0xff]  }
   0x5   :  { %2024 = vmatprep.mubr.msk.bf16.mxu1 %vm1020_vm2, %v2095_v5  ;;  %v2101_v10 = vld [vmem:[%s2831_s0 + $0x20] sm:$0xff]   ;;  %v2104_v15 = vld [vmem:[%s2835_s4 + $0x28] sm:$0xff]   ;;  %v2107_v16 = vld [vmem:[%s2835_s4 + $0x30] sm:$0xff]  }
   0x6   :  { %1959 = vmatmul.mubr.msk.bf16.vlgmr.msra.gmra.mrb[0].mxu0 %vm256_vm1, %v2094_v4  ;;  %v2103_v12 = vld [vmem:[%s2835_s4 + $0x20] sm:$0xff]   ;;  %v2106_v17 = vld [vmem:[%s2831_s0 + $0x38] sm:$0xff]   ;;  %v2110_v21 = vld [vmem:[%s2831_s0 + $0x48] sm:$0xff]  }
   0x7   :  { %2025 = vmatmul.mubr.msk.bf16.vlgmr.msra.gmra.mrb[0].mxu1 %vm1020_vm2, %v2096_v6  ;;  %1962 = vmatprep.mubr.msk.bf16.mxu0 %vm256_vm1, %v2097_v7  ;;  %v2109_v18 = vld [vmem:[%s2831_s0 + $0x40] sm:$0xff]   ;;  %v2108_v19 = vld [vmem:[%s2835_s4 + $0x38] sm:$0xff]   ;;  %v2113_v22 = vld [vmem:[%s2831_s0 + $0x50] sm:$0xff]  }
   0x8   :  { %2028 = vmatprep.mubr.msk.bf16.mxu1 %vm1020_vm2, %v2099_v8  ;;  %v2111_v20 = vld [vmem:[%s2835_s4 + $0x40] sm:$0xff]   ;;  %v2112_v23 = vld [vmem:[%s2835_s4 + $0x48] sm:$0xff]   ;;  %v2115_v24 = vld [vmem:[%s2835_s4 + $0x50] sm:$0xff]  }
   0x9   :  { %v2114_v25 = vld [vmem:[%s2831_s0 + $0x58] sm:$0xff]   ;;  %v2117_v26 = vld [vmem:[%s2831_s0 + $0x60] sm:$0xff]   ;;  %v2118_v29 = vld [vmem:[%s2831_s0 + $0x68] sm:$0xff]  }
   0xa   :  { %v2116_v27 = vld [vmem:[%s2835_s4 + $0x58] sm:$0xff]   ;;  %v2119_v28 = vld [vmem:[%s2835_s4 + $0x60] sm:$0xff]   ;;  %v2121_v30 = vld [vmem:[%s2831_s0 + $0x70] sm:$0xff]  }
   0xb   :  { %v2120_v31 = vld [vmem:[%s2835_s4 + $0x68] sm:$0xff]   ;;  %v2123_v32 = vld [vmem:[%s2835_s4 + $0x70] sm:$0xff]   ;;  %v2122_v33 = vld [vmem:[%s2831_s0 + $0x78] sm:$0xff]  }
   0xc   :  { %v2125_v34 = vld [vmem:[%s2831_s0 + $0x80] sm:$0xff]   ;;  %v2124_v35 = vld [vmem:[%s2835_s4 + $0x78] sm:$0xff]   ;;  %v2126_v37 = vld [vmem:[%s2831_s0 + $0x88] sm:$0xff]  }
   0xd   :  { %v2127_v36 = vld [vmem:[%s2835_s4 + $0x80] sm:$0xff]  }
   0xe   :  { %1963 = vmatmul.mubr.msk.bf16.gmra.mrb[4].mxu0 %vm256_vm1, %v2098_v9 }
   0xf   :  { %1966 = vmatprep.mubr.msk.bf16.mxu0 %vm256_vm1, %v2101_v10  ;;  %2029 = vmatmul.mubr.msk.bf16.gmra.mrb[4].mxu1 %vm1020_vm2, %v2100_v11 }
  0x10   :  { %2032 = vmatprep.mubr.msk.bf16.mxu1 %vm1020_vm2, %v2103_v12 }
  0x16   :  { %1967 = vmatmul.mubr.msk.bf16.gmra.mrb[8].mxu0 %vm256_vm1, %v2102_v13 }
  0x17   :  { %1970 = vmatprep.mubr.msk.bf16.mxu0 %vm256_vm1, %v2105_v14  ;;  %2033 = vmatmul.mubr.msk.bf16.gmra.mrb[8].mxu1 %vm1020_vm2, %v2104_v15 }
  0x18   :  { %2036 = vmatprep.mubr.msk.bf16.mxu1 %vm1020_vm2, %v2107_v16 }
  0x1e   :  { %1971 = vmatmul.mubr.msk.bf16.gmra.mrb[12].mxu0 %vm256_vm1, %v2106_v17 }
  0x1f   :  { %1974 = vmatprep.mubr.msk.bf16.mxu0 %vm256_vm1, %v2109_v18  ;;  %2037 = vmatmul.mubr.msk.bf16.gmra.mrb[12].mxu1 %vm1020_vm2, %v2108_v19 }
  0x20   :  { %2040 = vmatprep.mubr.msk.bf16.mxu1 %vm1020_vm2, %v2111_v20 }
  0x26   :  { %1975 = vmatmul.mubr.msk.bf16.gmra.mrb[16].mxu0 %vm256_vm1, %v2110_v21 }
  0x27   :  { %1978 = vmatprep.mubr.msk.bf16.mxu0 %vm256_vm1, %v2113_v22  ;;  %2041 = vmatmul.mubr.msk.bf16.gmra.mrb[16].mxu1 %vm1020_vm2, %v2112_v23 }
  0x28   :  { %2044 = vmatprep.mubr.msk.bf16.mxu1 %vm1020_vm2, %v2115_v24 }
  0x2e   :  { %1979 = vmatmul.mubr.msk.bf16.gmra.mrb[20].mxu0 %vm256_vm1, %v2114_v25 }
  0x2f   :  { %1982 = vmatprep.mubr.msk.bf16.mxu0 %vm256_vm1, %v2117_v26  ;;  %2045 = vmatmul.mubr.msk.bf16.gmra.mrb[20].mxu1 %vm1020_vm2, %v2116_v27 }
  0x30   :  { %2048 = vmatprep.mubr.msk.bf16.mxu1 %vm1020_vm2, %v2119_v28 }
  0x36   :  { %1983 = vmatmul.mubr.msk.bf16.gmra.mrb[24].mxu0 %vm256_vm1, %v2118_v29 }
  0x37   :  { %1986 = vmatprep.mubr.msk.bf16.mxu0 %vm256_vm1, %v2121_v30  ;;  %2049 = vmatmul.mubr.msk.bf16.gmra.mrb[24].mxu1 %vm1020_vm2, %v2120_v31 }
  0x38   :  { %2052 = vmatprep.mubr.msk.bf16.mxu1 %vm1020_vm2, %v2123_v32 }
  0x3e   :  { %1987 = vmatmul.mubr.msk.bf16.gmra.mrb[28].mxu0 %vm256_vm1, %v2122_v33 }
  0x3f   :  { %1990 = vmatprep.mubr.msk.bf16.mxu0 %vm256_vm1, %v2125_v34  ;;  %2053 = vmatmul.mubr.msk.bf16.gmra.mrb[28].mxu1 %vm1020_vm2, %v2124_v35 }
  0x40   :  { %2056 = vmatprep.mubr.msk.bf16.mxu1 %vm1020_vm2, %v2127_v36 }
  0x41   :  { %13 = vsyncpa [#allocation3], 0  ;;  %v2129_v38 = vld [vmem:[%s2831_s0 + $0x90] sm:$0xff]   ;;  %v2128_v39 = vld [vmem:[%s2835_s4 + $0x88] sm:$0xff]   ;;  %vm1676_vm3 = vcmask 261120  }
  0x42   :  { %v2131_v40 = vld [vmem:[%s2835_s4 + $0x90] sm:$0xff]   ;;  %v2130_v41 = vld [vmem:[%s2831_s0 + $0x98] sm:$0xff]   ;;  %v2133_v42 = vld [vmem:[%s2831_s0 + $0xa0] sm:$0xff]  }
  0x43   :  { %v2132_v43 = vld [vmem:[%s2835_s4 + $0x98] sm:$0xff]   ;;  %v2135_v44 = vld [vmem:[%s2835_s4 + $0xa0] sm:$0xff]   ;;  %v2134_v45 = vld [vmem:[%s2831_s0 + $0xa8] sm:$0xff]  }
  0x44   :  { %v2137_v46 = vld [vmem:[%s2831_s0 + $0xb0] sm:$0xff]   ;;  %v2136_v47 = vld [vmem:[%s2835_s4 + $0xa8] sm:$0xff]   ;;  %v2138_v49 = vld [vmem:[%s2831_s0 + $0xb8] sm:$0xff]  }
  0x45   :  { %v2139_v48 = vld [vmem:[%s2835_s4 + $0xb0] sm:$0xff]   ;;  %v2141_v50 = vld [vmem:[%s2831_s0 + $0xc0] sm:$0xff]   ;;  %v2140_v51 = vld [vmem:[%s2835_s4 + $0xb8] sm:$0xff]  }
  0x46   :  { %1991 = vmatmul.mubr.msk.bf16.gmra.mrb[32].mxu0 %vm256_vm1, %v2126_v37  ;;  %v2143_v52 = vld [vmem:[%s2835_s4 + $0xc0] sm:$0xff]   ;;  %v2142_v53 = vld [vmem:[%s2831_s0 + $0xc8] sm:$0xff]   ;;  %v2145_v54 = vld [vmem:[%s2831_s0 + $0xd0] sm:$0xff]  }
  0x47   :  { %1994 = vmatprep.mubr.msk.bf16.mxu0 %vm256_vm1, %v2129_v38  ;;  %2057 = vmatmul.mubr.msk.bf16.gmra.mrb[32].mxu1 %vm1020_vm2, %v2128_v39  ;;  %v2144_v55 = vld [vmem:[%s2835_s4 + $0xc8] sm:$0xff]   ;;  %v2147_v56 = vld [vmem:[%s2835_s4 + $0xd0] sm:$0xff]   ;;  %v2146_v57 = vld [vmem:[%s2831_s0 + $0xd8] sm:$0xff]  }
  0x48   :  { %2060 = vmatprep.mubr.msk.bf16.mxu1 %vm1020_vm2, %v2131_v40  ;;  %v2149_v58 = vld [vmem:[%s2831_s0 + $0xe0] sm:$0xff]   ;;  %v2148_v59 = vld [vmem:[%s2835_s4 + $0xd8] sm:$0xff]   ;;  %v2150_v61 = vld [vmem:[%s2831_s0 + $0xe8] sm:$0xff]  }
  0x49   :  { %v2151_v60 = vld [vmem:[%s2835_s4 + $0xe0] sm:$0xff]   ;;  %v2153_v62 = vld [vmem:[%s2831_s0 + $0xf0] sm:$0xff]   ;;  %v2152_v63 = vld [vmem:[%s2835_s4 + $0xe8] sm:$0xff]  }
  0x4a   :  { %v2155_v0 = vld [vmem:[%s2835_s4 + $0xf0] sm:$0xff]   ;;  %v2154_v1 = vld [vmem:[%s2831_s0 + $0xf8] sm:$0xff]   ;;  %v2498_v3 = vld [vmem:[%s2833_s2] ss:$0 sm:$0xff] }
  0x4b   :  { %v2156_v2 = vld [vmem:[%s2835_s4 + $0xf8] sm:$0xff]   ;;  %v2503_v5 = vld [vmem:[%s2834_s3] ss:$0 sm:$0xff] }
  0x4c   :  { %v2508_v6 = vld [vmem:[%s2837_s6] ss:$0 sm:$0xff] }
  0x4d   :  { %v2515_v12 = vld [vmem:[%s2838_s7] ss:$0 sm:$0xff] }
  0x4e   :  { %1995 = vmatmul.mubr.msk.bf16.gmra.mrb[36].mxu0 %vm256_vm1, %v2130_v41 }
  0x4f   :  { %1998 = vmatprep.mubr.msk.bf16.mxu0 %vm256_vm1, %v2133_v42  ;;  %2061 = vmatmul.mubr.msk.bf16.gmra.mrb[36].mxu1 %vm1020_vm2, %v2132_v43 }
  0x50   :  { %2064 = vmatprep.mubr.msk.bf16.mxu1 %vm1020_vm2, %v2135_v44 }
  0x56   :  { %1999 = vmatmul.mubr.msk.bf16.gmra.mrb[40].mxu0 %vm256_vm1, %v2134_v45 }
  0x57   :  { %2002 = vmatprep.mubr.msk.bf16.mxu0 %vm256_vm1, %v2137_v46  ;;  %2065 = vmatmul.mubr.msk.bf16.gmra.mrb[40].mxu1 %vm1020_vm2, %v2136_v47 }
  0x58   :  { %2068 = vmatprep.mubr.msk.bf16.mxu1 %vm1020_vm2, %v2139_v48 }
  0x5e   :  { %2003 = vmatmul.mubr.msk.bf16.gmra.mrb[44].mxu0 %vm256_vm1, %v2138_v49 }
  0x5f   :  { %2006 = vmatprep.mubr.msk.bf16.mxu0 %vm256_vm1, %v2141_v50  ;;  %2069 = vmatmul.mubr.msk.bf16.gmra.mrb[44].mxu1 %vm1020_vm2, %v2140_v51 }
  0x60   :  { %2072 = vmatprep.mubr.msk.bf16.mxu1 %vm1020_vm2, %v2143_v52 }
  0x66   :  { %2007 = vmatmul.mubr.msk.bf16.gmra.mrb[48].mxu0 %vm256_vm1, %v2142_v53 }
  0x67   :  { %2010 = vmatprep.mubr.msk.bf16.mxu0 %vm256_vm1, %v2145_v54  ;;  %2073 = vmatmul.mubr.msk.bf16.gmra.mrb[48].mxu1 %vm1020_vm2, %v2144_v55 }
  0x68   :  { %2076 = vmatprep.mubr.msk.bf16.mxu1 %vm1020_vm2, %v2147_v56 }
  0x6e   :  { %2011 = vmatmul.mubr.msk.bf16.gmra.mrb[52].mxu0 %vm256_vm1, %v2146_v57 }
  0x6f   :  { %2014 = vmatprep.mubr.msk.bf16.mxu0 %vm256_vm1, %v2149_v58  ;;  %2077 = vmatmul.mubr.msk.bf16.gmra.mrb[52].mxu1 %vm1020_vm2, %v2148_v59 }
  0x70   :  { %2080 = vmatprep.mubr.msk.bf16.mxu1 %vm1020_vm2, %v2151_v60 }
  0x76   :  { %2015 = vmatmul.mubr.msk.bf16.gmra.mrb[56].mxu0 %vm256_vm1, %v2150_v61 }
  0x77   :  { %2018 = vmatprep.mubr.msk.bf16.mxu0 %vm256_vm1, %v2153_v62  ;;  %2081 = vmatmul.mubr.msk.bf16.gmra.mrb[56].mxu1 %vm1020_vm2, %v2152_v63 }
  0x78   :  { %2084 = vmatprep.mubr.msk.bf16.mxu1 %vm1020_vm2, %v2155_v0 }
  0x7e   :  { %2019 = vmatmul.mubr.msk.bf16.gmra.mrb[60].mxu0 %vm256_vm1, %v2154_v1 }
  0x7f   :  { %2085 = vmatmul.mubr.msk.bf16.gmra.mrb[60].mxu1 %vm1020_vm2, %v2156_v2 }
  0xd9   :  { %v1960_v4 = vpop.f32.mrb[0].mxu0 }
  0xda   :  { %v655_v7 = vmul.f32 %v1960_v4, %v2498_v3  ;;  %v391_v8 = vpop.f32.mrb[1].mxu0  ;;  %v2026_v11 = vpop.f32.mrb[0].mxu1 }
  0xdb   :  { %v653_v9 = vmul.f32 %v2498_v3, %v391_v8  ;;  %v1961_v10 = vpop.f32.mrb[2].mxu0  ;;  %v1415_v15 = vmul.f32 %v2026_v11, %v2508_v6  ;;  %v1151_v17 = vpop.f32.mrb[1].mxu1 }
  0xdc   :  { %v726_v13 = vadd.f32 %v2503_v5, %v655_v7  ;;  %v656_v14 = vmul.f32 %v1961_v10, %v2498_v3  ;;  %v394_v16 = vpop.f32.mrb[3].mxu0  ;;  %v1413_v20 = vmul.f32 %v2508_v6, %v1151_v17  ;;  %v2027_v21 = vpop.f32.mrb[2].mxu1 }
  0xdd   :  { %v724_v18 = vadd.f32 %v2503_v5, %v653_v9  ;;  %v654_v19 = vmul.f32 %v2498_v3, %v394_v16  ;;  %v1486_v23 = vadd.f32 %v2515_v12, %v1415_v15  ;;  %v1416_v24 = vmul.f32 %v2027_v21, %v2508_v6  ;;  %v1154_v25 = vpop.f32.mrb[3].mxu1 }
  0xde   :  { %v727_v22 = vadd.f32 %v2503_v5, %v656_v14  ;;  %v1484_v27 = vadd.f32 %v2515_v12, %v1413_v20  ;;  %v1414_v28 = vmul.f32 %v2508_v6, %v1154_v25 }
  0xdf   :  { %v725_v26 = vadd.f32 %v2503_v5, %v654_v19  ;;  %v1550_v29 = vadd.f32 %v1486_v23, %v726_v13  ;;  %v1487_v30 = vadd.f32 %v2515_v12, %v1416_v24 }
  0xe0   :  { %v1548_v31 = vadd.f32 %v1484_v27, %v724_v18  ;;  %v1485_v32 = vadd.f32 %v2515_v12, %v1414_v28 }
  0xe1   :  { %v1964_v33 = vpop.f32.mrb[4].mxu0  ;;  %v1614_v34 = vmax.f32 %v1550_v29, 0.0  ;;  %v1551_v35 = vadd.f32 %v1487_v30, %v727_v22 }
  0xe2   :  { %v659_v36 = vmul.f32 %v1964_v33, %v2498_v3  ;;  %v407_v37 = vpop.f32.mrb[5].mxu0  ;;  %v1612_v38 = vmax.f32 %v1548_v31, 0.0  ;;  %v1549_v39 = vadd.f32 %v1485_v32, %v725_v26  ;;  %v2030_v42 = vpop.f32.mrb[4].mxu1 }
  0xe3   :  { %v657_v40 = vmul.f32 %v2498_v3, %v407_v37  ;;  %v1965_v41 = vpop.f32.mrb[6].mxu0  ;;  %1679 = vst.msk [vmem:[#allocation2 + $0x10] sm:$0xff] %vm1676_vm3, %v1614_v34  ;;  %v1615_v43 = vmax.f32 %v1551_v35, 0.0  ;;  %v1419_v46 = vmul.f32 %v2030_v42, %v2508_v6  ;;  %v1167_v48 = vpop.f32.mrb[5].mxu1 }
  0xe4   :  { %v730_v44 = vadd.f32 %v2503_v5, %v659_v36  ;;  %v660_v45 = vmul.f32 %v1965_v41, %v2498_v3  ;;  %v410_v47 = vpop.f32.mrb[7].mxu0  ;;  %1677 = vst.msk [vmem:[#allocation2] sm:$0xff] %vm1676_vm3, %v1612_v38  ;;  %v1613_v49 = vmax.f32 %v1549_v39, 0.0  ;;  %v1417_v52 = vmul.f32 %v2508_v6, %v1167_v48  ;;  %v2031_v53 = vpop.f32.mrb[6].mxu1 }
  0xe5   :  { %v728_v50 = vadd.f32 %v2503_v5, %v657_v40  ;;  %v658_v51 = vmul.f32 %v2498_v3, %v410_v47  ;;  %1680 = vst.msk [vmem:[#allocation2 + $0x18] sm:$0xff] %vm1676_vm3, %v1615_v43  ;;  %v1490_v55 = vadd.f32 %v2515_v12, %v1419_v46  ;;  %v1420_v56 = vmul.f32 %v2031_v53, %v2508_v6  ;;  %v1170_v57 = vpop.f32.mrb[7].mxu1 }
  0xe6   :  { %v731_v54 = vadd.f32 %v2503_v5, %v660_v45  ;;  %1678 = vst.msk [vmem:[#allocation2 + $0x8] sm:$0xff] %vm1676_vm3, %v1613_v49  ;;  %v1488_v59 = vadd.f32 %v2515_v12, %v1417_v52  ;;  %v1418_v60 = vmul.f32 %v2508_v6, %v1170_v57 }
  0xe7   :  { %v729_v58 = vadd.f32 %v2503_v5, %v658_v51  ;;  %v1554_v61 = vadd.f32 %v1490_v55, %v730_v44  ;;  %v1491_v62 = vadd.f32 %v2515_v12, %v1420_v56 }
  0xe8   :  { %v1552_v63 = vadd.f32 %v1488_v59, %v728_v50  ;;  %v1489_v0 = vadd.f32 %v2515_v12, %v1418_v60 }
  0xe9   :  { %v1968_v1 = vpop.f32.mrb[8].mxu0  ;;  %v1618_v2 = vmax.f32 %v1554_v61, 0.0  ;;  %v1555_v4 = vadd.f32 %v1491_v62, %v731_v54 }
  0xea   :  { %v663_v7 = vmul.f32 %v1968_v1, %v2498_v3  ;;  %v423_v8 = vpop.f32.mrb[9].mxu0  ;;  %v1616_v9 = vmax.f32 %v1552_v63, 0.0  ;;  %v1553_v10 = vadd.f32 %v1489_v0, %v729_v58  ;;  %v2034_v14 = vpop.f32.mrb[8].mxu1 }
  0xeb   :  { %v661_v11 = vmul.f32 %v2498_v3, %v423_v8  ;;  %v1969_v13 = vpop.f32.mrb[10].mxu0  ;;  %1683 = vst.msk [vmem:[#allocation2 + $0x30] sm:$0xff] %vm1676_vm3, %v1618_v2  ;;  %v1619_v15 = vmax.f32 %v1555_v4, 0.0  ;;  %v1423_v18 = vmul.f32 %v2034_v14, %v2508_v6  ;;  %v1183_v20 = vpop.f32.mrb[9].mxu1 }
  0xec   :  { %v734_v16 = vadd.f32 %v2503_v5, %v663_v7  ;;  %v664_v17 = vmul.f32 %v1969_v13, %v2498_v3  ;;  %v426_v19 = vpop.f32.mrb[11].mxu0  ;;  %1681 = vst.msk [vmem:[#allocation2 + $0x20] sm:$0xff] %vm1676_vm3, %v1616_v9  ;;  %v1617_v21 = vmax.f32 %v1553_v10, 0.0  ;;  %v1421_v24 = vmul.f32 %v2508_v6, %v1183_v20  ;;  %v2035_v25 = vpop.f32.mrb[10].mxu1 }
  0xed   :  { %v732_v22 = vadd.f32 %v2503_v5, %v661_v11  ;;  %v662_v23 = vmul.f32 %v2498_v3, %v426_v19  ;;  %1684 = vst.msk [vmem:[#allocation2 + $0x38] sm:$0xff] %vm1676_vm3, %v1619_v15  ;;  %v1494_v27 = vadd.f32 %v2515_v12, %v1423_v18  ;;  %v1424_v28 = vmul.f32 %v2035_v25, %v2508_v6  ;;  %v1186_v29 = vpop.f32.mrb[11].mxu1 }
  0xee   :  { %v735_v26 = vadd.f32 %v2503_v5, %v664_v17  ;;  %1682 = vst.msk [vmem:[#allocation2 + $0x28] sm:$0xff] %vm1676_vm3, %v1617_v21  ;;  %v1492_v31 = vadd.f32 %v2515_v12, %v1421_v24  ;;  %v1422_v32 = vmul.f32 %v2508_v6, %v1186_v29 }
  0xef   :  { %v733_v30 = vadd.f32 %v2503_v5, %v662_v23  ;;  %v1558_v33 = vadd.f32 %v1494_v27, %v734_v16  ;;  %v1495_v34 = vadd.f32 %v2515_v12, %v1424_v28 }
  0xf0   :  { %v1556_v35 = vadd.f32 %v1492_v31, %v732_v22  ;;  %v1493_v36 = vadd.f32 %v2515_v12, %v1422_v32 }
  0xf1   :  { %v1972_v37 = vpop.f32.mrb[12].mxu0  ;;  %v1622_v38 = vmax.f32 %v1558_v33, 0.0  ;;  %v1559_v39 = vadd.f32 %v1495_v34, %v735_v26 }
  0xf2   :  { %v667_v40 = vmul.f32 %v1972_v37, %v2498_v3  ;;  %v439_v41 = vpop.f32.mrb[13].mxu0  ;;  %v1620_v42 = vmax.f32 %v1556_v35, 0.0  ;;  %v1557_v43 = vadd.f32 %v1493_v36, %v733_v30  ;;  %v2038_v46 = vpop.f32.mrb[12].mxu1 }
  0xf3   :  { %v665_v44 = vmul.f32 %v2498_v3, %v439_v41  ;;  %v1973_v45 = vpop.f32.mrb[14].mxu0  ;;  %1687 = vst.msk [vmem:[#allocation2 + $0x50] sm:$0xff] %vm1676_vm3, %v1622_v38  ;;  %v1623_v47 = vmax.f32 %v1559_v39, 0.0  ;;  %v1427_v50 = vmul.f32 %v2038_v46, %v2508_v6  ;;  %v1199_v52 = vpop.f32.mrb[13].mxu1 }
  0xf4   :  { %v738_v48 = vadd.f32 %v2503_v5, %v667_v40  ;;  %v668_v49 = vmul.f32 %v1973_v45, %v2498_v3  ;;  %v442_v51 = vpop.f32.mrb[15].mxu0  ;;  %1685 = vst.msk [vmem:[#allocation2 + $0x40] sm:$0xff] %vm1676_vm3, %v1620_v42  ;;  %v1621_v53 = vmax.f32 %v1557_v43, 0.0  ;;  %v1425_v56 = vmul.f32 %v2508_v6, %v1199_v52  ;;  %v2039_v57 = vpop.f32.mrb[14].mxu1 }
  0xf5   :  { %v736_v54 = vadd.f32 %v2503_v5, %v665_v44  ;;  %v666_v55 = vmul.f32 %v2498_v3, %v442_v51  ;;  %1688 = vst.msk [vmem:[#allocation2 + $0x58] sm:$0xff] %vm1676_vm3, %v1623_v47  ;;  %v1498_v59 = vadd.f32 %v2515_v12, %v1427_v50  ;;  %v1428_v60 = vmul.f32 %v2039_v57, %v2508_v6  ;;  %v1202_v61 = vpop.f32.mrb[15].mxu1 }
  0xf6   :  { %v739_v58 = vadd.f32 %v2503_v5, %v668_v49  ;;  %1686 = vst.msk [vmem:[#allocation2 + $0x48] sm:$0xff] %vm1676_vm3, %v1621_v53  ;;  %v1496_v63 = vadd.f32 %v2515_v12, %v1425_v56  ;;  %v1426_v0 = vmul.f32 %v2508_v6, %v1202_v61 }
  0xf7   :  { %v737_v62 = vadd.f32 %v2503_v5, %v666_v55  ;;  %v1562_v1 = vadd.f32 %v1498_v59, %v738_v48  ;;  %v1499_v2 = vadd.f32 %v2515_v12, %v1428_v60 }
  0xf8   :  { %v1560_v4 = vadd.f32 %v1496_v63, %v736_v54  ;;  %v1497_v7 = vadd.f32 %v2515_v12, %v1426_v0 }
  0xf9   :  { %v1976_v8 = vpop.f32.mrb[16].mxu0  ;;  %v1626_v9 = vmax.f32 %v1562_v1, 0.0  ;;  %v1563_v10 = vadd.f32 %v1499_v2, %v739_v58 }
  0xfa   :  { %v671_v11 = vmul.f32 %v1976_v8, %v2498_v3  ;;  %v455_v13 = vpop.f32.mrb[17].mxu0  ;;  %v1624_v14 = vmax.f32 %v1560_v4, 0.0  ;;  %v1561_v15 = vadd.f32 %v1497_v7, %v737_v62  ;;  %v2042_v18 = vpop.f32.mrb[16].mxu1 }
  0xfb   :  { %v669_v16 = vmul.f32 %v2498_v3, %v455_v13  ;;  %v1977_v17 = vpop.f32.mrb[18].mxu0  ;;  %1691 = vst.msk [vmem:[#allocation2 + $0x70] sm:$0xff] %vm1676_vm3, %v1626_v9  ;;  %v1627_v19 = vmax.f32 %v1563_v10, 0.0  ;;  %v1431_v22 = vmul.f32 %v2042_v18, %v2508_v6  ;;  %v1215_v24 = vpop.f32.mrb[17].mxu1 }
  0xfc   :  { %v742_v20 = vadd.f32 %v2503_v5, %v671_v11  ;;  %v672_v21 = vmul.f32 %v1977_v17, %v2498_v3  ;;  %v458_v23 = vpop.f32.mrb[19].mxu0  ;;  %1689 = vst.msk [vmem:[#allocation2 + $0x60] sm:$0xff] %vm1676_vm3, %v1624_v14  ;;  %v1625_v25 = vmax.f32 %v1561_v15, 0.0  ;;  %v1429_v28 = vmul.f32 %v2508_v6, %v1215_v24  ;;  %v2043_v29 = vpop.f32.mrb[18].mxu1 }
  0xfd   :  { %v740_v26 = vadd.f32 %v2503_v5, %v669_v16  ;;  %v670_v27 = vmul.f32 %v2498_v3, %v458_v23  ;;  %1692 = vst.msk [vmem:[#allocation2 + $0x78] sm:$0xff] %vm1676_vm3, %v1627_v19  ;;  %v1502_v31 = vadd.f32 %v2515_v12, %v1431_v22  ;;  %v1432_v32 = vmul.f32 %v2043_v29, %v2508_v6  ;;  %v1218_v33 = vpop.f32.mrb[19].mxu1 }
  0xfe   :  { %v743_v30 = vadd.f32 %v2503_v5, %v672_v21  ;;  %1690 = vst.msk [vmem:[#allocation2 + $0x68] sm:$0xff] %vm1676_vm3, %v1625_v25  ;;  %v1500_v35 = vadd.f32 %v2515_v12, %v1429_v28  ;;  %v1430_v36 = vmul.f32 %v2508_v6, %v1218_v33 }
  0xff   :  { %v741_v34 = vadd.f32 %v2503_v5, %v670_v27  ;;  %v1566_v37 = vadd.f32 %v1502_v31, %v742_v20  ;;  %v1503_v38 = vadd.f32 %v2515_v12, %v1432_v32 }
 0x100   :  { %v1564_v39 = vadd.f32 %v1500_v35, %v740_v26  ;;  %v1501_v40 = vadd.f32 %v2515_v12, %v1430_v36 }
 0x101   :  { %v1980_v41 = vpop.f32.mrb[20].mxu0  ;;  %v1630_v42 = vmax.f32 %v1566_v37, 0.0  ;;  %v1567_v43 = vadd.f32 %v1503_v38, %v743_v30 }
 0x102   :  { %v675_v44 = vmul.f32 %v1980_v41, %v2498_v3  ;;  %v471_v45 = vpop.f32.mrb[21].mxu0  ;;  %v1628_v46 = vmax.f32 %v1564_v39, 0.0  ;;  %v1565_v47 = vadd.f32 %v1501_v40, %v741_v34  ;;  %v2046_v50 = vpop.f32.mrb[20].mxu1 }
 0x103   :  { %v673_v48 = vmul.f32 %v2498_v3, %v471_v45  ;;  %v1981_v49 = vpop.f32.mrb[22].mxu0  ;;  %1695 = vst.msk [vmem:[#allocation2 + $0x90] sm:$0xff] %vm1676_vm3, %v1630_v42  ;;  %v1631_v51 = vmax.f32 %v1567_v43, 0.0  ;;  %v1435_v54 = vmul.f32 %v2046_v50, %v2508_v6  ;;  %v1231_v56 = vpop.f32.mrb[21].mxu1 }
 0x104   :  { %v746_v52 = vadd.f32 %v2503_v5, %v675_v44  ;;  %v676_v53 = vmul.f32 %v1981_v49, %v2498_v3  ;;  %v474_v55 = vpop.f32.mrb[23].mxu0  ;;  %1693 = vst.msk [vmem:[#allocation2 + $0x80] sm:$0xff] %vm1676_vm3, %v1628_v46  ;;  %v1629_v57 = vmax.f32 %v1565_v47, 0.0  ;;  %v1433_v60 = vmul.f32 %v2508_v6, %v1231_v56  ;;  %v2047_v61 = vpop.f32.mrb[22].mxu1 }
 0x105   :  { %v744_v58 = vadd.f32 %v2503_v5, %v673_v48  ;;  %v674_v59 = vmul.f32 %v2498_v3, %v474_v55  ;;  %1696 = vst.msk [vmem:[#allocation2 + $0x98] sm:$0xff] %vm1676_vm3, %v1631_v51  ;;  %v1506_v63 = vadd.f32 %v2515_v12, %v1435_v54  ;;  %v1436_v0 = vmul.f32 %v2047_v61, %v2508_v6  ;;  %v1234_v1 = vpop.f32.mrb[23].mxu1 }
 0x106   :  { %v747_v62 = vadd.f32 %v2503_v5, %v676_v53  ;;  %1694 = vst.msk [vmem:[#allocation2 + $0x88] sm:$0xff] %vm1676_vm3, %v1629_v57  ;;  %v1504_v4 = vadd.f32 %v2515_v12, %v1433_v60  ;;  %v1434_v7 = vmul.f32 %v2508_v6, %v1234_v1 }
 0x107   :  { %v745_v2 = vadd.f32 %v2503_v5, %v674_v59  ;;  %v1570_v8 = vadd.f32 %v1506_v63, %v746_v52  ;;  %v1507_v9 = vadd.f32 %v2515_v12, %v1436_v0 }
 0x108   :  { %v1568_v10 = vadd.f32 %v1504_v4, %v744_v58  ;;  %v1505_v11 = vadd.f32 %v2515_v12, %v1434_v7 }
 0x109   :  { %v1984_v13 = vpop.f32.mrb[24].mxu0  ;;  %v1634_v14 = vmax.f32 %v1570_v8, 0.0  ;;  %v1571_v15 = vadd.f32 %v1507_v9, %v747_v62 }
 0x10a   :  { %v679_v16 = vmul.f32 %v1984_v13, %v2498_v3  ;;  %v487_v17 = vpop.f32.mrb[25].mxu0  ;;  %v1632_v18 = vmax.f32 %v1568_v10, 0.0  ;;  %v1569_v19 = vadd.f32 %v1505_v11, %v745_v2  ;;  %v2050_v22 = vpop.f32.mrb[24].mxu1 }
 0x10b   :  { %v677_v20 = vmul.f32 %v2498_v3, %v487_v17  ;;  %v1985_v21 = vpop.f32.mrb[26].mxu0  ;;  %1699 = vst.msk [vmem:[#allocation2 + $0xb0] sm:$0xff] %vm1676_vm3, %v1634_v14  ;;  %v1635_v23 = vmax.f32 %v1571_v15, 0.0  ;;  %v1439_v26 = vmul.f32 %v2050_v22, %v2508_v6  ;;  %v1247_v28 = vpop.f32.mrb[25].mxu1 }
 0x10c   :  { %v750_v24 = vadd.f32 %v2503_v5, %v679_v16  ;;  %v680_v25 = vmul.f32 %v1985_v21, %v2498_v3  ;;  %v490_v27 = vpop.f32.mrb[27].mxu0  ;;  %1697 = vst.msk [vmem:[#allocation2 + $0xa0] sm:$0xff] %vm1676_vm3, %v1632_v18  ;;  %v1633_v29 = vmax.f32 %v1569_v19, 0.0  ;;  %v1437_v32 = vmul.f32 %v2508_v6, %v1247_v28  ;;  %v2051_v33 = vpop.f32.mrb[26].mxu1 }
 0x10d   :  { %v748_v30 = vadd.f32 %v2503_v5, %v677_v20  ;;  %v678_v31 = vmul.f32 %v2498_v3, %v490_v27  ;;  %1700 = vst.msk [vmem:[#allocation2 + $0xb8] sm:$0xff] %vm1676_vm3, %v1635_v23  ;;  %v1510_v35 = vadd.f32 %v2515_v12, %v1439_v26  ;;  %v1440_v36 = vmul.f32 %v2051_v33, %v2508_v6  ;;  %v1250_v37 = vpop.f32.mrb[27].mxu1 }
 0x10e   :  { %v751_v34 = vadd.f32 %v2503_v5, %v680_v25  ;;  %1698 = vst.msk [vmem:[#allocation2 + $0xa8] sm:$0xff] %vm1676_vm3, %v1633_v29  ;;  %v1508_v39 = vadd.f32 %v2515_v12, %v1437_v32  ;;  %v1438_v40 = vmul.f32 %v2508_v6, %v1250_v37 }
 0x10f   :  { %v749_v38 = vadd.f32 %v2503_v5, %v678_v31  ;;  %v1574_v41 = vadd.f32 %v1510_v35, %v750_v24  ;;  %v1511_v42 = vadd.f32 %v2515_v12, %v1440_v36 }
 0x110   :  { %v1572_v43 = vadd.f32 %v1508_v39, %v748_v30  ;;  %v1509_v44 = vadd.f32 %v2515_v12, %v1438_v40 }
 0x111   :  { %v1988_v45 = vpop.f32.mrb[28].mxu0  ;;  %v1638_v46 = vmax.f32 %v1574_v41, 0.0  ;;  %v1575_v47 = vadd.f32 %v1511_v42, %v751_v34 }
 0x112   :  { %v683_v48 = vmul.f32 %v1988_v45, %v2498_v3  ;;  %v503_v49 = vpop.f32.mrb[29].mxu0  ;;  %v1636_v50 = vmax.f32 %v1572_v43, 0.0  ;;  %v1573_v51 = vadd.f32 %v1509_v44, %v749_v38  ;;  %v2054_v54 = vpop.f32.mrb[28].mxu1 }
 0x113   :  { %v681_v52 = vmul.f32 %v2498_v3, %v503_v49  ;;  %v1989_v53 = vpop.f32.mrb[30].mxu0  ;;  %1703 = vst.msk [vmem:[#allocation2 + $0xd0] sm:$0xff] %vm1676_vm3, %v1638_v46  ;;  %v1639_v55 = vmax.f32 %v1575_v47, 0.0  ;;  %v1443_v58 = vmul.f32 %v2054_v54, %v2508_v6  ;;  %v1263_v60 = vpop.f32.mrb[29].mxu1 }
 0x114   :  { %v754_v56 = vadd.f32 %v2503_v5, %v683_v48  ;;  %v684_v57 = vmul.f32 %v1989_v53, %v2498_v3  ;;  %v506_v59 = vpop.f32.mrb[31].mxu0  ;;  %1701 = vst.msk [vmem:[#allocation2 + $0xc0] sm:$0xff] %vm1676_vm3, %v1636_v50  ;;  %v1637_v61 = vmax.f32 %v1573_v51, 0.0  ;;  %v1441_v0 = vmul.f32 %v2508_v6, %v1263_v60  ;;  %v2055_v1 = vpop.f32.mrb[30].mxu1 }
 0x115   :  { %v752_v62 = vadd.f32 %v2503_v5, %v681_v52  ;;  %v682_v63 = vmul.f32 %v2498_v3, %v506_v59  ;;  %1704 = vst.msk [vmem:[#allocation2 + $0xd8] sm:$0xff] %vm1676_vm3, %v1639_v55  ;;  %v1514_v4 = vadd.f32 %v2515_v12, %v1443_v58  ;;  %v1444_v7 = vmul.f32 %v2055_v1, %v2508_v6  ;;  %v1266_v8 = vpop.f32.mrb[31].mxu1 }
 0x116   :  { %v755_v2 = vadd.f32 %v2503_v5, %v684_v57  ;;  %1702 = vst.msk [vmem:[#allocation2 + $0xc8] sm:$0xff] %vm1676_vm3, %v1637_v61  ;;  %v1512_v10 = vadd.f32 %v2515_v12, %v1441_v0  ;;  %v1442_v11 = vmul.f32 %v2508_v6, %v1266_v8 }
 0x117   :  { %v753_v9 = vadd.f32 %v2503_v5, %v682_v63  ;;  %v1578_v13 = vadd.f32 %v1514_v4, %v754_v56  ;;  %v1515_v14 = vadd.f32 %v2515_v12, %v1444_v7 }
 0x118   :  { %v1576_v15 = vadd.f32 %v1512_v10, %v752_v62  ;;  %v1513_v16 = vadd.f32 %v2515_v12, %v1442_v11 }
 0x119   :  { %v1992_v17 = vpop.f32.mrb[32].mxu0  ;;  %v1642_v18 = vmax.f32 %v1578_v13, 0.0  ;;  %v1579_v19 = vadd.f32 %v1515_v14, %v755_v2 }
 0x11a   :  { %v687_v20 = vmul.f32 %v1992_v17, %v2498_v3  ;;  %v519_v21 = vpop.f32.mrb[33].mxu0  ;;  %v1640_v22 = vmax.f32 %v1576_v15, 0.0  ;;  %v1577_v23 = vadd.f32 %v1513_v16, %v753_v9  ;;  %v2058_v26 = vpop.f32.mrb[32].mxu1 }
 0x11b   :  { %v685_v24 = vmul.f32 %v2498_v3, %v519_v21  ;;  %v1993_v25 = vpop.f32.mrb[34].mxu0  ;;  %1707 = vst.msk [vmem:[#allocation2 + $0xf0] sm:$0xff] %vm1676_vm3, %v1642_v18  ;;  %v1643_v27 = vmax.f32 %v1579_v19, 0.0  ;;  %v1447_v30 = vmul.f32 %v2058_v26, %v2508_v6  ;;  %v1279_v32 = vpop.f32.mrb[33].mxu1 }
 0x11c   :  { %v758_v28 = vadd.f32 %v2503_v5, %v687_v20  ;;  %v688_v29 = vmul.f32 %v1993_v25, %v2498_v3  ;;  %v522_v31 = vpop.f32.mrb[35].mxu0  ;;  %1705 = vst.msk [vmem:[#allocation2 + $0xe0] sm:$0xff] %vm1676_vm3, %v1640_v22  ;;  %v1641_v33 = vmax.f32 %v1577_v23, 0.0  ;;  %v1445_v36 = vmul.f32 %v2508_v6, %v1279_v32  ;;  %v2059_v37 = vpop.f32.mrb[34].mxu1 }
 0x11d   :  { %v756_v34 = vadd.f32 %v2503_v5, %v685_v24  ;;  %v686_v35 = vmul.f32 %v2498_v3, %v522_v31  ;;  %1708 = vst.msk [vmem:[#allocation2 + $0xf8] sm:$0xff] %vm1676_vm3, %v1643_v27  ;;  %v1518_v39 = vadd.f32 %v2515_v12, %v1447_v30  ;;  %v1448_v40 = vmul.f32 %v2059_v37, %v2508_v6  ;;  %v1282_v41 = vpop.f32.mrb[35].mxu1 }
 0x11e   :  { %v759_v38 = vadd.f32 %v2503_v5, %v688_v29  ;;  %1706 = vst.msk [vmem:[#allocation2 + $0xe8] sm:$0xff] %vm1676_vm3, %v1641_v33  ;;  %v1516_v43 = vadd.f32 %v2515_v12, %v1445_v36  ;;  %v1446_v44 = vmul.f32 %v2508_v6, %v1282_v41 }
 0x11f   :  { %v757_v42 = vadd.f32 %v2503_v5, %v686_v35  ;;  %v1582_v45 = vadd.f32 %v1518_v39, %v758_v28  ;;  %v1519_v46 = vadd.f32 %v2515_v12, %v1448_v40 }
 0x120   :  { %v1580_v47 = vadd.f32 %v1516_v43, %v756_v34  ;;  %v1517_v48 = vadd.f32 %v2515_v12, %v1446_v44 }
 0x121   :  { %v1996_v49 = vpop.f32.mrb[36].mxu0  ;;  %v1646_v50 = vmax.f32 %v1582_v45, 0.0  ;;  %v1583_v51 = vadd.f32 %v1519_v46, %v759_v38 }
 0x122   :  { %v691_v52 = vmul.f32 %v1996_v49, %v2498_v3  ;;  %v535_v53 = vpop.f32.mrb[37].mxu0  ;;  %v1644_v54 = vmax.f32 %v1580_v47, 0.0  ;;  %v1581_v55 = vadd.f32 %v1517_v48, %v757_v42  ;;  %v2062_v58 = vpop.f32.mrb[36].mxu1 }
 0x123   :  { %v689_v56 = vmul.f32 %v2498_v3, %v535_v53  ;;  %v1997_v57 = vpop.f32.mrb[38].mxu0  ;;  %1711 = vst.msk [vmem:[#allocation2 + $0x110] sm:$0xff] %vm1676_vm3, %v1646_v50  ;;  %v1647_v59 = vmax.f32 %v1583_v51, 0.0  ;;  %v1451_v62 = vmul.f32 %v2062_v58, %v2508_v6  ;;  %v1295_v0 = vpop.f32.mrb[37].mxu1 }
 0x124   :  { %v762_v60 = vadd.f32 %v2503_v5, %v691_v52  ;;  %v692_v61 = vmul.f32 %v1997_v57, %v2498_v3  ;;  %v538_v63 = vpop.f32.mrb[39].mxu0  ;;  %1709 = vst.msk [vmem:[#allocation2 + $0x100] sm:$0xff] %vm1676_vm3, %v1644_v54  ;;  %v1645_v1 = vmax.f32 %v1581_v55, 0.0  ;;  %v1449_v7 = vmul.f32 %v2508_v6, %v1295_v0  ;;  %v2063_v8 = vpop.f32.mrb[38].mxu1 }
 0x125   :  { %v760_v2 = vadd.f32 %v2503_v5, %v689_v56  ;;  %v690_v4 = vmul.f32 %v2498_v3, %v538_v63  ;;  %1712 = vst.msk [vmem:[#allocation2 + $0x118] sm:$0xff] %vm1676_vm3, %v1647_v59  ;;  %v1522_v10 = vadd.f32 %v2515_v12, %v1451_v62  ;;  %v1452_v11 = vmul.f32 %v2063_v8, %v2508_v6  ;;  %v1298_v13 = vpop.f32.mrb[39].mxu1 }
 0x126   :  { %v763_v9 = vadd.f32 %v2503_v5, %v692_v61  ;;  %1710 = vst.msk [vmem:[#allocation2 + $0x108] sm:$0xff] %vm1676_vm3, %v1645_v1  ;;  %v1520_v15 = vadd.f32 %v2515_v12, %v1449_v7  ;;  %v1450_v16 = vmul.f32 %v2508_v6, %v1298_v13 }
 0x127   :  { %v761_v14 = vadd.f32 %v2503_v5, %v690_v4  ;;  %v1586_v17 = vadd.f32 %v1522_v10, %v762_v60  ;;  %v1523_v18 = vadd.f32 %v2515_v12, %v1452_v11 }
 0x128   :  { %v1584_v19 = vadd.f32 %v1520_v15, %v760_v2  ;;  %v1521_v20 = vadd.f32 %v2515_v12, %v1450_v16 }
 0x129   :  { %v2000_v21 = vpop.f32.mrb[40].mxu0  ;;  %v1650_v22 = vmax.f32 %v1586_v17, 0.0  ;;  %v1587_v23 = vadd.f32 %v1523_v18, %v763_v9 }
 0x12a   :  { %v695_v24 = vmul.f32 %v2000_v21, %v2498_v3  ;;  %v551_v25 = vpop.f32.mrb[41].mxu0  ;;  %v1648_v26 = vmax.f32 %v1584_v19, 0.0  ;;  %v1585_v27 = vadd.f32 %v1521_v20, %v761_v14  ;;  %v2066_v30 = vpop.f32.mrb[40].mxu1 }
 0x12b   :  { %v693_v28 = vmul.f32 %v2498_v3, %v551_v25  ;;  %v2001_v29 = vpop.f32.mrb[42].mxu0  ;;  %1715 = vst.msk [vmem:[#allocation2 + $0x130] sm:$0xff] %vm1676_vm3, %v1650_v22  ;;  %v1651_v31 = vmax.f32 %v1587_v23, 0.0  ;;  %v1455_v34 = vmul.f32 %v2066_v30, %v2508_v6  ;;  %v1311_v36 = vpop.f32.mrb[41].mxu1 }
 0x12c   :  { %v766_v32 = vadd.f32 %v2503_v5, %v695_v24  ;;  %v696_v33 = vmul.f32 %v2001_v29, %v2498_v3  ;;  %v554_v35 = vpop.f32.mrb[43].mxu0  ;;  %1713 = vst.msk [vmem:[#allocation2 + $0x120] sm:$0xff] %vm1676_vm3, %v1648_v26  ;;  %v1649_v37 = vmax.f32 %v1585_v27, 0.0  ;;  %v1453_v40 = vmul.f32 %v2508_v6, %v1311_v36  ;;  %v2067_v41 = vpop.f32.mrb[42].mxu1 }
 0x12d   :  { %v764_v38 = vadd.f32 %v2503_v5, %v693_v28  ;;  %v694_v39 = vmul.f32 %v2498_v3, %v554_v35  ;;  %1716 = vst.msk [vmem:[#allocation2 + $0x138] sm:$0xff] %vm1676_vm3, %v1651_v31  ;;  %v1526_v43 = vadd.f32 %v2515_v12, %v1455_v34  ;;  %v1456_v44 = vmul.f32 %v2067_v41, %v2508_v6  ;;  %v1314_v45 = vpop.f32.mrb[43].mxu1 }
 0x12e   :  { %v767_v42 = vadd.f32 %v2503_v5, %v696_v33  ;;  %1714 = vst.msk [vmem:[#allocation2 + $0x128] sm:$0xff] %vm1676_vm3, %v1649_v37  ;;  %v1524_v47 = vadd.f32 %v2515_v12, %v1453_v40  ;;  %v1454_v48 = vmul.f32 %v2508_v6, %v1314_v45 }
 0x12f   :  { %v765_v46 = vadd.f32 %v2503_v5, %v694_v39  ;;  %v1590_v49 = vadd.f32 %v1526_v43, %v766_v32  ;;  %v1527_v50 = vadd.f32 %v2515_v12, %v1456_v44 }
 0x130   :  { %v1588_v51 = vadd.f32 %v1524_v47, %v764_v38  ;;  %v1525_v52 = vadd.f32 %v2515_v12, %v1454_v48 }
 0x131   :  { %v2004_v53 = vpop.f32.mrb[44].mxu0  ;;  %v1654_v54 = vmax.f32 %v1590_v49, 0.0  ;;  %v1591_v55 = vadd.f32 %v1527_v50, %v767_v42 }
 0x132   :  { %v699_v56 = vmul.f32 %v2004_v53, %v2498_v3  ;;  %v567_v57 = vpop.f32.mrb[45].mxu0  ;;  %v1652_v58 = vmax.f32 %v1588_v51, 0.0  ;;  %v1589_v59 = vadd.f32 %v1525_v52, %v765_v46  ;;  %v2070_v62 = vpop.f32.mrb[44].mxu1 }
 0x133   :  { %v697_v60 = vmul.f32 %v2498_v3, %v567_v57  ;;  %v2005_v61 = vpop.f32.mrb[46].mxu0  ;;  %1719 = vst.msk [vmem:[#allocation2 + $0x150] sm:$0xff] %vm1676_vm3, %v1654_v54  ;;  %v1655_v63 = vmax.f32 %v1591_v55, 0.0  ;;  %v1459_v2 = vmul.f32 %v2070_v62, %v2508_v6  ;;  %v1327_v7 = vpop.f32.mrb[45].mxu1 }
 0x134   :  { %v770_v0 = vadd.f32 %v2503_v5, %v699_v56  ;;  %v700_v1 = vmul.f32 %v2005_v61, %v2498_v3  ;;  %v570_v4 = vpop.f32.mrb[47].mxu0  ;;  %1717 = vst.msk [vmem:[#allocation2 + $0x140] sm:$0xff] %vm1676_vm3, %v1652_v58  ;;  %v1653_v8 = vmax.f32 %v1589_v59, 0.0  ;;  %v1457_v11 = vmul.f32 %v2508_v6, %v1327_v7  ;;  %v2071_v13 = vpop.f32.mrb[46].mxu1 }
 0x135   :  { %v768_v9 = vadd.f32 %v2503_v5, %v697_v60  ;;  %v698_v10 = vmul.f32 %v2498_v3, %v570_v4  ;;  %1720 = vst.msk [vmem:[#allocation2 + $0x158] sm:$0xff] %vm1676_vm3, %v1655_v63  ;;  %v1530_v15 = vadd.f32 %v2515_v12, %v1459_v2  ;;  %v1460_v16 = vmul.f32 %v2071_v13, %v2508_v6  ;;  %v1330_v17 = vpop.f32.mrb[47].mxu1 }
 0x136   :  { %v771_v14 = vadd.f32 %v2503_v5, %v700_v1  ;;  %1718 = vst.msk [vmem:[#allocation2 + $0x148] sm:$0xff] %vm1676_vm3, %v1653_v8  ;;  %v1528_v19 = vadd.f32 %v2515_v12, %v1457_v11  ;;  %v1458_v20 = vmul.f32 %v2508_v6, %v1330_v17 }
 0x137   :  { %v769_v18 = vadd.f32 %v2503_v5, %v698_v10  ;;  %v1594_v21 = vadd.f32 %v1530_v15, %v770_v0  ;;  %v1531_v22 = vadd.f32 %v2515_v12, %v1460_v16 }
 0x138   :  { %v1592_v23 = vadd.f32 %v1528_v19, %v768_v9  ;;  %v1529_v24 = vadd.f32 %v2515_v12, %v1458_v20 }
 0x139   :  { %v2008_v25 = vpop.f32.mrb[48].mxu0  ;;  %v1658_v26 = vmax.f32 %v1594_v21, 0.0  ;;  %v1595_v27 = vadd.f32 %v1531_v22, %v771_v14 }
 0x13a   :  { %v703_v28 = vmul.f32 %v2008_v25, %v2498_v3  ;;  %v583_v29 = vpop.f32.mrb[49].mxu0  ;;  %v1656_v30 = vmax.f32 %v1592_v23, 0.0  ;;  %v1593_v31 = vadd.f32 %v1529_v24, %v769_v18  ;;  %v2074_v34 = vpop.f32.mrb[48].mxu1 }
 0x13b   :  { %v701_v32 = vmul.f32 %v2498_v3, %v583_v29  ;;  %v2009_v33 = vpop.f32.mrb[50].mxu0  ;;  %1723 = vst.msk [vmem:[#allocation2 + $0x170] sm:$0xff] %vm1676_vm3, %v1658_v26  ;;  %v1659_v35 = vmax.f32 %v1595_v27, 0.0  ;;  %v1463_v38 = vmul.f32 %v2074_v34, %v2508_v6  ;;  %v1343_v40 = vpop.f32.mrb[49].mxu1 }
 0x13c   :  { %v774_v36 = vadd.f32 %v2503_v5, %v703_v28  ;;  %v704_v37 = vmul.f32 %v2009_v33, %v2498_v3  ;;  %v586_v39 = vpop.f32.mrb[51].mxu0  ;;  %1721 = vst.msk [vmem:[#allocation2 + $0x160] sm:$0xff] %vm1676_vm3, %v1656_v30  ;;  %v1657_v41 = vmax.f32 %v1593_v31, 0.0  ;;  %v1461_v44 = vmul.f32 %v2508_v6, %v1343_v40  ;;  %v2075_v45 = vpop.f32.mrb[50].mxu1 }
 0x13d   :  { %v772_v42 = vadd.f32 %v2503_v5, %v701_v32  ;;  %v702_v43 = vmul.f32 %v2498_v3, %v586_v39  ;;  %1724 = vst.msk [vmem:[#allocation2 + $0x178] sm:$0xff] %vm1676_vm3, %v1659_v35  ;;  %v1534_v47 = vadd.f32 %v2515_v12, %v1463_v38  ;;  %v1464_v48 = vmul.f32 %v2075_v45, %v2508_v6  ;;  %v1346_v49 = vpop.f32.mrb[51].mxu1 }
 0x13e   :  { %v775_v46 = vadd.f32 %v2503_v5, %v704_v37  ;;  %1722 = vst.msk [vmem:[#allocation2 + $0x168] sm:$0xff] %vm1676_vm3, %v1657_v41  ;;  %v1532_v51 = vadd.f32 %v2515_v12, %v1461_v44  ;;  %v1462_v52 = vmul.f32 %v2508_v6, %v1346_v49 }
 0x13f   :  { %v773_v50 = vadd.f32 %v2503_v5, %v702_v43  ;;  %v1598_v53 = vadd.f32 %v1534_v47, %v774_v36  ;;  %v1535_v54 = vadd.f32 %v2515_v12, %v1464_v48 }
 0x140   :  { %v1596_v55 = vadd.f32 %v1532_v51, %v772_v42  ;;  %v1533_v56 = vadd.f32 %v2515_v12, %v1462_v52 }
 0x141   :  { %v2012_v57 = vpop.f32.mrb[52].mxu0  ;;  %v1662_v58 = vmax.f32 %v1598_v53, 0.0  ;;  %v1599_v59 = vadd.f32 %v1535_v54, %v775_v46 }
 0x142   :  { %v707_v60 = vmul.f32 %v2012_v57, %v2498_v3  ;;  %v599_v61 = vpop.f32.mrb[53].mxu0  ;;  %v1660_v62 = vmax.f32 %v1596_v55, 0.0  ;;  %v1597_v63 = vadd.f32 %v1533_v56, %v773_v50  ;;  %v2078_v2 = vpop.f32.mrb[52].mxu1  ;;  %v2160_v50 = vld [vmem:[%s2838_s7] ss:$0 sm:$0xff] }
 0x143   :  { %v705_v0 = vmul.f32 %v2498_v3, %v599_v61  ;;  %v2013_v1 = vpop.f32.mrb[54].mxu0  ;;  %1727 = vst.msk [vmem:[#allocation2 + $0x190] sm:$0xff] %vm1676_vm3, %v1662_v58  ;;  %v1663_v4 = vmax.f32 %v1599_v59, 0.0  ;;  %v1467_v9 = vmul.f32 %v2078_v2, %v2508_v6  ;;  %v1359_v11 = vpop.f32.mrb[53].mxu1 }
 0x144   :  { %v778_v7 = vadd.f32 %v2503_v5, %v707_v60  ;;  %v708_v8 = vmul.f32 %v2013_v1, %v2498_v3  ;;  %v602_v10 = vpop.f32.mrb[55].mxu0  ;;  %1725 = vst.msk [vmem:[#allocation2 + $0x180] sm:$0xff] %vm1676_vm3, %v1660_v62  ;;  %v1661_v13 = vmax.f32 %v1597_v63, 0.0  ;;  %v1465_v16 = vmul.f32 %v2508_v6, %v1359_v11  ;;  %v2079_v17 = vpop.f32.mrb[54].mxu1 }
 0x145   :  { %v776_v14 = vadd.f32 %v2503_v5, %v705_v0  ;;  %v706_v15 = vmul.f32 %v2498_v3, %v602_v10  ;;  %1728 = vst.msk [vmem:[#allocation2 + $0x198] sm:$0xff] %vm1676_vm3, %v1663_v4  ;;  %v1538_v19 = vadd.f32 %v2515_v12, %v1467_v9  ;;  %v1468_v20 = vmul.f32 %v2079_v17, %v2508_v6  ;;  %v1362_v21 = vpop.f32.mrb[55].mxu1 }
 0x146   :  { %v779_v18 = vadd.f32 %v2503_v5, %v708_v8  ;;  %1726 = vst.msk [vmem:[#allocation2 + $0x188] sm:$0xff] %vm1676_vm3, %v1661_v13  ;;  %v1536_v23 = vadd.f32 %v2515_v12, %v1465_v16  ;;  %v1466_v24 = vmul.f32 %v2508_v6, %v1362_v21 }
 0x147   :  { %v777_v22 = vadd.f32 %v2503_v5, %v706_v15  ;;  %v1602_v25 = vadd.f32 %v1538_v19, %v778_v7  ;;  %v1539_v26 = vadd.f32 %v2515_v12, %v1468_v20 }
 0x148   :  { %v1600_v27 = vadd.f32 %v1536_v23, %v776_v14  ;;  %v1537_v28 = vadd.f32 %v2515_v12, %v1466_v24  ;;  %v2157_v12 = vld [vmem:[%s2833_s2] ss:$0 sm:$0xff] }
 0x149   :  { %v2016_v29 = vpop.f32.mrb[56].mxu0  ;;  %v1666_v30 = vmax.f32 %v1602_v25, 0.0  ;;  %v1603_v31 = vadd.f32 %v1539_v26, %v779_v18 }
 0x14a   :  { %v711_v32 = vmul.f32 %v2016_v29, %v2498_v3  ;;  %v615_v33 = vpop.f32.mrb[57].mxu0  ;;  %v1664_v34 = vmax.f32 %v1600_v27, 0.0  ;;  %v1601_v35 = vadd.f32 %v1537_v28, %v777_v22  ;;  %v2082_v38 = vpop.f32.mrb[56].mxu1 }
 0x14b   :  { %v709_v36 = vmul.f32 %v2498_v3, %v615_v33  ;;  %v2017_v37 = vpop.f32.mrb[58].mxu0  ;;  %1731 = vst.msk [vmem:[#allocation2 + $0x1b0] sm:$0xff] %vm1676_vm3, %v1666_v30  ;;  %v1667_v39 = vmax.f32 %v1603_v31, 0.0  ;;  %v1471_v42 = vmul.f32 %v2082_v38, %v2508_v6  ;;  %v1375_v44 = vpop.f32.mrb[57].mxu1  ;;  %v2158_v3 = vld [vmem:[%s2834_s3] ss:$0 sm:$0xff] }
 0x14c   :  { %v782_v40 = vadd.f32 %v2503_v5, %v711_v32  ;;  %v712_v41 = vmul.f32 %v2157_v12, %v2017_v37  ;;  %v618_v43 = vpop.f32.mrb[59].mxu0  ;;  %1729 = vst.msk [vmem:[#allocation2 + $0x1a0] sm:$0xff] %vm1676_vm3, %v1664_v34  ;;  %v1665_v45 = vmax.f32 %v1601_v35, 0.0  ;;  %v2159_v5 = vld [vmem:[%s2837_s6] ss:$0 sm:$0xff]  ;;  %v2083_v49 = vpop.f32.mrb[58].mxu1 }
 0x14d   :  { %v780_v46 = vadd.f32 %v2158_v3, %v709_v36  ;;  %v710_v47 = vmul.f32 %v2157_v12, %v618_v43  ;;  %v1469_v48 = vmul.f32 %v2159_v5, %v1375_v44  ;;  %1732 = vst.msk [vmem:[#allocation2 + $0x1b8] sm:$0xff] %vm1676_vm3, %v1667_v39  ;;  %v1542_v51 = vadd.f32 %v2160_v50, %v1471_v42  ;;  %v1378_v53 = vpop.f32.mrb[59].mxu1  ;;  %s2185_s3 = smov [#allocation2]  }
 0x14e   :  { %v783_v6 = vadd.f32 %v2158_v3, %v712_v41  ;;  %v1472_v52 = vmul.f32 %v2159_v5, %v2083_v49  ;;  %1730 = vst.msk [vmem:[#allocation2 + $0x1a8] sm:$0xff] %vm1676_vm3, %v1665_v45  ;;  %v1470_v56 = vmul.f32 %v2159_v5, %v1378_v53  ;;  %s1746_s6 = sshll.u32 %s2185_s3, 4  ;;  %s1747_s6 = int_to_ptr.vmem [resolvable:$true] %s1746_s6 }
 0x14f   :  { %v781_v54 = vadd.f32 %v2158_v3, %v710_v47  ;;  %v1540_v55 = vadd.f32 %v2160_v50, %v1469_v48  ;;  %v1606_v57 = vadd.f32 %v1542_v51, %v782_v40  ;;  %s2161_s7 = scalar_lea.vmem %s1747_s6, 8192  ;;  %p2166_p1 = scmp.lt.s32.totalorder %s1747_s6, %s1747_s6 }
 0x150   :  { %v1543_v58 = vadd.f32 %v2160_v50, %v1472_v52  ;;  %v1541_v60 = vadd.f32 %v2160_v50, %v1470_v56  ;;  %p2162_p0 = scmp.ne.s32.totalorder %s1747_s6, %s2161_s7  ;;  %p2167_p2 = scmp.lt.s32.totalorder %s2161_s7, %s2161_s7 }
 0x151   :  { %v1604_v59 = vadd.f32 %v1540_v55, %v780_v46  ;;  %v2020_v61 = vpop.f32.mrb[60].mxu0  ;;  %v1670_v62 = vmax.f32 %v1606_v57, 0.0 }
 0x152   :  { %v1607_v63 = vadd.f32 %v1543_v58, %v783_v6  ;;  %v715_v0 = vmul.f32 %v2157_v12, %v2020_v61  ;;  %v631_v1 = vpop.f32.mrb[61].mxu0  ;;  %v1605_v4 = vadd.f32 %v1541_v60, %v781_v54  ;;  %v2086_v9 = vpop.f32.mrb[60].mxu1  ;;  %p2168_p3 = por %p2167_p2, %p2166_p1 }
 0x153   :  { %v1668_v2 = vmax.f32 %v1604_v59, 0.0  ;;  %v713_v7 = vmul.f32 %v2157_v12, %v631_v1  ;;  %v2021_v8 = vpop.f32.mrb[62].mxu0  ;;  %1735 = vst.msk [vmem:[#allocation2 + $0x1d0] sm:$0xff] %vm1676_vm3, %v1670_v62  ;;  %v1475_v14 = vmul.f32 %v2159_v5, %v2086_v9  ;;  %v1391_v16 = vpop.f32.mrb[61].mxu1 }
 0x154   :  { %v1671_v10 = vmax.f32 %v1607_v63, 0.0  ;;  %v786_v11 = vadd.f32 %v2158_v3, %v715_v0  ;;  %v716_v13 = vmul.f32 %v2157_v12, %v2021_v8  ;;  %v634_v15 = vpop.f32.mrb[63].mxu0  ;;  %v1669_v17 = vmax.f32 %v1605_v4, 0.0  ;;  %v2087_v21 = vpop.f32.mrb[62].mxu1  ;;  %p2169_p4 = pnand %p2168_p3, %p2162_p0 }
 0x155   :  { %1733 = vst.msk [vmem:[#allocation2 + $0x1c0] sm:$0xff] %vm1676_vm3, %v1668_v2  ;;  %v784_v18 = vadd.f32 %v2158_v3, %v713_v7  ;;  %v714_v19 = vmul.f32 %v2157_v12, %v634_v15  ;;  %v1473_v20 = vmul.f32 %v2159_v5, %v1391_v16  ;;  %v1546_v23 = vadd.f32 %v2160_v50, %v1475_v14  ;;  %v1394_v25 = vpop.f32.mrb[63].mxu1 }
 0x156   :  { %1736 = vst.msk [vmem:[#allocation2 + $0x1d8] sm:$0xff] %vm1676_vm3, %v1671_v10  ;;  %v787_v22 = vadd.f32 %v2158_v3, %v716_v13  ;;  %v1476_v24 = vmul.f32 %v2159_v5, %v2087_v21  ;;  %1734 = vst.msk [vmem:[#allocation2 + $0x1c8] sm:$0xff] %vm1676_vm3, %v1669_v17  ;;  %v1474_v28 = vmul.f32 %v2159_v5, %v1394_v25 }
 0x157   :  { %v785_v26 = vadd.f32 %v2158_v3, %v714_v19  ;;  %v1544_v27 = vadd.f32 %v2160_v50, %v1473_v20  ;;  %v1610_v29 = vadd.f32 %v1546_v23, %v786_v11 }
 0x158   :  { %v1547_v30 = vadd.f32 %v2160_v50, %v1476_v24  ;;  %v1545_v32 = vadd.f32 %v2160_v50, %v1474_v28 }
 0x159   :  { %v1608_v31 = vadd.f32 %v1544_v27, %v784_v18  ;;  %v1674_v33 = vmax.f32 %v1610_v29, 0.0 }
 0x15a   :  { %v1611_v34 = vadd.f32 %v1547_v30, %v787_v22  ;;  %v1609_v36 = vadd.f32 %v1545_v32, %v785_v26 }
 0x15b   :  { %v1672_v35 = vmax.f32 %v1608_v31, 0.0  ;;  %1739 = vst.msk [vmem:[#allocation2 + $0x1f0] sm:$0xff] %vm1676_vm3, %v1674_v33 }
 0x15c   :  { %v1675_v37 = vmax.f32 %v1611_v34, 0.0  ;;  %v1673_v38 = vmax.f32 %v1609_v36, 0.0 }
 0x15d   :  { %1737 = vst.msk [vmem:[#allocation2 + $0x1e0] sm:$0xff] %vm1676_vm3, %v1672_v35 }
 0x15e   :  { %1740 = vst.msk [vmem:[#allocation2 + $0x1f8] sm:$0xff] %vm1676_vm3, %v1675_v37  ;;  %1738 = vst.msk [vmem:[#allocation2 + $0x1e8] sm:$0xff] %vm1676_vm3, %v1673_v38 }
 0x15f   :  { %2172 = shalt.err (!%p2169_p4)
}
 0x160   :  { %s2173_s30 = scalar_lea.hbm %s2839_s8, 8192 }
 0x161   :  { %p2174_p5 = scmp.ne.s32.totalorder %s2839_s8, %s2173_s30  ;;  %p2177_p6 = scmp.lt.u32.totalorder %s2173_s30, %s2839_s8 }
 0x163   :  { %p2179_p7 = pnand %p2177_p6, %p2174_p5 }
 0x165   :  { %2182 = shalt.err (!%p2179_p7)
}
 0x166   :  { %s2186_s1 = smov 128   ;;  %s2187_s13 = smov 8  }
 0x167   :  { %1752 = dma.vmem_to_hbm [thread:$0]  %s1747_s6, 8192, %s2839_s8, [#allocation3], %s2186_s1, %s2186_s1, %s2187_s13  }
 0x168   :  { %2183 = dma.done.wait [#allocation3], 8192  }
 0x169   :  { %2184 = vsyncadd [#allocation3], 4294959104 }
 0x16a   :  { %1756 = vsyncpa [#allocation3], 1 }

// kernel: bottleneck_forward.4
= control target key start
LH: loop header
LB: loop body
LE: loop exit
PB: predicated region body
PF: predicated region fallthrough
CT: control target
= control target key end

     0   :  { %s6453_s15 = smov 0   ;;  %s6455_s16 = smov 0   ;;  %s7500_s0 = inlined_call_operand.vmem [shape: bf16[2,4,17,17,8], index: 0, kind: input, shape index: {}]   ;;  %s7501_s1 = inlined_call_operand.vmem [shape: bf16[3,3,8,8], index: 1, kind: input, shape index: {}]   ;;  %s7502_s2 = inlined_call_operand.vmem [shape: f32[1,8], index: 2, kind: input, shape index: {}]   ;;  %s7503_s3 = inlined_call_operand.vmem [shape: f32[1,8], index: 3, kind: input, shape index: {}]   ;;  %s7504_s4 = inlined_call_operand.vmem [shape: bf16[2,16,16,8], index: 4, kind: output, shape index: {}]  }
   0x1   :  { %s6457_s17 = smov 0  }
   0x2 LB: > { %s26_s18 = sadd.s32 1, %s6422_s16  ;;  %p4930_p0 = scmp.ge.s32.totalorder %s6426_s17, 1  ;;  %s6426_s17 = sphi %s6457_s17, %s14_s17   ;;  %s6422_s16 = sphi %s6455_s16, %s7508_s16   ;;  %s6418_s15 = sphi %s6453_s15, %s7507_s15  }
   0x3   : > { %p28_p1 = scmp.ge.s32.totalorder %s26_s18, 2  ;;  %p201_p2 = scmp.lt.s32.totalorder %s6426_s17, 3 }
   0x5   : > { %s7510_s18 = smov (%p28_p1, %s26_s18), 0  ;;  %p202_p3 = pnand %p4930_p0, %p201_p2 }
   0x6   : > { %v4966_v0 = vld [vmem:[%s7501_s1 + $0x4] sm:$0xf] (!%p202_p3)  ;;  %vm461_vm0 = vcmask (!%p202_p3), 1043456   ;;  %v5161_v1 = vld [vmem:[%s7501_s1 + $0x10] sm:$0xf] (!%p202_p3)  ;;  %p240_p4 = scmp.lt.s32.totalorder (!%p202_p3), %s6418_s15, 1 }
   0x7   : > { %205 = sbr.rel (%p202_p3) target bundleno = 526 (0x20e), region = 36  ;;  %6272 = vmatprep.subr.msk.bf16.mxu1 (!%p202_p3), %vm461_vm0, %v4966_v0  ;;  %6276 = vmatprep.subr.msk.bf16.mxu0 (!%p202_p3), %vm461_vm0, %v5161_v1  ;;  %v463_v2 = vsel (!%p202_p3), %vm461_vm0, %v4966_v0, 0  ;;  %v6481_v3 = vsel (!%p202_p3), %vm461_vm0, %v5161_v1, 0  ;;  %v296_v4 = vld [vmem:[%s7501_s1] sm:$0xf] (!%p202_p3)  ;;  %vm412_vm1 = vcmask (!%p202_p3), 64512  }
   0x8   : > { %5709 = vmatpush3.bf16.msra.mxu1 (!%p202_p3), %v463_v2  ;;  %5845 = vmatpush3.bf16.msra.mxu0 (!%p202_p3), %v6481_v3  ;;  %v5242_v5 = vld [vmem:[%s7501_s1 + $0x14] sm:$0xf] (!%p202_p3)  ;;  %v755_v9 = vsel (!%p202_p3), %vm461_vm0, %v296_v4, 0  ;;  %v5307_v10 = vld [vmem:[%s7501_s1 + $0x18] sm:$0xf] (!%p202_p3)  ;;  %vm4773_vm5 = vcmask (!%p202_p3), 60416  }
   0x9   : > { %6273 = vmatprep.subr.msk.bf16.mxu1 (!%p202_p3), %vm461_vm0, %v296_v4  ;;  %6278 = vmatprep.subr.msk.bf16.mxu0 (!%p202_p3), %vm461_vm0, %v5242_v5  ;;  %v2896_v12 = vsel (!%p202_p3), %vm461_vm0, %v5242_v5, 0  ;;  %v5031_v13 = vld [vmem:[%s7501_s1 + $0x8] sm:$0xf] (!%p202_p3)  ;;  %vm966_vm2 = vsmask.f32 (!%p202_p3), 3328  ;;  %v6535_v24 = vsel (!%p202_p3), %vm461_vm0, %v5307_v10, 0 }
   0xa   : > { %vm967_vm3 = vsmask.f32 (!%p202_p3), 7440  ;;  %v6542_v34 = vsel (!%p202_p3), %vm461_vm0, %v5031_v13, 0 }
   0xb   : > { %vm6554_vm4 = vmor (!%p202_p3), %vm966_vm2, %vm967_vm3 }
   0xe   : > { %s7512_s15 = smov (!%p240_p4, %s6418_s15), 1 }
   0xf   : > { %s6282_s27 = smul.u32 816, %s7512_s15  ;;  %s5522_s25 = sshll.u32 %s7512_s15, 7 }
  0x10   : > { %s7361_s28 = scalar_lea.vmem %s7504_s4, %s5522_s25 }
  0x11   : > { %s6498_s30 = scalar_lea.vmem %s7500_s0, %s6282_s27 }
  0x12   : > { %v6307_v6 = vld [vmem:[%s6498_s30 + $0xcc] sm:$0xff]   ;;  %v6308_v7 = vld [vmem:[%s6498_s30 + $0x264] sm:$0xff]   ;;  %v6309_v8 = vld [vmem:[%s6498_s30 + $0xd8] sm:$0xff]  }
  0x13   : > { %5710 = vmatprep.mubr.msk.bf16.mxu1 %vm412_vm1, %v6307_v6  ;;  %5846 = vmatprep.mubr.msk.bf16.mxu0 %vm412_vm1, %v6308_v7  ;;  %v6310_v11 = vld [vmem:[%s6498_s30 + $0x270] sm:$0xff]   ;;  %v6311_v14 = vld [vmem:[%s6498_s30 + $0xe4] sm:$0xff]   ;;  %v6312_v15 = vld [vmem:[%s6498_s30 + $0x27c] sm:$0xff]  }
  0x14   : > { %5711 = vmatmul.mubr.msk.bf16.vlgmr.msra.gmra.mrb[0].mxu1 %vm412_vm1, %v6309_v8  ;;  %5847 = vmatmul.mubr.msk.bf16.vlgmr.msra.gmra.mrb[0].mxu0 %vm412_vm1, %v6310_v11  ;;  %v6313_v16 = vld [vmem:[%s6498_s30 + $0xf0] sm:$0xff]   ;;  %v6314_v17 = vld [vmem:[%s6498_s30 + $0x288] sm:$0xff]   ;;  %v6315_v18 = vld [vmem:[%s6498_s30 + $0xfc] sm:$0xff]  }
  0x15   : > { %5743 = vmatpush3.bf16.msra.mxu1 %v755_v9  ;;  %5879 = vmatpush3.bf16.msra.mxu0 %v2896_v12  ;;  %v6316_v19 = vld [vmem:[%s6498_s30 + $0x294] sm:$0xff]   ;;  %v6317_v20 = vld [vmem:[%s6498_s30 + $0x108] sm:$0xff]   ;;  %v6318_v21 = vld [vmem:[%s6498_s30 + $0x2a0] sm:$0xff]  }
  0x16   : > { %5714 = vmatprep.mubr.msk.bf16.mxu1 %vm412_vm1, %v6311_v14  ;;  %5850 = vmatprep.mubr.msk.bf16.mxu0 %vm412_vm1, %v6312_v15  ;;  %v6319_v22 = vld [vmem:[%s6498_s30 + $0x114] sm:$0xff]   ;;  %v6320_v23 = vld [vmem:[%s6498_s30 + $0x2ac] sm:$0xff]   ;;  %v5195_v26 = vld [vmem:[%s6498_s30 + $0x19c] sm:$0xf] }
  0x17   : > { %6279 = vmatprep.subr.msk.bf16.mxu0 %vm461_vm0, %v5307_v10  ;;  %6274 = vmatprep.subr.msk.bf16.mxu1 %vm461_vm0, %v5031_v13  ;;  %v5194_v25 = vld [vmem:[%s6498_s30 + $0x198] sm:$0xf]  ;;  %v5196_v27 = vld [vmem:[%s6498_s30 + $0x1a0] sm:$0x1]  ;;  %v2423_v30 = vshll.u32 %v5195_v26, 16  ;;  %v2427_v31 = vshrl.u32 %v5195_v26, 16 }
  0x18   : > { %v2414_v28 = vshrl.u32 %v5194_v25, 16  ;;  %v2417_v29 = vshll.u32 %v5194_v25, 16  ;;  %v2433_v32 = vshll.u32 %v5196_v27, 16  ;;  %v5197_v33 = vld [vmem:[%s6498_s30 + $0x1a4] sm:$0xf]  ;;  %v6322_v50 = vld [vmem:[%s6498_s30 + $0x2b8] sm:$0xff]  }
  0x19   : > { %v2425_v37 = vrot.slane %v2423_v30, 5  ;;  %v2429_v38 = vrot.slane %v2427_v31, 4  ;;  %v5198_v39 = vld [vmem:[%s6498_s30 + $0x1a8] sm:$0xf]  ;;  %v5199_v41 = vld [vmem:[%s6498_s30 + $0x1ac] sm:$0x1] }
  0x1a   : > { %v2416_v35 = vrot.slane %v2414_v28, 4  ;;  %v2419_v36 = vrot.slane %v2417_v29, 5  ;;  %v2435_v40 = vrot.slane %v2433_v32, 5  ;;  %v2438_v42 = vshrl.u32 %v5197_v33, 16  ;;  %v6321_v45 = vld [vmem:[%s6498_s30 + $0x120] sm:$0xff]   ;;  %v6323_v61 = vld [vmem:[%s6498_s30 + $0x12c] sm:$0xff]  }
  0x1b   : > { %v2441_v43 = vshll.u32 %v5197_v33, 16  ;;  %v2447_v44 = vshll.u32 %v5198_v39, 16  ;;  %v2430_v47 = vor.u32 %v2429_v38, %v2425_v37  ;;  %v2451_v48 = vshrl.u32 %v5198_v39, 16  ;;  %v5200_v55 = vld [vmem:[%s6498_s30 + $0x1b0] sm:$0xf]  ;;  %v6325_v31 = vld [vmem:[%s6498_s30 + $0x144] sm:$0xff]  }
  0x1c   : > { %5715 = vmatmul.mubr.msk.bf16.gmra.mrb[4].mxu1 %vm412_vm1, %v6313_v16  ;;  %5851 = vmatmul.mubr.msk.bf16.gmra.mrb[4].mxu0 %vm412_vm1, %v6314_v17  ;;  %v2420_v46 = vor.u32 %v2419_v36, %v2416_v35  ;;  %v2457_v49 = vshll.u32 %v5199_v41, 16  ;;  %v2440_v52 = vrot.slane %v2438_v42, 4  ;;  %v5201_v60 = vld [vmem:[%s6498_s30 + $0x1b4] sm:$0xf]  ;;  %v5202_v63 = vld [vmem:[%s6498_s30 + $0x1b8] sm:$0x1] }
  0x1d   : > { %5718 = vmatprep.mubr.msk.bf16.mxu1 %vm412_vm1, %v6315_v18  ;;  %5854 = vmatprep.mubr.msk.bf16.mxu0 %vm412_vm1, %v6316_v19  ;;  %v2443_v53 = vrot.slane %v2441_v43, 5  ;;  %v2449_v54 = vrot.slane %v2447_v44, 5  ;;  %v2431_v57 = vrot.slane %v2430_v47, 4  ;;  %v2453_v58 = vrot.slane %v2451_v48, 4  ;;  %v5203_v12 = vld [vmem:[%s6498_s30 + $0x1bc] sm:$0xf] }
  0x1e   : > { %v2421_v56 = vrot.slane %v2420_v46, 4  ;;  %v2459_v59 = vrot.slane %v2457_v49, 5  ;;  %v2462_v0 = vshrl.u32 %v5200_v55, 16  ;;  %v2465_v1 = vshll.u32 %v5200_v55, 16  ;;  %v5204_v17 = vld [vmem:[%s6498_s30 + $0x1c0] sm:$0xf] }
  0x1f   : > { %v2444_v62 = vor.u32 %v2443_v53, %v2440_v52  ;;  %v2471_v2 = vshll.u32 %v5201_v60, 16  ;;  %v2436_v5 = vsel %vm6554_vm4, %v2431_v57, %v2435_v40  ;;  %v2454_v6 = vor.u32 %v2453_v58, %v2449_v54  ;;  %v5206_v29 = vld [vmem:[%s6498_s30 + $0x1c8] sm:$0xf]  ;;  %v5207_v36 = vld [vmem:[%s6498_s30 + $0x1cc] sm:$0xf] }
  0x20   : > { %v2426_v4 = vsel %vm6554_vm4, %v2421_v56, %v2425_v37  ;;  %v2475_v7 = vshrl.u32 %v5201_v60, 16  ;;  %v2464_v10 = vrot.slane %v2462_v0, 4  ;;  %v2467_v11 = vrot.slane %v2465_v1, 5  ;;  %v5208_v41 = vld [vmem:[%s6498_s30 + $0x1d0] sm:$0x1] }
  0x21   : > { %v5243_v8 = vcombine.low %v2426_v4, %v2436_v5  ;;  %v2445_v9 = vrot.slane %v2444_v62, 4  ;;  %v2455_v13 = vrot.slane %v2454_v6, 4  ;;  %v2473_v14 = vrot.slane %v2471_v2, 5  ;;  %v6590_v52 = vld [vmem:[%s7501_s1 + $0x1c] sm:$0xf]  ;;  %v6326_v4 = vld [vmem:[%s6498_s30 + $0x150] sm:$0xff]  }
  0x22   : > { %v2477_v15 = vrot.slane %v2475_v7, 4  ;;  %v2481_v16 = vshll.u32 %v5202_v63, 16  ;;  %v2468_v19 = vor.u32 %v2467_v11, %v2464_v10  ;;  %v2495_v28 = vshll.u32 %v5204_v17, 16  ;;  %v5210_v57 = vld [vmem:[%s6498_s30 + $0x1d8] sm:$0xf] }
  0x23   : > { %v2450_v18 = vsel %vm6554_vm4, %v2445_v9, %v2449_v54  ;;  %v2460_v25 = vsel %vm6554_vm4, %v2455_v13, %v2459_v59  ;;  %v2499_v39 = vshrl.u32 %v5204_v17, 16  ;;  %v2510_v44 = vshrl.u32 %v5206_v29, 16  ;;  %v5211_v62 = vld [vmem:[%s6498_s30 + $0x1dc] sm:$0x1]  ;;  %v5212_v13 = vld [vmem:[%s6498_s30 + $0x1e0] sm:$0xf] }
  0x24   : > { %5719 = vmatmul.mubr.msk.bf16.gmra.mrb[8].mxu1 %vm412_vm1, %v6317_v20  ;;  %5855 = vmatmul.mubr.msk.bf16.gmra.mrb[8].mxu0 %vm412_vm1, %v6318_v21  ;;  %v5205_v20 = vld [vmem:[%s6498_s30 + $0x1c4] sm:$0x1]  ;;  %v2486_v21 = vshrl.u32 %v5203_v12, 16  ;;  %v2478_v26 = vor.u32 %v2477_v15, %v2473_v14  ;;  %v2483_v27 = vrot.slane %v2481_v16, 5  ;;  %v5244_v30 = vcombine.low %v2450_v18, %v2460_v25 }
  0x25   : > { %5722 = vmatprep.mubr.msk.bf16.mxu1 %vm412_vm1, %v6319_v22  ;;  %5858 = vmatprep.mubr.msk.bf16.mxu0 %vm412_vm1, %v6320_v23  ;;  %v2489_v22 = vshll.u32 %v5203_v12, 16  ;;  %v6324_v23 = vld [vmem:[%s6498_s30 + $0x138] sm:$0xff]   ;;  %v2469_v32 = vrot.slane %v2468_v19, 4  ;;  %v2497_v38 = vrot.slane %v2495_v28, 5  ;;  %v2505_v40 = vshll.u32 %v5205_v20, 16 }
  0x26   : > { %v2488_v33 = vrot.slane %v2486_v21, 4  ;;  %v2479_v37 = vrot.slane %v2478_v26, 4  ;;  %v2501_v47 = vrot.slane %v2499_v39, 4  ;;  %v2519_v49 = vshll.u32 %v5207_v36, 16  ;;  %v5213_v17 = vld [vmem:[%s6498_s30 + $0x1e4] sm:$0xf] }
  0x27   : > { %v2491_v35 = vrot.slane %v2489_v22, 5  ;;  %v2474_v42 = vsel %vm6554_vm4, %v2469_v32, %v2473_v14  ;;  %v2507_v48 = vrot.slane %v2505_v40, 5  ;;  %v2512_v55 = vrot.slane %v2510_v44, 4  ;;  %v6327_v19 = vld [vmem:[%s6498_s30 + $0x15c] sm:$0xff]   ;;  %v5217_v44 = vld [vmem:[%s6498_s30 + $0x1f4] sm:$0x1] }
  0x28   : > { %v2484_v46 = vsel %vm6554_vm4, %v2479_v37, %v2483_v27  ;;  %v2502_v58 = vor.u32 %v2501_v47, %v2497_v38  ;;  %v2521_v59 = vrot.slane %v2519_v49, 5  ;;  %v2523_v60 = vshrl.u32 %v5207_v36, 16 }
  0x29   : > { %v2492_v43 = vor.u32 %v2491_v35, %v2488_v33  ;;  %v5245_v53 = vcombine.low %v2474_v42, %v2484_v46  ;;  %v2547_v12 = vshrl.u32 %v5210_v57, 16  ;;  %v2553_v16 = vshll.u32 %v5211_v62, 16  ;;  %v5216_v35 = vld [vmem:[%s6498_s30 + $0x1f0] sm:$0xf] }
  0x2a   : > { %v2503_v5 = vrot.slane %v2502_v58, 4  ;;  %v2525_v6 = vrot.slane %v2523_v60, 4  ;;  %v2558_v27 = vshrl.u32 %v5212_v13, 16  ;;  %v2561_v28 = vshll.u32 %v5212_v13, 16  ;;  %v5219_v58 = vld [vmem:[%s6498_s30 + $0x1fc] sm:$0xf] }
  0x2b   : > { %v2493_v54 = vrot.slane %v2492_v43, 4  ;;  %v2549_v22 = vrot.slane %v2547_v12, 4  ;;  %v2555_v26 = vrot.slane %v2553_v16, 5  ;;  %v2567_v32 = vshll.u32 %v5213_v17, 16 }
  0x2c   : > { %5723 = vmatmul.mubr.msk.bf16.gmra.mrb[12].mxu1 %vm412_vm1, %v6321_v45  ;;  %5859 = vmatmul.mubr.msk.bf16.gmra.mrb[12].mxu0 %vm412_vm1, %v6322_v50  ;;  %v2513_v45 = vshll.u32 %v5206_v29, 16  ;;  %v5209_v50 = vld [vmem:[%s6498_s30 + $0x1d4] sm:$0xf]  ;;  %v2526_v14 = vor.u32 %v2525_v6, %v2521_v59  ;;  %v5215_v29 = vld [vmem:[%s6498_s30 + $0x1ec] sm:$0xf]  ;;  %v2571_v33 = vshrl.u32 %v5213_v17, 16 }
  0x2d   : > { %5726 = vmatprep.mubr.msk.bf16.mxu1 %vm412_vm1, %v6323_v61  ;;  %5880 = vmatprep.mubr.msk.bf16.mxu0 %vm412_vm1, %v5243_v8  ;;  %v2529_v61 = vshll.u32 %v5208_v41, 16  ;;  %v2498_v63 = vsel %vm6554_vm4, %v2493_v54, %v2497_v38  ;;  %v2534_v1 = vshrl.u32 %v5209_v50, 16  ;;  %v2537_v2 = vshll.u32 %v5209_v50, 16  ;;  %v5218_v50 = vld [vmem:[%s6498_s30 + $0x1f8] sm:$0xf] }
  0x2e   : > { %v2515_v56 = vrot.slane %v2513_v45, 5  ;;  %v2543_v8 = vshll.u32 %v5210_v57, 16  ;;  %v2527_v25 = vrot.slane %v2526_v14, 4  ;;  %v2560_v37 = vrot.slane %v2558_v27, 4  ;;  %v6328_v45 = vld [vmem:[%s6498_s30 + $0x168] sm:$0xff]   ;;  %v6329_v54 = vld [vmem:[%s6498_s30 + $0x174] sm:$0xff]  }
  0x2f   : > { %v2531_v7 = vrot.slane %v2529_v61, 5  ;;  %v2536_v10 = vrot.slane %v2534_v1, 4  ;;  %v2539_v11 = vrot.slane %v2537_v2, 5  ;;  %v2563_v38 = vrot.slane %v2561_v28, 5  ;;  %v5223_v27 = vld [vmem:[%s6498_s30 + $0x20c] sm:$0x1] }
  0x30   : > { %v2516_v0 = vor.u32 %v2515_v56, %v2512_v55  ;;  %v2545_v15 = vrot.slane %v2543_v8, 5  ;;  %v2569_v43 = vrot.slane %v2567_v32, 5  ;;  %v2573_v47 = vrot.slane %v2571_v33, 4 }
  0x31   : > { %v2540_v21 = vor.u32 %v2539_v11, %v2536_v10  ;;  %v2532_v36 = vsel %vm6554_vm4, %v2527_v25, %v2531_v7  ;;  %v2564_v46 = vor.u32 %v2563_v38, %v2560_v37  ;;  %v2582_v49 = vshrl.u32 %v5215_v29, 16 }
  0x32   : > { %v2517_v9 = vrot.slane %v2516_v0, 4  ;;  %v2585_v55 = vshll.u32 %v5215_v29, 16  ;;  %v2591_v56 = vshll.u32 %v5216_v35, 16  ;;  %v2595_v57 = vshrl.u32 %v5216_v35, 16  ;;  %v5224_v35 = vld [vmem:[%s6498_s30 + $0x210] sm:$0xf] }
  0x33   : > { %v2565_v60 = vrot.slane %v2564_v46, 4  ;;  %v2574_v61 = vor.u32 %v2573_v47, %v2569_v43  ;;  %v2584_v62 = vrot.slane %v2582_v49, 4  ;;  %v2601_v2 = vshll.u32 %v5217_v44, 16 }
  0x34   : > { %5727 = vmatmul.mubr.msk.bf16.gmra.mrb[16].mxu1 %vm412_vm1, %v6324_v23  ;;  %5881 = vmatmul.mubr.msk.bf16.vlgmr.msra.gmra.mrb[0].mxu0 %vm412_vm1, %v5244_v30  ;;  %v2522_v20 = vsel %vm6554_vm4, %v2517_v9, %v2521_v59  ;;  %v5214_v23 = vld [vmem:[%s6498_s30 + $0x1e8] sm:$0x1]  ;;  %v2541_v30 = vrot.slane %v2540_v21, 4  ;;  %v2593_v0 = vrot.slane %v2591_v56, 5  ;;  %v2597_v1 = vrot.slane %v2595_v57, 4 }
  0x35   : > { %5730 = vmatprep.mubr.msk.bf16.mxu1 %vm412_vm1, %v6325_v31  ;;  %5913 = vmatpush3.bf16.msra.mxu0 %v6535_v24  ;;  %v2508_v24 = vsel %vm6554_vm4, %v2503_v5, %v2507_v48  ;;  %v2550_v31 = vor.u32 %v2549_v22, %v2545_v15  ;;  %v2577_v39 = vshll.u32 %v5214_v23, 16  ;;  %v5247_v40 = vcombine.low %v2522_v20, %v2532_v36  ;;  %v5221_v9 = vld [vmem:[%s6498_s30 + $0x204] sm:$0xf] }
  0x36   : > { %5884 = vmatprep.mubr.msk.bf16.mxu0 %vm412_vm1, %v5245_v53  ;;  %6280 = vmatprep.subr.msk.bf16.mxu0 %vm461_vm0, %v6590_v52  ;;  %v5246_v18 = vcombine.low %v2498_v63, %v2508_v24  ;;  %v2546_v41 = vsel %vm6554_vm4, %v2541_v30, %v2545_v15  ;;  %v2587_v63 = vrot.slane %v2585_v55, 5  ;;  %v2570_v5 = vsel %vm6554_vm4, %v2565_v60, %v2569_v43  ;;  %v5222_v24 = vld [vmem:[%s6498_s30 + $0x208] sm:$0xf]  ;;  %v6330_v22 = vld [vmem:[%s6498_s30 + $0x180] sm:$0xff]  }
  0x37   : > { %v2551_v42 = vrot.slane %v2550_v31, 4  ;;  %v2579_v48 = vrot.slane %v2577_v39, 5  ;;  %v2575_v6 = vrot.slane %v2574_v61, 4  ;;  %v2606_v7 = vshrl.u32 %v5218_v50, 16  ;;  %v6331_v31 = vld [vmem:[%s6498_s30] sm:$0xff]  }
  0x38   : > { %v2609_v8 = vshll.u32 %v5218_v50, 16  ;;  %v2588_v10 = vor.u32 %v2587_v63, %v2584_v62  ;;  %v2598_v11 = vor.u32 %v2597_v1, %v2593_v0  ;;  %v2603_v12 = vrot.slane %v2601_v2, 5  ;;  %v5227_v50 = vld [vmem:[%s6498_s30 + $0x21c] sm:$0xf]  ;;  %v5228_v1 = vld [vmem:[%s6498_s30 + $0x220] sm:$0xf] }
  0x39   : > { %v2556_v53 = vsel %vm6554_vm4, %v2551_v42, %v2555_v26  ;;  %v2615_v13 = vshll.u32 %v5219_v58, 16  ;;  %v2580_v14 = vsel %vm6554_vm4, %v2575_v6, %v2579_v48  ;;  %v2608_v15 = vrot.slane %v2606_v7, 4  ;;  %v5229_v6 = vld [vmem:[%s6498_s30 + $0x224] sm:$0x1] }
  0x3a   : > { %v5248_v59 = vcombine.low %v2546_v41, %v2556_v53  ;;  %v2611_v16 = vrot.slane %v2609_v8, 5  ;;  %v2619_v17 = vshrl.u32 %v5219_v58, 16  ;;  %v2599_v20 = vrot.slane %v2598_v11, 4 }
  0x3b   : > { %v2617_v21 = vrot.slane %v2615_v13, 5  ;;  %v2630_v28 = vshrl.u32 %v5221_v9, 16  ;;  %v2633_v32 = vshll.u32 %v5221_v9, 16  ;;  %v2639_v33 = vshll.u32 %v5222_v24, 16 }
  0x3c   : > { %5731 = vmatmul.mubr.msk.bf16.gmra.mrb[20].mxu1 %vm412_vm1, %v6326_v4  ;;  %5885 = vmatmul.mubr.msk.bf16.gmra.mrb[4].mxu0 %vm412_vm1, %v5246_v18  ;;  %v5220_v4 = vld [vmem:[%s6498_s30 + $0x200] sm:$0x1]  ;;  %v5249_v18 = vcombine.low %v2570_v5, %v2580_v14  ;;  %v2612_v23 = vor.u32 %v2611_v16, %v2608_v15  ;;  %v2621_v25 = vrot.slane %v2619_v17, 4  ;;  %v2604_v30 = vsel %vm6554_vm4, %v2599_v20, %v2603_v12  ;;  %v6332_v12 = vld [vmem:[%s6498_s30 + $0xc] sm:$0xff]   ;;  %v5230_v16 = vld [vmem:[%s6498_s30 + $0x228] sm:$0xf] }
  0x3d   : > { %5734 = vmatprep.mubr.msk.bf16.mxu1 %vm412_vm1, %v6327_v19  ;;  %5888 = vmatprep.mubr.msk.bf16.mxu0 %vm412_vm1, %v5247_v40  ;;  %v2589_v19 = vrot.slane %v2588_v10, 4  ;;  %v2625_v26 = vshll.u32 %v5220_v4, 16  ;;  %v5225_v40 = vld [vmem:[%s6498_s30 + $0x214] sm:$0xf]  ;;  %v2632_v41 = vrot.slane %v2630_v28, 4  ;;  %v2635_v42 = vrot.slane %v2633_v32, 5 }
  0x3e   : > { %v2613_v37 = vrot.slane %v2612_v23, 4  ;;  %v2622_v38 = vor.u32 %v2621_v25, %v2617_v21  ;;  %v2641_v43 = vrot.slane %v2639_v33, 5  ;;  %v2643_v44 = vshrl.u32 %v5222_v24, 16  ;;  %v6333_v25 = vld [vmem:[%s6498_s30 + $0x18] sm:$0xff]  }
  0x3f   : > { %v2594_v29 = vsel %vm6554_vm4, %v2589_v19, %v2593_v0  ;;  %v2627_v39 = vrot.slane %v2625_v26, 5  ;;  %v2649_v48 = vshll.u32 %v5223_v27, 16  ;;  %v2654_v49 = vshrl.u32 %v5224_v35, 16 }
  0x40   : > { %v5250_v36 = vcombine.low %v2594_v29, %v2604_v30  ;;  %v2618_v46 = vsel %vm6554_vm4, %v2613_v37, %v2617_v21  ;;  %v2623_v47 = vrot.slane %v2622_v38, 4  ;;  %v2636_v53 = vor.u32 %v2635_v42, %v2632_v41  ;;  %v5231_v21 = vld [vmem:[%s6498_s30 + $0x22c] sm:$0xf]  ;;  %v5232_v29 = vld [vmem:[%s6498_s30 + $0x230] sm:$0x1] }
  0x41   : > { %v2657_v55 = vshll.u32 %v5224_v35, 16  ;;  %v2663_v56 = vshll.u32 %v5225_v40, 16  ;;  %v2651_v58 = vrot.slane %v2649_v48, 5  ;;  %v2667_v60 = vshrl.u32 %v5225_v40, 16 }
  0x42   : > { %v2628_v57 = vsel %vm6554_vm4, %v2623_v47, %v2627_v39  ;;  %v2637_v62 = vrot.slane %v2636_v53, 4  ;;  %v2678_v7 = vshrl.u32 %v5227_v50, 16  ;;  %v2681_v11 = vshll.u32 %v5227_v50, 16  ;;  %v5233_v39 = vld [vmem:[%s6498_s30 + $0x234] sm:$0xf] }
  0x43   : > { %v5251_v61 = vcombine.low %v2618_v46, %v2628_v57  ;;  %v2659_v0 = vrot.slane %v2657_v55, 5  ;;  %v2665_v2 = vrot.slane %v2663_v56, 5  ;;  %v2669_v4 = vrot.slane %v2667_v60, 4  ;;  %v6334_v55 = vld [vmem:[%s6498_s30 + $0x24] sm:$0xff]   ;;  %v5236_v60 = vld [vmem:[%s6498_s30 + $0x240] sm:$0xf] }
  0x44   : > { %5735 = vmatmul.mubr.msk.bf16.gmra.mrb[24].mxu1 %vm412_vm1, %v6328_v45  ;;  %5889 = vmatmul.mubr.msk.bf16.gmra.mrb[8].mxu0 %vm412_vm1, %v5248_v59  ;;  %v5226_v45 = vld [vmem:[%s6498_s30 + $0x218] sm:$0x1]  ;;  %v2656_v59 = vrot.slane %v2654_v49, 4  ;;  %v2642_v8 = vsel %vm6554_vm4, %v2637_v62, %v2641_v43  ;;  %v2680_v14 = vrot.slane %v2678_v7, 4  ;;  %v2687_v15 = vshll.u32 %v5228_v1, 16  ;;  %v6335_v62 = vld [vmem:[%s6498_s30 + $0x30] sm:$0xff]  }
  0x45   : > { %5738 = vmatprep.mubr.msk.bf16.mxu1 %vm412_vm1, %v6329_v54  ;;  %5892 = vmatprep.mubr.msk.bf16.mxu0 %vm412_vm1, %v5249_v18  ;;  %v2645_v54 = vrot.slane %v2643_v44, 4  ;;  %v2673_v5 = vshll.u32 %v5226_v45, 16  ;;  %v2670_v13 = vor.u32 %v2669_v4, %v2665_v2  ;;  %v2683_v19 = vrot.slane %v2681_v11, 5  ;;  %v5234_v44 = vld [vmem:[%s6498_s30 + $0x238] sm:$0xf] }
  0x46   : > { %v2660_v10 = vor.u32 %v2659_v0, %v2656_v59  ;;  %v2691_v20 = vshrl.u32 %v5228_v1, 16  ;;  %v2689_v27 = vrot.slane %v2687_v15, 5  ;;  %v2697_v28 = vshll.u32 %v5229_v6, 16  ;;  %v5235_v49 = vld [vmem:[%s6498_s30 + $0x23c] sm:$0x1] }
  0x47   : > { %v2646_v63 = vor.u32 %v2645_v54, %v2641_v43  ;;  %v2675_v24 = vrot.slane %v2673_v5, 5  ;;  %v2671_v26 = vrot.slane %v2670_v13, 4  ;;  %v2702_v33 = vshrl.u32 %v5230_v16, 16  ;;  %v5239_v13 = vld [vmem:[%s6498_s30 + $0x24c] sm:$0xf] }
  0x48   : > { %v2661_v18 = vrot.slane %v2660_v10, 4  ;;  %v2693_v32 = vrot.slane %v2691_v20, 4  ;;  %v2705_v37 = vshll.u32 %v5230_v16, 16  ;;  %v2711_v38 = vshll.u32 %v5231_v21, 16 }
  0x49   : > { %v2647_v9 = vrot.slane %v2646_v63, 4  ;;  %v2676_v35 = vsel %vm6554_vm4, %v2671_v26, %v2675_v24  ;;  %v2704_v43 = vrot.slane %v2702_v33, 4  ;;  %v2715_v47 = vshrl.u32 %v5231_v21, 16  ;;  %v6336_v33 = vld [vmem:[%s6498_s30 + $0x3c] sm:$0xff]  }
  0x4a   : > { %v2666_v30 = vsel %vm6554_vm4, %v2661_v18, %v2665_v2  ;;  %v2694_v42 = vor.u32 %v2693_v32, %v2689_v27  ;;  %v2707_v45 = vrot.slane %v2705_v37, 5  ;;  %v2713_v46 = vrot.slane %v2711_v38, 5  ;;  %v5237_v2 = vld [vmem:[%s6498_s30 + $0x244] sm:$0xf] }
  0x4b   : > { %v2652_v17 = vsel %vm6554_vm4, %v2647_v9, %v2651_v58  ;;  %v5253_v40 = vcombine.low %v2666_v30, %v2676_v35  ;;  %v2721_v48 = vshll.u32 %v5232_v29, 16  ;;  %v2726_v53 = vshrl.u32 %v5233_v39, 16 }
  0x4c   : > { %5739 = vmatmul.mubr.msk.bf16.gmra.mrb[28].mxu1 %vm412_vm1, %v6330_v22  ;;  %5893 = vmatmul.mubr.msk.bf16.gmra.mrb[12].mxu0 %vm412_vm1, %v5250_v36  ;;  %v6671_v22 = vld [vmem:[%s7501_s1 + $0xc] sm:$0xf]  ;;  %v5252_v23 = vcombine.low %v2642_v8, %v2652_v17  ;;  %v2699_v36 = vrot.slane %v2697_v28, 5  ;;  %v2695_v50 = vrot.slane %v2694_v42, 4  ;;  %v2729_v54 = vshll.u32 %v5233_v39, 16 }
  0x4d   : > { %5744 = vmatprep.mubr.msk.bf16.mxu1 %vm412_vm1, %v6331_v31  ;;  %5896 = vmatprep.mubr.msk.bf16.mxu0 %vm412_vm1, %v5251_v61  ;;  %v2684_v31 = vor.u32 %v2683_v19, %v2680_v14  ;;  %v2708_v56 = vor.u32 %v2707_v45, %v2704_v43  ;;  %v2717_v57 = vrot.slane %v2715_v47, 4  ;;  %v2723_v58 = vrot.slane %v2721_v48, 5  ;;  %v5238_v8 = vld [vmem:[%s6498_s30 + $0x248] sm:$0x1]  ;;  %v5240_v17 = vld [vmem:[%s6498_s30 + $0x250] sm:$0xf] }
  0x4e   : > { %v2735_v59 = vshll.u32 %v5234_v44, 16  ;;  %v2700_v61 = vsel %vm6554_vm4, %v2695_v50, %v2699_v36  ;;  %v2728_v63 = vrot.slane %v2726_v53, 4  ;;  %v2731_v0 = vrot.slane %v2729_v54, 5  ;;  %v5241_v28 = vld [vmem:[%s6498_s30 + $0x254] sm:$0x1] }
  0x4f   : > { %v2685_v41 = vrot.slane %v2684_v31, 4  ;;  %v2739_v1 = vshrl.u32 %v5234_v44, 16  ;;  %v2709_v5 = vrot.slane %v2708_v56, 4  ;;  %v2718_v6 = vor.u32 %v2717_v57, %v2713_v46 }
  0x50   : > { %v2737_v7 = vrot.slane %v2735_v59, 5  ;;  %v2732_v9 = vor.u32 %v2731_v0, %v2728_v63  ;;  %v2745_v11 = vshll.u32 %v5235_v49, 16  ;;  %v2753_v15 = vshll.u32 %v5236_v60, 16  ;;  %v6338_v59 = vld [vmem:[%s6498_s30 + $0x54] sm:$0xff]   ;;  %v6339_v63 = vld [vmem:[%s6498_s30 + $0x60] sm:$0xff]   ;;  %v6340_v0 = vld [vmem:[%s6498_s30 + $0xc] sm:$0xff]  }
  0x51   : > { %v2741_v10 = vrot.slane %v2739_v1, 4  ;;  %v2714_v24 = vsel %vm6554_vm4, %v2709_v5, %v2713_v46  ;;  %v2719_v14 = vrot.slane %v2718_v6, 4  ;;  %v2759_v16 = vshll.u32 %v5237_v2, 16  ;;  %v918_v5 = vld [vmem:[%s6498_s30] sm:$0xf] }
  0x52   : > { %v2733_v18 = vrot.slane %v2732_v9, 4  ;;  %v2747_v20 = vrot.slane %v2745_v11, 5  ;;  %v2769_v32 = vshll.u32 %v5238_v8, 16  ;;  %v2774_v37 = vshrl.u32 %v5239_v13, 16  ;;  %v919_v6 = vld [vmem:[%s6498_s30 + $0x4] sm:$0xf] }
  0x53   : > { %v2742_v19 = vor.u32 %v2741_v10, %v2737_v7  ;;  %v2761_v26 = vrot.slane %v2759_v16, 5  ;;  %v2777_v38 = vshll.u32 %v5239_v13, 16  ;;  %v2783_v42 = vshll.u32 %v5240_v17, 16  ;;  %v6341_v9 = vld [vmem:[%s6498_s30 + $0x6c] sm:$0xff]   ;;  %v6342_v13 = vld [vmem:[%s6498_s30 + $0x18] sm:$0xff]   ;;  %v6344_v16 = vld [vmem:[%s6498_s30 + $0x24] sm:$0xff]  }
  0x54   : > { %5745 = vmatmul.mubr.msk.bf16.vlgmr.msra.gmra.mrb[0].mxu1 %vm412_vm1, %v6332_v12  ;;  %5897 = vmatmul.mubr.msk.bf16.gmra.mrb[16].mxu0 %vm412_vm1, %v5252_v23  ;;  %v2750_v12 = vshrl.u32 %v5236_v60, 16  ;;  %v2724_v23 = vsel %vm6554_vm4, %v2719_v14, %v2723_v58  ;;  %v2738_v30 = vsel %vm6554_vm4, %v2733_v18, %v2737_v7  ;;  %v2787_v43 = vshrl.u32 %v5240_v17, 16  ;;  %v922_v14 = vld [vmem:[%s6498_s30 + $0x10] sm:$0xf]  ;;  %v920_v17 = vld [vmem:[%s6498_s30 + $0x8] sm:$0x1] }
  0x55   : > { %5777 = vmatpush3.bf16.msra.mxu1 %v6542_v34  ;;  %5748 = vmatprep.mubr.msk.bf16.mxu1 %vm412_vm1, %v6333_v25  ;;  %v2690_v34 = vsel %vm6554_vm4, %v2685_v41, %v2689_v27  ;;  %v2755_v25 = vrot.slane %v2753_v15, 5  ;;  %v2763_v27 = vshrl.u32 %v5237_v2, 16  ;;  %v5255_v29 = vcombine.low %v2714_v24, %v2724_v23  ;;  %v6343_v24 = vld [vmem:[%s6498_s30 + $0x78] sm:$0xff]  }
  0x56   : > { %6275 = vmatprep.subr.msk.bf16.mxu1 %vm461_vm0, %v6671_v22  ;;  %5900 = vmatprep.mubr.msk.bf16.mxu0 %vm412_vm1, %v5253_v40  ;;  %v5254_v4 = vcombine.low %v2690_v34, %v2700_v61  ;;  %v2752_v21 = vrot.slane %v2750_v12, 4  ;;  %v2743_v31 = vrot.slane %v2742_v19, 4  ;;  %v6337_v40 = vld [vmem:[%s6498_s30 + $0x48] sm:$0xff]   ;;  %v2771_v41 = vrot.slane %v2769_v32, 5 }
  0x57   : > { %v2765_v36 = vrot.slane %v2763_v27, 4  ;;  %v2776_v47 = vrot.slane %v2774_v37, 4  ;;  %v2779_v48 = vrot.slane %v2777_v38, 5  ;;  %v2785_v49 = vrot.slane %v2783_v42, 5  ;;  %v921_v12 = vld [vmem:[%s6498_s30 + $0xc] sm:$0xf] }
  0x58   : > { %v2756_v35 = vor.u32 %v2755_v25, %v2752_v21  ;;  %v2748_v39 = vsel %vm6554_vm4, %v2743_v31, %v2747_v20  ;;  %v2789_v34 = vrot.slane %v2787_v43, 4  ;;  %v2793_v50 = vshll.u32 %v5241_v28, 16  ;;  %v924_v28 = vld [vmem:[%s6498_s30 + $0x18] sm:$0xf]  ;;  %v6346_v43 = vld [vmem:[%s6498_s30 + $0x30] sm:$0xff]  }
  0x59   : > { %v5256_v44 = vcombine.low %v2738_v30, %v2748_v39  ;;  %v2766_v46 = vor.u32 %v2765_v36, %v2761_v26  ;;  %v970_v7 = vshrl.u32 %v918_v5, 16  ;;  %v973_v8 = vshll.u32 %v918_v5, 16  ;;  %v923_v30 = vld [vmem:[%s6498_s30 + $0x14] sm:$0x1]  ;;  %v927_v39 = vld [vmem:[%s6498_s30 + $0x24] sm:$0xf] }
  0x5a   : > { %v2757_v45 = vrot.slane %v2756_v35, 4  ;;  %v2790_v56 = vor.u32 %v2789_v34, %v2785_v49  ;;  %v2795_v57 = vrot.slane %v2793_v50, 5  ;;  %v979_v10 = vshll.u32 %v919_v6, 16 }
  0x5b   : > { %v2767_v54 = vrot.slane %v2766_v46, 4  ;;  %v983_v11 = vshrl.u32 %v919_v6, 16  ;;  %v3614_v15 = vsel %vm461_vm0, %v6590_v52, 0  ;;  %v972_v18 = vrot.slane %v970_v7, 4 }
  0x5c   : > { %5749 = vmatmul.mubr.msk.bf16.gmra.mrb[4].mxu1 %vm412_vm1, %v6334_v55  ;;  %5901 = vmatmul.mubr.msk.bf16.gmra.mrb[20].mxu0 %vm412_vm1, %v5254_v4  ;;  %v2762_v53 = vsel %vm6554_vm4, %v2757_v45, %v2761_v26  ;;  %v2780_v55 = vor.u32 %v2779_v48, %v2776_v47  ;;  %v975_v19 = vrot.slane %v973_v8, 5  ;;  %v994_v20 = vshrl.u32 %v921_v12, 16  ;;  %v6348_v45 = vld [vmem:[%s6498_s30 + $0x3c] sm:$0xff]  }
  0x5d   : > { %5752 = vmatprep.mubr.msk.bf16.mxu1 %vm412_vm1, %v6335_v62  ;;  %5904 = vmatprep.mubr.msk.bf16.mxu0 %vm412_vm1, %v5255_v29  ;;  %v2772_v58 = vsel %vm6554_vm4, %v2767_v54, %v2771_v41  ;;  %v2791_v62 = vrot.slane %v2790_v56, 4  ;;  %v997_v21 = vshll.u32 %v921_v12, 16  ;;  %v6745_v23 = vrot.slane %v979_v10, 5  ;;  %v6345_v29 = vld [vmem:[%s6498_s30 + $0x84] sm:$0xff]   ;;  %v930_v54 = vld [vmem:[%s6498_s30 + $0x30] sm:$0xf] }
  0x5e   : > { %v5257_v60 = vcombine.low %v2762_v53, %v2772_v58  ;;  %v2781_v61 = vrot.slane %v2780_v55, 4  ;;  %v985_v25 = vrot.slane %v983_v11, 4  ;;  %v1003_v26 = vshll.u32 %v922_v14, 16  ;;  %v929_v12 = vld [vmem:[%s6498_s30 + $0x2c] sm:$0x1] }
  0x5f   : > { %v2796_v2 = vsel %vm6554_vm4, %v2791_v62, %v2795_v57  ;;  %v1007_v27 = vshrl.u32 %v922_v14, 16  ;;  %v989_v52 = vshll.u32 %v920_v17, 16  ;;  %v996_v31 = vrot.slane %v994_v20, 4 }
  0x60   : > { %v2786_v1 = vsel %vm6554_vm4, %v2781_v61, %v2785_v49  ;;  %v999_v32 = vrot.slane %v997_v21, 5  ;;  %v976_v35 = vor.u32 %v975_v19, %v972_v18  ;;  %v986_v36 = vor.u32 %v985_v25, %v6745_v23  ;;  %v926_v61 = vld [vmem:[%s6498_s30 + $0x20] sm:$0x1]  ;;  %v931_v18 = vld [vmem:[%s6498_s30 + $0x34] sm:$0xf] }
  0x61   : > { %v5258_v4 = vcombine.low %v2786_v1, %v2796_v2  ;;  %v6756_v37 = vrot.slane %v1003_v26, 5  ;;  %v1009_v38 = vrot.slane %v1007_v27, 4  ;;  %v1018_v41 = vshrl.u32 %v924_v28, 16  ;;  %v932_v19 = vld [vmem:[%s6498_s30 + $0x38] sm:$0x1] }
  0x62   : > { %v1021_v42 = vshll.u32 %v924_v28, 16  ;;  %v6765_v46 = vsel %vm461_vm0, %v6671_v22, 0  ;;  %v1042_v49 = vshrl.u32 %v927_v39, 16  ;;  %v1045_v34 = vshll.u32 %v927_v39, 16  ;;  %v6352_v25 = vld [vmem:[%s6498_s30 + $0x54] sm:$0xff]  }
  0x63   : > { %v977_v55 = vrot.slane %v976_v35, 4  ;;  %v987_v56 = vrot.slane %v986_v36, 4  ;;  %v991_v57 = vrot.slane %v989_v52, 5  ;;  %v1013_v58 = vshll.u32 %v923_v30, 16  ;;  %v934_v36 = vld [vmem:[%s6498_s30 + $0x40] sm:$0xf] }
  0x64   : > { %5753 = vmatmul.mubr.msk.bf16.gmra.mrb[8].mxu1 %vm412_vm1, %v6336_v33  ;;  %5905 = vmatmul.mubr.msk.bf16.gmra.mrb[24].mxu0 %vm412_vm1, %v5256_v44  ;;  %v925_v33 = vld [vmem:[%s6498_s30 + $0x1c] sm:$0xf]  ;;  %v6347_v44 = vld [vmem:[%s6498_s30 + $0x90] sm:$0xff]   ;;  %v1020_v22 = vrot.slane %v1018_v41, 4  ;;  %v1023_v62 = vrot.slane %v1021_v42, 5  ;;  %v1066_v1 = vshrl.u32 %v930_v54, 16 }
  0x65   : > { %5756 = vmatprep.mubr.msk.bf16.mxu1 %vm412_vm1, %v6337_v40  ;;  %5908 = vmatprep.mubr.msk.bf16.mxu0 %vm412_vm1, %v5257_v60  ;;  %v928_v40 = vld [vmem:[%s6498_s30 + $0x28] sm:$0xf]  ;;  %v1027_v47 = vshll.u32 %v925_v33, 16  ;;  %v1031_v48 = vshrl.u32 %v925_v33, 16  ;;  %v1010_v60 = vor.u32 %v1009_v38, %v6756_v37  ;;  %v1069_v2 = vshll.u32 %v930_v54, 16 }
  0x66   : > { %v1051_v50 = vshll.u32 %v928_v40, 16  ;;  %v1055_v53 = vshrl.u32 %v928_v40, 16  ;;  %v1044_v5 = vrot.slane %v1042_v49, 4  ;;  %v1047_v6 = vrot.slane %v1045_v34, 5  ;;  %v935_v54 = vld [vmem:[%s6498_s30 + $0x44] sm:$0x1] }
  0x67   : > { %v6782_v10 = vrot.slane %v1013_v58, 5  ;;  %v1037_v11 = vshll.u32 %v926_v61, 16  ;;  %v992_v14 = vsel %vm6554_vm4, %v987_v56, %v991_v57  ;;  %v1024_v17 = vor.u32 %v1023_v62, %v1020_v22  ;;  %v6355_v57 = vld [vmem:[%s6498_s30 + $0x6c] sm:$0xff]  }
  0x68   : > { %v6777_v7 = vrot.slane %v1051_v50, 5  ;;  %v1057_v8 = vrot.slane %v1055_v53, 4  ;;  %v1068_v20 = vrot.slane %v1066_v1, 4  ;;  %v1071_v21 = vrot.slane %v1069_v2, 5  ;;  %v6354_v50 = vld [vmem:[%s6498_s30 + $0x60] sm:$0xff]  }
  0x69   : > { %v1048_v27 = vor.u32 %v1047_v6, %v1044_v5  ;;  %v1061_v28 = vshll.u32 %v929_v12, 16  ;;  %v6799_v30 = vrot.slane %v1037_v11, 5  ;;  %v1025_v33 = vrot.slane %v1024_v17, 4 }
  0x6a   : > { %v1058_v52 = vor.u32 %v1057_v8, %v6777_v7  ;;  %v1085_v35 = vshll.u32 %v932_v19, 16  ;;  %v1072_v42 = vor.u32 %v1071_v21, %v1068_v20  ;;  %v1103_v56 = vshrl.u32 %v934_v36, 16  ;;  %v939_v8 = vld [vmem:[%s6498_s30 + $0x54] sm:$0xf] }
  0x6b   : > { %v1063_v34 = vrot.slane %v1061_v28, 5  ;;  %v1141_v19 = vshll.u32 %v939_v8, 16  ;;  %v6356_v28 = vld [vmem:[%s6498_s30 + $0x78] sm:$0xff]  }
  0x6c   : > { %5757 = vmatmul.mubr.msk.bf16.gmra.mrb[12].mxu1 %vm412_vm1, %v6338_v59  ;;  %5909 = vmatmul.mubr.msk.bf16.gmra.mrb[28].mxu0 %vm412_vm1, %v5258_v4  ;;  %v1000_v59 = vor.u32 %v999_v32, %v996_v31  ;;  %v6349_v4 = vld [vmem:[%s6498_s30 + $0x9c] sm:$0xff]   ;;  %v1075_v31 = vshll.u32 %v931_v18, 16  ;;  %v1079_v32 = vshrl.u32 %v931_v18, 16  ;;  %v1059_v49 = vrot.slane %v1058_v52, 4 }
  0x6d   : > { %5760 = vmatprep.mubr.msk.bf16.mxu1 %vm412_vm1, %v6339_v63  ;;  %5914 = vmatprep.mubr.msk.bf16.mxu0 %vm412_vm1, %v6340_v0  ;;  %v6773_v63 = vrot.slane %v1027_v47, 5  ;;  %v1033_v0 = vrot.slane %v1031_v48, 4  ;;  %v1049_v48 = vrot.slane %v1048_v27, 4  ;;  %v6822_v22 = vrot.slane %v1072_v42, 4  ;;  %v945_v42 = vld [vmem:[%s6498_s30 + $0x6c] sm:$0xf] }
  0x6e   : > { %v6818_v53 = vrot.slane %v1075_v31, 5  ;;  %v6824_v62 = vrot.slane %v1085_v35, 5  ;;  %v1064_v6 = vsel %vm6554_vm4, %v1059_v49, %v1063_v34  ;;  %v1105_v12 = vrot.slane %v1103_v56, 4 }
  0x6f   : > { %v1034_v26 = vor.u32 %v1033_v0, %v6773_v63  ;;  %v1030_v2 = vsel %vm6554_vm4, %v1025_v33, %v6773_v63  ;;  %v1054_v5 = vsel %vm6554_vm4, %v1049_v48, %v6777_v7  ;;  %v938_v7 = vld [vmem:[%s6498_s30 + $0x50] sm:$0x1]  ;;  %v1138_v18 = vshrl.u32 %v939_v8, 16  ;;  %v6357_v33 = vld [vmem:[%s6498_s30 + $0x84] sm:$0xff]  }
  0x70   : > { %v1189_v56 = vshll.u32 %v945_v42, 16 }
  0x71   : > { %v1035_v47 = vrot.slane %v1034_v26, 4 }
  0x74   : > { %5761 = vmatmul.mubr.msk.bf16.gmra.mrb[16].mxu1 %vm412_vm1, %v6341_v9  ;;  %5915 = vmatmul.mubr.msk.bf16.vlgmr.msra.gmra.mrb[0].mxu0 %vm412_vm1, %v6342_v13  ;;  %v982_v9 = vsel %vm6554_vm4, %v977_v55, %v6745_v23  ;;  %v6350_v13 = vld [vmem:[%s6498_s30 + $0x48] sm:$0xff]   ;;  %v933_v23 = vld [vmem:[%s6498_s30 + $0x3c] sm:$0xf]  ;;  %v1099_v55 = vshll.u32 %v934_v36, 16  ;;  %v1133_v36 = vshll.u32 %v938_v7, 16 }
  0x75   : > { %5764 = vmatprep.mubr.msk.bf16.mxu1 %vm412_vm1, %v6343_v24  ;;  %5947 = vmatpush3.bf16.msra.mxu0 %v3614_v15  ;;  %v6351_v24 = vld [vmem:[%s6498_s30 + $0xa8] sm:$0xff]   ;;  %v6789_v15 = vrot.slane %v1000_v59, 4  ;;  %v1090_v38 = vshrl.u32 %v933_v23, 16  ;;  %v1093_v39 = vshll.u32 %v933_v23, 16  ;;  %v943_v23 = vld [vmem:[%s6498_s30 + $0x64] sm:$0xf] }
  0x76   : > { %5918 = vmatprep.mubr.msk.bf16.mxu0 %vm412_vm1, %v6344_v16  ;;  %v6791_v16 = vrot.slane %v1010_v60, 4  ;;  %v6845_v11 = vrot.slane %v1099_v55, 5  ;;  %v1186_v55 = vshrl.u32 %v945_v42, 16  ;;  %v6359_v7 = vld [vmem:[%s6498_s30 + $0x9c] sm:$0xff]  }
  0x77   : > { %v1006_v40 = vsel %vm6554_vm4, %v6789_v15, %v6756_v37  ;;  %v1081_v37 = vrot.slane %v1079_v32, 4  ;;  %v1092_v0 = vrot.slane %v1090_v38, 4  ;;  %v1095_v1 = vrot.slane %v1093_v39, 5 }
  0x78   : > { %v1016_v41 = vsel %vm6554_vm4, %v6791_v16, %v6782_v10  ;;  %v6842_v10 = vld [vmem:[%s7501_s1 + $0x20] sm:$0xf]  ;;  %v1171_v38 = vshll.u32 %v943_v23, 16  ;;  %v1175_v39 = vshrl.u32 %v943_v23, 16  ;;  %v1188_v8 = vrot.slane %v1186_v55, 4 }
  0x79   : > { %v1082_v63 = vor.u32 %v1081_v37, %v6818_v53  ;;  %6281 = vmatprep.subr.msk.bf16.mxu0 %vm461_vm0, %v6842_v10  ;;  %v1096_v32 = vor.u32 %v1095_v1, %v1092_v0  ;;  %v1135_v1 = vrot.slane %v1133_v36, 5  ;;  %v952_v36 = vld [vmem:[%s6498_s30 + $0x88] sm:$0xf] }
  0x7b   : > { %v1083_v31 = vrot.slane %v1082_v63, 4 }
  0x7c   : > { %5765 = vmatmul.mubr.msk.bf16.gmra.mrb[20].mxu1 %vm412_vm1, %v6345_v29  ;;  %5919 = vmatmul.mubr.msk.bf16.gmra.mrb[4].mxu0 %vm412_vm1, %v6346_v43  ;;  %v5032_v29 = vcombine.low %v982_v9, %v992_v14  ;;  %v936_v43 = vld [vmem:[%s6498_s30 + $0x48] sm:$0xf]  ;;  %v940_v9 = vld [vmem:[%s6498_s30 + $0x58] sm:$0xf] }
  0x7d   : > { %5768 = vmatprep.mubr.msk.bf16.mxu1 %vm412_vm1, %v6347_v44  ;;  %5922 = vmatprep.mubr.msk.bf16.mxu0 %vm412_vm1, %v6348_v45  ;;  %v937_v44 = vld [vmem:[%s6498_s30 + $0x4c] sm:$0xf]  ;;  %v6353_v45 = vld [vmem:[%s6498_s30 + $0xb4] sm:$0xff]   ;;  %v1114_v58 = vshrl.u32 %v936_v43, 16  ;;  %v1117_v59 = vshll.u32 %v936_v43, 16  ;;  %v1147_v20 = vshll.u32 %v940_v9, 16 }
  0x7e   : > { %v1123_v60 = vshll.u32 %v937_v44, 16  ;;  %v1127_v61 = vshrl.u32 %v937_v44, 16  ;;  %v1151_v21 = vshrl.u32 %v940_v9, 16  ;;  %v941_v43 = vld [vmem:[%s6498_s30 + $0x5c] sm:$0x1]  ;;  %v1140_v44 = vrot.slane %v1138_v18, 4 }
  0x7f   : > { %v1116_v14 = vrot.slane %v1114_v58, 4  ;;  %v1119_v15 = vrot.slane %v1117_v59, 5  ;;  %v1088_v58 = vsel %vm6554_vm4, %v1083_v31, %v6824_v62  ;;  %v6879_v59 = vrot.slane %v1171_v38, 5  ;;  %v947_v18 = vld [vmem:[%s6498_s30 + $0x74] sm:$0x1] }
  0x80   : > { %v6852_v16 = vrot.slane %v1123_v60, 5  ;;  %v1129_v17 = vrot.slane %v1127_v61, 4  ;;  %v1153_v48 = vrot.slane %v1151_v21, 4  ;;  %v1177_v60 = vrot.slane %v1175_v39, 4  ;;  %v946_v61 = vld [vmem:[%s6498_s30 + $0x70] sm:$0xf] }
  0x81   : > { %v1191_v9 = vrot.slane %v1189_v56, 5  ;;  %v1195_v63 = vshll.u32 %v946_v61, 16  ;;  %v951_v31 = vld [vmem:[%s6498_s30 + $0x84] sm:$0xf]  ;;  %v1205_v38 = vshll.u32 %v947_v18, 16  ;;  %v6938_v56 = vsel %vm461_vm0, %v6842_v10, 0 }
  0x84   : > { %5769 = vmatmul.mubr.msk.bf16.gmra.mrb[24].mxu1 %vm412_vm1, %v6349_v4  ;;  %5923 = vmatmul.mubr.msk.bf16.gmra.mrb[8].mxu0 %vm412_vm1, %v6350_v13  ;;  %v1040_v4 = vsel %vm6554_vm4, %v1035_v47, %v6799_v30  ;;  %v1109_v13 = vshll.u32 %v935_v54, 16  ;;  %v6859_v30 = vcombine.low %v1054_v5, %v1064_v6  ;;  %v6868_v47 = vrot.slane %v1147_v20, 5  ;;  %v944_v54 = vld [vmem:[%s6498_s30 + $0x68] sm:$0x1]  ;;  %v948_v6 = vld [vmem:[%s6498_s30 + $0x78] sm:$0xf] }
  0x85   : > { %5772 = vmatprep.mubr.msk.bf16.mxu1 %vm412_vm1, %v6351_v24  ;;  %5926 = vmatprep.mubr.msk.bf16.mxu0 %vm412_vm1, %v6352_v25  ;;  %v942_v24 = vld [vmem:[%s6498_s30 + $0x60] sm:$0xf]  ;;  %v5033_v25 = vcombine.low %v1006_v40, %v1016_v41  ;;  %v5034_v26 = vcombine.low %v1030_v2, %v1040_v4  ;;  %v1120_v40 = vor.u32 %v1119_v15, %v1116_v14  ;;  %v1157_v4 = vshll.u32 %v941_v43, 16 }
  0x86   : > { %v1162_v27 = vshrl.u32 %v942_v24, 16  ;;  %v1165_v52 = vshll.u32 %v942_v24, 16  ;;  %v6863_v35 = vrot.slane %v1109_v13, 5  ;;  %v1130_v41 = vor.u32 %v1129_v17, %v6852_v16  ;;  %v6403_v13 = vld [vmem:[%s7501_s1 + $0x10] sm:$0xf] }
  0x87   : > { %v1121_v0 = vrot.slane %v1120_v40, 4  ;;  %v1181_v5 = vshll.u32 %v944_v54, 16  ;;  %v1178_v17 = vor.u32 %v1177_v60, %v6879_v59  ;;  %v6905_v21 = vrot.slane %v1157_v4, 5  ;;  %v954_v40 = vld [vmem:[%s6498_s30 + $0x90] sm:$0xf] }
  0x88   : > { %v1164_v49 = vrot.slane %v1162_v27, 4  ;;  %v1167_v34 = vrot.slane %v1165_v52, 5  ;;  %v1210_v23 = vshrl.u32 %v948_v6, 16 }
  0x89   : > { %v6914_v52 = vrot.slane %v1181_v5, 5 }
  0x8a   : > { %v1168_v62 = vor.u32 %v1167_v34, %v1164_v49  ;;  %v1243_v49 = vshll.u32 %v952_v36, 16  ;;  %v1247_v34 = vshrl.u32 %v952_v36, 16 }
  0x8c   : > { %5773 = vmatmul.mubr.msk.bf16.gmra.mrb[28].mxu1 %vm412_vm1, %v6353_v45  ;;  %5927 = vmatmul.mubr.msk.bf16.gmra.mrb[12].mxu0 %vm412_vm1, %v6354_v50  ;;  %v1143_v45 = vrot.slane %v1141_v19, 5  ;;  %v1097_v50 = vrot.slane %v1096_v32, 4  ;;  %v949_v19 = vld [vmem:[%s6498_s30 + $0x7c] sm:$0xf]  ;;  %v6918_v32 = vrot.slane %v1168_v62, 4  ;;  %v1249_v10 = vrot.slane %v1247_v34, 4 }
  0x8d   : > { %5778 = vmatprep.mubr.msk.bf16.mxu1 %vm412_vm1, %v5032_v29  ;;  %5930 = vmatprep.mubr.msk.bf16.mxu0 %vm412_vm1, %v6355_v57  ;;  %v1106_v29 = vor.u32 %v1105_v12, %v6845_v11  ;;  %v1078_v57 = vsel %vm6554_vm4, %v6822_v22, %v6818_v53  ;;  %v1131_v53 = vrot.slane %v1130_v41, 4  ;;  %v1154_v22 = vor.u32 %v1153_v48, %v6868_v47  ;;  %v953_v62 = vld [vmem:[%s6498_s30 + $0x8c] sm:$0x1]  ;;  %v963_v34 = vld [vmem:[%s6498_s30 + $0xb4] sm:$0xf] }
  0x8e   : > { %v1144_v2 = vor.u32 %v1143_v45, %v1140_v44  ;;  %v1199_v12 = vshrl.u32 %v946_v61, 16  ;;  %v5036_v24 = vcombine.low %v1078_v57, %v1088_v58  ;;  %v1102_v14 = vsel %vm6554_vm4, %v1097_v50, %v6845_v11  ;;  %v955_v50 = vld [vmem:[%s6498_s30 + $0x94] sm:$0xf] }
  0x8f   : > { %v1107_v37 = vrot.slane %v1106_v29, 4  ;;  %v1136_v11 = vsel %vm6554_vm4, %v1131_v53, %v1135_v1  ;;  %v6912_v27 = vrot.slane %v1154_v22, 4  ;;  %v1192_v29 = vor.u32 %v1191_v9, %v1188_v8  ;;  %v6361_v1 = vld [vmem:[%s6498_s30 + $0xb4] sm:$0xff]  }
  0x90   : > { %v6903_v20 = vrot.slane %v1144_v2, 4  ;;  %v1219_v39 = vshll.u32 %v949_v19, 16  ;;  %v1223_v42 = vshrl.u32 %v949_v19, 16  ;;  %v1212_v44 = vrot.slane %v1210_v23, 4 }
  0x91   : > { %v1112_v15 = vsel %vm6554_vm4, %v1107_v37, %v6863_v35  ;;  %v1201_v35 = vrot.slane %v1199_v12, 4  ;;  %v1237_v48 = vshll.u32 %v951_v31, 16  ;;  %v6360_v37 = vld [vmem:[%s6498_s30 + $0xa8] sm:$0xff]   ;;  %v6933_v54 = vrot.slane %v1192_v29, 4  ;;  %v956_v12 = vld [vmem:[%s6498_s30 + $0x98] sm:$0x1] }
  0x92   : > { %v5037_v41 = vcombine.low %v1102_v14, %v1112_v15  ;;  %v6940_v58 = vrot.slane %v1219_v39, 5  ;;  %v1225_v60 = vrot.slane %v1223_v42, 4  ;;  %v1258_v61 = vshrl.u32 %v954_v40, 16 }
  0x93   : > { %v6943_v2 = vrot.slane %v1205_v38, 5  ;;  %v1267_v53 = vshll.u32 %v955_v50, 16  ;;  %v1271_v22 = vshrl.u32 %v955_v50, 16  ;;  %v1150_v8 = vsel %vm6554_vm4, %v6903_v20, %v6868_v47  ;;  %v958_v20 = vld [vmem:[%s6498_s30 + $0xa0] sm:$0xf] }
  0x94   : > { %5779 = vmatmul.mubr.msk.bf16.vlgmr.msra.gmra.mrb[0].mxu1 %vm412_vm1, %v5033_v25  ;;  %5931 = vmatmul.mubr.msk.bf16.gmra.mrb[16].mxu0 %vm412_vm1, %v6356_v28  ;;  %v1213_v25 = vshll.u32 %v948_v6, 16  ;;  %v950_v28 = vld [vmem:[%s6498_s30 + $0x80] sm:$0x1]  ;;  %v1239_v6 = vrot.slane %v1237_v48, 5  ;;  %v1260_v14 = vrot.slane %v1258_v61, 4  ;;  %v1174_v15 = vsel %vm6554_vm4, %v6918_v32, %v6879_v59 }
  0x95   : > { %5811 = vmatpush3.bf16.msra.mxu1 %v6765_v46  ;;  %5782 = vmatprep.mubr.msk.bf16.mxu1 %vm412_vm1, %v5034_v26  ;;  %v6358_v46 = vld [vmem:[%s6498_s30 + $0x90] sm:$0xff]   ;;  %v1126_v26 = vsel %vm6554_vm4, %v1121_v0, %v6852_v16  ;;  %v6925_v16 = vrot.slane %v1178_v17, 4  ;;  %v1229_v57 = vshll.u32 %v950_v28, 16  ;;  %v1261_v0 = vshll.u32 %v954_v40, 16  ;;  %v6362_v59 = vld [vmem:[%s6498_s30 + $0xc0] sm:$0xff]  }
  0x96   : > { %5934 = vmatprep.mubr.msk.bf16.mxu0 %vm412_vm1, %v6357_v33  ;;  %6277 = vmatprep.subr.msk.bf16.mxu1 %vm461_vm0, %v6403_v13  ;;  %v6920_v33 = vrot.slane %v1195_v63, 5  ;;  %v5038_v43 = vcombine.low %v1126_v26, %v1136_v11  ;;  %v1215_v45 = vrot.slane %v1213_v25, 5  ;;  %v957_v13 = vld [vmem:[%s6498_s30 + $0x9c] sm:$0xf]  ;;  %v6974_v18 = vrot.slane %v1267_v53, 5 }
  0x97   : > { %v6954_v63 = vrot.slane %v1229_v57, 5  ;;  %v1263_v47 = vrot.slane %v1261_v0, 5  ;;  %v1184_v17 = vsel %vm6554_vm4, %v6925_v16, %v6914_v52  ;;  %v1273_v19 = vrot.slane %v1271_v22, 4  ;;  %v960_v11 = vld [vmem:[%s6498_s30 + $0xa8] sm:$0xf] }
  0x98   : > { %v1202_v55 = vor.u32 %v1201_v35, %v6920_v33  ;;  %v1216_v4 = vor.u32 %v1215_v45, %v1212_v44  ;;  %v1253_v26 = vshll.u32 %v953_v62, 16  ;;  %v961_v28 = vld [vmem:[%s6498_s30 + $0xac] sm:$0xf]  ;;  %v1277_v52 = vshll.u32 %v956_v12, 16  ;;  %v959_v38 = vld [vmem:[%s6498_s30 + $0xa4] sm:$0x1] }
  0x99   : > { %v1264_v29 = vor.u32 %v1263_v47, %v1260_v14  ;;  %v1282_v35 = vshrl.u32 %v957_v13, 16  ;;  %v5040_v36 = vcombine.low %v1174_v15, %v1184_v17  ;;  %v1274_v16 = vor.u32 %v1273_v19, %v6974_v18  ;;  %v964_v53 = vld [vmem:[%s6498_s30 + $0xb8] sm:$0xf]  ;;  %v6364_v22 = vld [vmem:[%s6498_s30 + $0xe4] sm:$0xff]  }
  0x9a   : > { %v6952_v9 = vrot.slane %v1202_v55, 4  ;;  %v1285_v39 = vshll.u32 %v957_v13, 16  ;;  %v1291_v42 = vshll.u32 %v958_v20, 16  ;;  %v1295_v44 = vshrl.u32 %v958_v20, 16  ;;  %v962_v13 = vld [vmem:[%s6498_s30 + $0xb0] sm:$0x1] }
  0x9b   : > { %v1198_v45 = vsel %vm6554_vm4, %v6933_v54, %v6920_v33  ;;  %v1306_v48 = vshrl.u32 %v960_v11, 16  ;;  %v1265_v50 = vrot.slane %v1264_v29, 4  ;;  %v1284_v55 = vrot.slane %v1282_v35, 4 }
  0x9c   : > { %5783 = vmatmul.mubr.msk.bf16.gmra.mrb[4].mxu1 %vm412_vm1, %v6859_v30  ;;  %5935 = vmatmul.mubr.msk.bf16.gmra.mrb[20].mxu0 %vm412_vm1, %v6358_v46  ;;  %v1234_v30 = vshrl.u32 %v951_v31, 16  ;;  %v6946_v46 = vrot.slane %v1243_v49, 5  ;;  %v6363_v31 = vld [vmem:[%s6498_s30 + $0xd8] sm:$0xff]   ;;  %v1309_v49 = vshll.u32 %v960_v11, 16  ;;  %v1315_v57 = vshll.u32 %v961_v28, 16 }
  0x9d   : > { %5786 = vmatprep.mubr.msk.bf16.mxu1 %vm412_vm1, %v5036_v24  ;;  %5938 = vmatprep.mubr.msk.bf16.mxu0 %vm412_vm1, %v6359_v7  ;;  %v1160_v24 = vsel %vm6554_vm4, %v6912_v27, %v6905_v21  ;;  %v1226_v7 = vor.u32 %v1225_v60, %v6940_v58  ;;  %v1217_v21 = vrot.slane %v1216_v4, 4  ;;  %v1275_v33 = vrot.slane %v1274_v16, 4  ;;  %v965_v16 = vld [vmem:[%s6498_s30 + $0xbc] sm:$0x1] }
  0x9e   : > { %v1236_v5 = vrot.slane %v1234_v30, 4  ;;  %v1250_v25 = vor.u32 %v1249_v10, %v6946_v46  ;;  %v5039_v27 = vcombine.low %v1150_v8, %v1160_v24  ;;  %v1208_v30 = vsel %vm6554_vm4, %v6952_v9, %v6943_v2  ;;  %v6365_v10 = vld [vmem:[%s6498_s30 + $0xf0] sm:$0xff]  }
  0x9f   : > { %v1227_v32 = vrot.slane %v1226_v7, 4  ;;  %v1287_v54 = vrot.slane %v1285_v39, 5  ;;  %v1293_v60 = vrot.slane %v1291_v42, 5  ;;  %v1319_v61 = vshrl.u32 %v961_v28, 16 }
  0xa0   : > { %v1240_v23 = vor.u32 %v1239_v6, %v1236_v5  ;;  %v1222_v0 = vsel %vm6554_vm4, %v1217_v21, %v6940_v58  ;;  %v1297_v2 = vrot.slane %v1295_v44, 4  ;;  %v1301_v4 = vshll.u32 %v959_v38, 16 }
  0xa1   : > { %v1308_v62 = vrot.slane %v1306_v48, 4  ;;  %v1311_v5 = vrot.slane %v1309_v49, 5  ;;  %v5041_v6 = vcombine.low %v1198_v45, %v1208_v30  ;;  %v1317_v8 = vrot.slane %v1315_v57, 5  ;;  %v6368_v30 = vld [vmem:[%s6498_s30 + $0x114] sm:$0xff]  }
  0xa2   : > { %v1241_v40 = vrot.slane %v1240_v23, 4  ;;  %v1330_v9 = vshrl.u32 %v963_v34, 16  ;;  %v1321_v24 = vrot.slane %v1319_v61, 4  ;;  %v1333_v7 = vshll.u32 %v963_v34, 16  ;;  %v6372_v61 = vld [vmem:[%s6498_s30 + $0x138] sm:$0xff]  }
  0xa3   : > { %v1339_v14 = vshll.u32 %v964_v53, 16  ;;  %v1343_v58 = vshrl.u32 %v964_v53, 16  ;;  %v1288_v15 = vor.u32 %v1287_v54, %v1284_v55  ;;  %v1298_v17 = vor.u32 %v1297_v2, %v1293_v60  ;;  %v6370_v54 = vld [vmem:[%s6498_s30 + $0x12c] sm:$0xff]   ;;  %v6373_v2 = vld [vmem:[%s6498_s30 + $0x1a4] sm:$0xff]   ;;  %v5408_v53 = vld [vmem:[%s6498_s30 + $0x18] sm:$0xf] }
  0xa4   : > { %5787 = vmatmul.mubr.msk.bf16.gmra.mrb[8].mxu1 %vm412_vm1, %v5037_v41  ;;  %5939 = vmatmul.mubr.msk.bf16.gmra.mrb[24].mxu0 %vm412_vm1, %v6360_v37  ;;  %v1251_v41 = vrot.slane %v1250_v25, 4  ;;  %v1279_v37 = vrot.slane %v1277_v52, 5  ;;  %v1270_v19 = vsel %vm6554_vm4, %v1265_v50, %v6974_v18  ;;  %v1322_v21 = vor.u32 %v1321_v24, %v1317_v8  ;;  %v6367_v52 = vld [vmem:[%s6498_s30 + $0x108] sm:$0xff]  }
  0xa5   : > { %5790 = vmatprep.mubr.msk.bf16.mxu1 %vm412_vm1, %v5038_v43  ;;  %5942 = vmatprep.mubr.msk.bf16.mxu0 %vm412_vm1, %v6361_v1  ;;  %v1255_v43 = vrot.slane %v1253_v26, 5  ;;  %v1232_v1 = vsel %vm6554_vm4, %v1227_v32, %v6954_v63  ;;  %v1246_v63 = vsel %vm6554_vm4, %v1241_v40, %v6946_v46  ;;  %v1312_v46 = vor.u32 %v1311_v5, %v1308_v62  ;;  %v6366_v26 = vld [vmem:[%s6498_s30 + $0xfc] sm:$0xff]  }
  0xa6   : > { %v5042_v12 = vcombine.low %v1222_v0, %v1232_v1  ;;  %v1280_v20 = vsel %vm6554_vm4, %v1275_v33, %v1279_v37  ;;  %v1325_v23 = vshll.u32 %v962_v13, 16  ;;  %v1303_v28 = vrot.slane %v1301_v4, 5  ;;  %v6369_v37 = vld [vmem:[%s6498_s30 + $0x120] sm:$0xff]   ;;  %v5405_v0 = vld [vmem:[%s6498_s30 + $0xc] sm:$0xf] }
  0xa7   : > { %v1256_v47 = vsel %vm6554_vm4, %v1251_v41, %v1255_v43  ;;  %v5044_v11 = vcombine.low %v1270_v19, %v1280_v20  ;;  %v1335_v18 = vrot.slane %v1333_v7, 5  ;;  %v1341_v32 = vrot.slane %v1339_v14, 5  ;;  %v5406_v1 = vld [vmem:[%s6498_s30 + $0x10] sm:$0xf]  ;;  %v6374_v4 = vld [vmem:[%s6498_s30 + $0x144] sm:$0xff]  }
  0xa8   : > { %v5043_v25 = vcombine.low %v1246_v63, %v1256_v47  ;;  %v1345_v29 = vrot.slane %v1343_v58, 4  ;;  %v1313_v35 = vrot.slane %v1312_v46, 4  ;;  %v1349_v41 = vshll.u32 %v965_v16, 16  ;;  %v5411_v58 = vld [vmem:[%s6498_s30 + $0x24] sm:$0xf]  ;;  %v6377_v46 = vld [vmem:[%s6498_s30 + $0x1bc] sm:$0xff]  }
  0xa9   : > { %v3861_v62 = vshll.u32 %v5405_v0, 16  ;;  %v3867_v5 = vshll.u32 %v5406_v1, 16  ;;  %v3882_v13 = vshrl.u32 %v5408_v53, 16  ;;  %v3885_v24 = vshll.u32 %v5408_v53, 16  ;;  %v5412_v19 = vld [vmem:[%s6498_s30 + $0x28] sm:$0xf] }
  0xaa   : > { %v1346_v40 = vor.u32 %v1345_v29, %v1341_v32  ;;  %v1318_v43 = vsel %vm6554_vm4, %v1313_v35, %v1317_v8  ;;  %v1351_v50 = vrot.slane %v1349_v41, 5  ;;  %v6375_v8 = vld [vmem:[%s6498_s30 + $0x1b0] sm:$0xff]   ;;  %v5413_v41 = vld [vmem:[%s6498_s30 + $0x2c] sm:$0x1]  ;;  %v5418_v53 = vld [vmem:[%s6498_s30 + $0x40] sm:$0xf] }
  0xab   : > { %v3863_v47 = vrot.slane %v3861_v62, 5  ;;  %v5414_v35 = vld [vmem:[%s6498_s30 + $0x30] sm:$0xf] }
  0xac   : > { %5791 = vmatmul.mubr.msk.bf16.gmra.mrb[12].mxu1 %vm412_vm1, %v5039_v27  ;;  %5943 = vmatmul.mubr.msk.bf16.gmra.mrb[28].mxu0 %vm412_vm1, %v6362_v59  ;;  %v1289_v27 = vrot.slane %v1288_v15, 4  ;;  %v1299_v59 = vrot.slane %v1298_v17, 4  ;;  %v1347_v34 = vrot.slane %v1346_v40, 4  ;;  %v7068_v15 = vrot.slane %v3867_v5, 5  ;;  %v5416_v5 = vld [vmem:[%s6498_s30 + $0x38] sm:$0x1] }
  0xad   : > { %5794 = vmatprep.mubr.msk.bf16.mxu1 %vm412_vm1, %v5040_v36  ;;  %5948 = vmatprep.mubr.msk.bf16.mxu0 %vm412_vm1, %v6363_v31  ;;  %v1332_v31 = vrot.slane %v1330_v9, 4  ;;  %v1327_v36 = vrot.slane %v1325_v23, 5  ;;  %v6376_v9 = vld [vmem:[%s6498_s30 + $0x150] sm:$0xff]   ;;  %v3906_v23 = vshrl.u32 %v5411_v58, 16 }
  0xae   : > { %v1294_v38 = vsel %vm6554_vm4, %v1289_v27, %v1293_v60  ;;  %v1304_v39 = vsel %vm6554_vm4, %v1299_v59, %v1303_v28  ;;  %v1352_v57 = vsel %vm6554_vm4, %v1347_v34, %v1351_v50  ;;  %v6371_v60 = vld [vmem:[%s6498_s30 + $0x198] sm:$0xff]   ;;  %v3915_v59 = vshll.u32 %v5412_v19, 16 }
  0xaf   : > { %v1336_v42 = vor.u32 %v1335_v18, %v1332_v31  ;;  %v5045_v45 = vcombine.low %v1294_v38, %v1304_v39  ;;  %v3919_v28 = vshrl.u32 %v5412_v19, 16  ;;  %v6378_v31 = vld [vmem:[%s6498_s30 + $0x15c] sm:$0xff]   ;;  %v6379_v18 = vld [vmem:[%s6498_s30 + $0x1c8] sm:$0xff]   ;;  %v3908_v16 = vrot.slane %v3906_v23, 4  ;;  %v5415_v39 = vld [vmem:[%s6498_s30 + $0x34] sm:$0xf] }
  0xb0   : > { %v6381_v34 = vld [vmem:[%s6498_s30 + $0x1d4] sm:$0xff]   ;;  %v3939_v50 = vshll.u32 %v5415_v39, 16 }
  0xb1   : > { %v1337_v49 = vrot.slane %v1336_v42, 4 }
  0xb3   : > { %v1342_v55 = vsel %vm6554_vm4, %v1337_v49, %v1341_v32  ;;  %v3933_v49 = vshll.u32 %v5414_v35, 16 }
  0xb4   : > { %5795 = vmatmul.mubr.msk.bf16.gmra.mrb[16].mxu1 %vm412_vm1, %v5041_v6  ;;  %5949 = vmatmul.mubr.msk.bf16.vlgmr.msra.gmra.mrb[0].mxu0 %vm412_vm1, %v6364_v22  ;;  %v5047_v33 = vcombine.low %v1342_v55, %v1352_v57  ;;  %v3858_v22 = vshrl.u32 %v5405_v0, 16  ;;  %v3871_v6 = vshrl.u32 %v5406_v1, 16  ;;  %v6382_v55 = vld [vmem:[%s6498_s30 + $0x174] sm:$0xff]   ;;  %v6383_v57 = vld [vmem:[%s6498_s30 + $0x1e0] sm:$0xff]  }
  0xb5   : > { %5798 = vmatprep.mubr.msk.bf16.mxu1 %vm412_vm1, %v5042_v12  ;;  %5981 = vmatpush3.bf16.msra.mxu0 %v6938_v56  ;;  %v1323_v56 = vrot.slane %v1322_v21, 4  ;;  %v5407_v12 = vld [vmem:[%s6498_s30 + $0x14] sm:$0x1]  ;;  %v3884_v21 = vrot.slane %v3882_v13, 4 }
  0xb6   : > { %5952 = vmatprep.mubr.msk.bf16.mxu0 %vm412_vm1, %v6365_v10  ;;  %v5409_v10 = vld [vmem:[%s6498_s30 + $0x1c] sm:$0xf]  ;;  %v3860_v63 = vrot.slane %v3858_v22, 4  ;;  %v3873_v17 = vrot.slane %v3871_v6, 4  ;;  %v3877_v20 = vshll.u32 %v5407_v12, 16 }
  0xb7   : > { %v1328_v44 = vsel %vm6554_vm4, %v1323_v56, %v1327_v36  ;;  %v3891_v7 = vshll.u32 %v5409_v10, 16  ;;  %v3895_v14 = vshrl.u32 %v5409_v10, 16  ;;  %v3935_v10 = vrot.slane %v3933_v49, 5 }
  0xb8   : > { %v5046_v48 = vcombine.low %v1318_v43, %v1328_v44  ;;  %v3864_v32 = vor.u32 %v3863_v47, %v3860_v63  ;;  %v3874_v29 = vor.u32 %v3873_v17, %v7068_v15  ;;  %v3879_v56 = vrot.slane %v3877_v20, 5  ;;  %v5420_v17 = vld [vmem:[%s6498_s30 + $0x48] sm:$0xf]  ;;  %v5421_v20 = vld [vmem:[%s6498_s30 + $0x4c] sm:$0xf] }
  0xb9   : > { %v3897_v27 = vrot.slane %v3895_v14, 4  ;;  %v7086_v43 = vrot.slane %v3915_v59, 5  ;;  %v3921_v44 = vrot.slane %v3919_v28, 4  ;;  %v3963_v14 = vshll.u32 %v5418_v53, 16 }
  0xba   : > { %v3949_v47 = vshll.u32 %v5416_v5, 16  ;;  %v3978_v59 = vshrl.u32 %v5420_v17, 16  ;;  %v3981_v28 = vshll.u32 %v5420_v17, 16  ;;  %v5425_v5 = vld [vmem:[%s6498_s30 + $0x5c] sm:$0x1] }
  0xbb   : > { %v4021_v17 = vshll.u32 %v5425_v5, 16  ;;  %v5434_v5 = vld [vmem:[%s6498_s30 + $0x80] sm:$0x1] }
  0xbc   : > { %5799 = vmatmul.mubr.msk.bf16.gmra.mrb[20].mxu1 %vm412_vm1, %v5043_v25  ;;  %5953 = vmatmul.mubr.msk.bf16.gmra.mrb[4].mxu0 %vm412_vm1, %v6366_v26  ;;  %v3909_v25 = vshll.u32 %v5411_v58, 16  ;;  %v5410_v26 = vld [vmem:[%s6498_s30 + $0x20] sm:$0x1]  ;;  %v3967_v58 = vshrl.u32 %v5418_v53, 16  ;;  %v3980_v49 = vrot.slane %v3978_v59, 4 }
  0xbd   : > { %5802 = vmatprep.mubr.msk.bf16.mxu1 %vm412_vm1, %v5044_v11  ;;  %5956 = vmatprep.mubr.msk.bf16.mxu0 %vm412_vm1, %v6367_v52  ;;  %v7075_v11 = vrot.slane %v3891_v7, 5  ;;  %v6380_v52 = vld [vmem:[%s6498_s30 + $0x168] sm:$0xff]   ;;  %v3901_v36 = vshll.u32 %v5410_v26, 16  ;;  %v7121_v26 = vrot.slane %v3963_v14, 5 }
  0xbe   : > { %v3911_v38 = vrot.slane %v3909_v25, 5 }
  0xbf   : > { %v3898_v40 = vor.u32 %v3897_v27, %v7075_v11  ;;  %v3969_v27 = vrot.slane %v3967_v58, 4 }
  0xc1   : > { %v7098_v1 = vrot.slane %v3898_v40, 4 }
  0xc4   : > { %5803 = vmatmul.mubr.msk.bf16.gmra.mrb[24].mxu1 %vm412_vm1, %v5045_v45  ;;  %5957 = vmatmul.mubr.msk.bf16.gmra.mrb[8].mxu0 %vm412_vm1, %v6368_v30  ;;  %v3865_v45 = vrot.slane %v3864_v32, 4  ;;  %v3875_v30 = vrot.slane %v3874_v29, 4  ;;  %v6387_v32 = vld [vmem:[%s6498_s30 + $0x1f8] sm:$0xff]   ;;  %v7126_v29 = vrot.slane %v3949_v47, 5 }
  0xc5   : > { %5806 = vmatprep.mubr.msk.bf16.mxu1 %vm412_vm1, %v5046_v48  ;;  %5960 = vmatprep.mubr.msk.bf16.mxu0 %vm412_vm1, %v6369_v37  ;;  %v3930_v48 = vshrl.u32 %v5414_v35, 16  ;;  %v3943_v37 = vshrl.u32 %v5415_v39, 16  ;;  %v3987_v35 = vshll.u32 %v5421_v20, 16 }
  0xc6   : > { %v3870_v22 = vsel %vm6554_vm4, %v3865_v45, %v7068_v15  ;;  %v3880_v62 = vsel %vm6554_vm4, %v3875_v30, %v3879_v56  ;;  %v5419_v15 = vld [vmem:[%s6498_s30 + $0x44] sm:$0x1]  ;;  %v3991_v56 = vshrl.u32 %v5421_v20, 16 }
  0xc7   : > { %v3932_v6 = vrot.slane %v3930_v48, 4  ;;  %v5454_v19 = vcombine.low %v3870_v22, %v3880_v62  ;;  %v5422_v48 = vld [vmem:[%s6498_s30 + $0x50] sm:$0x1] }
  0xc8   : > { %v3997_v62 = vshll.u32 %v5422_v48, 16 }
  0xcc   : > { %5807 = vmatmul.mubr.msk.bf16.gmra.mrb[28].mxu1 %vm412_vm1, %v5047_v33  ;;  %5961 = vmatmul.mubr.msk.bf16.gmra.mrb[12].mxu0 %vm412_vm1, %v6370_v54  ;;  %v3912_v33 = vor.u32 %v3911_v38, %v3908_v16  ;;  %v3925_v54 = vshll.u32 %v5413_v41, 16 }
  0xcd   : > { %5812 = vmatprep.mubr.msk.bf16.mxu1 %vm412_vm1, %v6371_v60  ;;  %5964 = vmatprep.mubr.msk.bf16.mxu0 %vm412_vm1, %v6372_v61  ;;  %v5417_v60 = vld [vmem:[%s6498_s30 + $0x3c] sm:$0xf]  ;;  %v6384_v61 = vld [vmem:[%s6498_s30 + $0x180] sm:$0xff]  }
  0xce   : > { %v3954_v12 = vshrl.u32 %v5417_v60, 16  ;;  %v3957_v13 = vshll.u32 %v5417_v60, 16  ;;  %v3927_v7 = vrot.slane %v3925_v54, 5 }
  0xd0   : > { %v3956_v23 = vrot.slane %v3954_v12, 4  ;;  %v3959_v25 = vrot.slane %v3957_v13, 5 }
  0xd2   : > { %v3960_v41 = vor.u32 %v3959_v25, %v3956_v23 }
  0xd4   : > { %5813 = vmatmul.mubr.msk.bf16.vlgmr.msra.gmra.mrb[0].mxu1 %vm412_vm1, %v6373_v2  ;;  %5965 = vmatmul.mubr.msk.bf16.gmra.mrb[16].mxu0 %vm412_vm1, %v6374_v4  ;;  %v7100_v2 = vrot.slane %v3901_v36, 5  ;;  %v3922_v4 = vor.u32 %v3921_v44, %v7086_v43  ;;  %v3961_v53 = vrot.slane %v3960_v41, 4 }
  0xd5   : > { %6015 = vmatpush3.bf16.msra.mxu1 %v6481_v3  ;;  %5816 = vmatprep.mubr.msk.bf16.mxu1 %vm412_vm1, %v6375_v8  ;;  %v3887_v3 = vrot.slane %v3885_v24, 5  ;;  %v7110_v8 = vrot.slane %v3939_v50, 5  ;;  %v3913_v24 = vrot.slane %v3912_v33, 4  ;;  %v3993_v50 = vrot.slane %v3991_v56, 4 }
  0xd6   : > { %5968 = vmatprep.mubr.msk.bf16.mxu0 %vm412_vm1, %v6376_v9  ;;  %v3945_v9 = vrot.slane %v3943_v37, 4  ;;  %v3923_v63 = vrot.slane %v3922_v4, 4  ;;  %v3904_v16 = vsel %vm6554_vm4, %v7098_v1, %v7100_v2  ;;  %v5426_v1 = vld [vmem:[%s6498_s30 + $0x60] sm:$0xf]  ;;  %v5427_v2 = vld [vmem:[%s6498_s30 + $0x64] sm:$0xf] }
  0xd7   : > { %v3888_v42 = vor.u32 %v3887_v3, %v3884_v21  ;;  %v3936_v21 = vor.u32 %v3935_v10, %v3932_v6  ;;  %v3918_v38 = vsel %vm6554_vm4, %v3913_v24, %v7086_v43  ;;  %v7149_v43 = vrot.slane %v3987_v35, 5  ;;  %v5429_v6 = vld [vmem:[%s6498_s30 + $0x6c] sm:$0xf]  ;;  %v6388_v10 = vld [vmem:[%s6498_s30 + $0x204] sm:$0xff]   ;;  %v5430_v24 = vld [vmem:[%s6498_s30 + $0x70] sm:$0xf] }
  0xd8   : > { %v3946_v3 = vor.u32 %v3945_v9, %v7110_v8  ;;  %v3928_v39 = vsel %vm6554_vm4, %v3923_v63, %v3927_v7  ;;  %v6389_v7 = vld [vmem:[%s6498_s30 + $0x210] sm:$0xff]   ;;  %v4026_v14 = vshrl.u32 %v5426_v1, 16  ;;  %v4029_v58 = vshll.u32 %v5426_v1, 16  ;;  %v5433_v35 = vld [vmem:[%s6498_s30 + $0x7c] sm:$0xf] }
  0xd9   : > { %v7096_v0 = vrot.slane %v3888_v42, 4  ;;  %v5424_v42 = vld [vmem:[%s6498_s30 + $0x58] sm:$0xf]  ;;  %v7142_v40 = vrot.slane %v3936_v21, 4  ;;  %v5456_v54 = vcombine.low %v3918_v38, %v3928_v39  ;;  %v4035_v63 = vshll.u32 %v5427_v2, 16  ;;  %v6390_v39 = vld [vmem:[%s6498_s30 + $0x21c] sm:$0xff]  }
  0xda   : > { %v7144_v30 = vrot.slane %v3946_v3, 4  ;;  %v4011_v37 = vshll.u32 %v5424_v42, 16  ;;  %v4039_v47 = vshrl.u32 %v5427_v2, 16  ;;  %v4053_v20 = vshll.u32 %v5429_v6, 16 }
  0xdb   : > { %v3894_v36 = vsel %vm6554_vm4, %v7096_v0, %v7075_v11  ;;  %v3970_v11 = vor.u32 %v3969_v27, %v7121_v26  ;;  %v3942_v60 = vsel %vm6554_vm4, %v7142_v40, %v7110_v8  ;;  %v3994_v8 = vor.u32 %v3993_v50, %v7149_v43  ;;  %v6391_v50 = vld [vmem:[%s6498_s30 + $0x228] sm:$0xff]  }
  0xdc   : > { %5817 = vmatmul.mubr.msk.bf16.gmra.mrb[4].mxu1 %vm412_vm1, %v6377_v46  ;;  %5969 = vmatmul.mubr.msk.bf16.gmra.mrb[20].mxu0 %vm412_vm1, %v6378_v31  ;;  %v6385_v46 = vld [vmem:[%s6498_s30 + $0x1ec] sm:$0xff]   ;;  %v5423_v31 = vld [vmem:[%s6498_s30 + $0x54] sm:$0xf]  ;;  %v3952_v4 = vsel %vm6554_vm4, %v7144_v30, %v7126_v29  ;;  %v7170_v12 = vrot.slane %v4011_v37, 5  ;;  %v7177_v21 = vrot.slane %v3997_v62, 5  ;;  %v4059_v3 = vshll.u32 %v5430_v24, 16 }
  0xdd   : > { %5820 = vmatprep.mubr.msk.bf16.mxu1 %vm412_vm1, %v6379_v18  ;;  %5972 = vmatprep.mubr.msk.bf16.mxu0 %vm412_vm1, %v6380_v52  ;;  %v6386_v18 = vld [vmem:[%s6498_s30 + $0x18c] sm:$0xff]   ;;  %v3973_v52 = vshll.u32 %v5419_v15, 16  ;;  %v4002_v44 = vshrl.u32 %v5423_v31, 16  ;;  %v4005_v45 = vshll.u32 %v5423_v31, 16  ;;  %v3971_v9 = vrot.slane %v3970_v11, 4 }
  0xde   : > { %v4063_v23 = vshrl.u32 %v5430_v24, 16  ;;  %v7185_v59 = vrot.slane %v3994_v8, 4  ;;  %v5428_v31 = vld [vmem:[%s6498_s30 + $0x68] sm:$0x1]  ;;  %v7192_v29 = vrot.slane %v4035_v63, 5  ;;  %v4055_v38 = vrot.slane %v4053_v20, 5 }
  0xdf   : > { %v7153_v33 = vrot.slane %v3973_v52, 5  ;;  %v4007_v0 = vrot.slane %v4005_v45, 5  ;;  %v4041_v52 = vrot.slane %v4039_v47, 4  ;;  %v4045_v30 = vshll.u32 %v5428_v31, 16  ;;  %v5431_v11 = vld [vmem:[%s6498_s30 + $0x74] sm:$0x1] }
  0xe0   : > { %v4065_v40 = vrot.slane %v4063_v23, 4  ;;  %v4083_v48 = vshll.u32 %v5433_v35, 16  ;;  %v4069_v2 = vshll.u32 %v5431_v11, 16  ;;  %v5437_v23 = vld [vmem:[%s6498_s30 + $0x8c] sm:$0x1] }
  0xe1   : > { %v3976_v25 = vsel %vm6554_vm4, %v3971_v9, %v7153_v33  ;;  %v4047_v62 = vrot.slane %v4045_v30, 5  ;;  %v5439_v31 = vld [vmem:[%s6498_s30 + $0x94] sm:$0xf] }
  0xe2   : > { %v4071_v63 = vrot.slane %v4069_v2, 5 }
  0xe4   : > { %5821 = vmatmul.mubr.msk.bf16.gmra.mrb[8].mxu1 %vm412_vm1, %v6381_v34  ;;  %5973 = vmatmul.mubr.msk.bf16.gmra.mrb[24].mxu0 %vm412_vm1, %v6382_v55  ;;  %v3983_v34 = vrot.slane %v3981_v28, 5  ;;  %v4015_v55 = vshrl.u32 %v5424_v42, 16  ;;  %v7197_v42 = vrot.slane %v4059_v3, 5 }
  0xe5   : > { %5824 = vmatprep.mubr.msk.bf16.mxu1 %vm412_vm1, %v6383_v57  ;;  %5976 = vmatprep.mubr.msk.bf16.mxu0 %vm412_vm1, %v6384_v61  ;;  %v5455_v57 = vcombine.low %v3894_v36, %v3904_v16  ;;  %v4004_v61 = vrot.slane %v4002_v44, 4  ;;  %v4023_v36 = vrot.slane %v4021_v17, 5  ;;  %v5438_v17 = vld [vmem:[%s6498_s30 + $0x90] sm:$0xf] }
  0xe6   : > { %v3984_v22 = vor.u32 %v3983_v34, %v3980_v49  ;;  %v4017_v13 = vrot.slane %v4015_v55, 4  ;;  %v4087_v49 = vshrl.u32 %v5433_v35, 16  ;;  %v5457_v34 = vcombine.low %v3942_v60, %v3952_v4 }
  0xe7   : > { %v4008_v15 = vor.u32 %v4007_v0, %v4004_v61  ;;  %v5435_v0 = vld [vmem:[%s6498_s30 + $0x84] sm:$0xf]  ;;  %v4066_v1 = vor.u32 %v4065_v40, %v7197_v42  ;;  %v4125_v35 = vshll.u32 %v5438_v17, 16  ;;  %v4117_v40 = vshll.u32 %v5437_v23, 16 }
  0xe8   : > { %v7183_v27 = vrot.slane %v3984_v22, 4  ;;  %v4018_v28 = vor.u32 %v4017_v13, %v7170_v12  ;;  %v5436_v22 = vld [vmem:[%s6498_s30 + $0x88] sm:$0xf]  ;;  %v4101_v13 = vshll.u32 %v5435_v0, 16 }
  0xe9   : > { %v4009_v56 = vrot.slane %v4008_v15, 4  ;;  %v4093_v15 = vshll.u32 %v5434_v5, 16  ;;  %v5444_v5 = vld [vmem:[%s6498_s30 + $0xa8] sm:$0xf] }
  0xea   : > { %v4019_v45 = vrot.slane %v4018_v28, 4  ;;  %v3990_v33 = vsel %vm6554_vm4, %v7183_v27, %v7149_v43  ;;  %v4103_v28 = vrot.slane %v4101_v13, 5 }
  0xeb   : > { %v4014_v60 = vsel %vm6554_vm4, %v4009_v56, %v7170_v12  ;;  %v4098_v12 = vshrl.u32 %v5435_v0, 16  ;;  %v5442_v56 = vld [vmem:[%s6498_s30 + $0xa0] sm:$0xf]  ;;  %v4119_v0 = vrot.slane %v4117_v40, 5 }
  0xec   : > { %5825 = vmatmul.mubr.msk.bf16.gmra.mrb[12].mxu1 %vm412_vm1, %v6385_v46  ;;  %5977 = vmatmul.mubr.msk.bf16.gmra.mrb[28].mxu0 %vm412_vm1, %v6386_v18  ;;  %v3966_v46 = vsel %vm6554_vm4, %v3961_v53, %v7121_v26  ;;  %v5432_v26 = vld [vmem:[%s6498_s30 + $0x78] sm:$0xf]  ;;  %v4028_v18 = vrot.slane %v4026_v14, 4  ;;  %v4024_v43 = vsel %vm6554_vm4, %v4019_v45, %v4023_v36  ;;  %v4111_v14 = vshrl.u32 %v5436_v22, 16  ;;  %v5450_v40 = vld [vmem:[%s6498_s30 + $0xc0] sm:$0xf] }
  0xed   : > { %5828 = vmatprep.mubr.msk.bf16.mxu1 %vm412_vm1, %v6387_v32  ;;  %5982 = vmatprep.mubr.msk.bf16.mxu0 %vm412_vm1, %v5454_v19  ;;  %v4050_v19 = vshrl.u32 %v5429_v6, 16  ;;  %v4031_v32 = vrot.slane %v4029_v58, 5  ;;  %v4074_v41 = vshrl.u32 %v5432_v26, 16  ;;  %v4077_v44 = vshll.u32 %v5432_v26, 16  ;;  %v5441_v26 = vld [vmem:[%s6498_s30 + $0x9c] sm:$0xf] }
  0xee   : > { %v5458_v37 = vcombine.low %v3966_v46, %v3976_v25  ;;  %v7220_v6 = vrot.slane %v4083_v48, 5  ;;  %v4067_v58 = vrot.slane %v4066_v1, 4  ;;  %v6393_v46 = vld [vmem:[%s6498_s30 + $0x240] sm:$0xff]   ;;  %v4146_v45 = vshrl.u32 %v5441_v26, 16 }
  0xef   : > { %v4052_v16 = vrot.slane %v4050_v19, 4  ;;  %v4032_v55 = vor.u32 %v4031_v32, %v4028_v18  ;;  %v4076_v4 = vrot.slane %v4074_v41, 4  ;;  %v4079_v53 = vrot.slane %v4077_v44, 5  ;;  %v6392_v19 = vld [vmem:[%s6498_s30 + $0x234] sm:$0xff]  }
  0xf0   : > { %v4113_v32 = vrot.slane %v4111_v14, 4  ;;  %v4131_v41 = vshll.u32 %v5439_v31, 16  ;;  %v4135_v44 = vshrl.u32 %v5439_v31, 16  ;;  %v4155_v30 = vshll.u32 %v5442_v56, 16  ;;  %v6396_v31 = vld [vmem:[%s6498_s30 + $0x2d0] sm:$0xff]  }
  0xf1   : > { %v4056_v61 = vor.u32 %v4055_v38, %v4052_v16  ;;  %v4033_v9 = vrot.slane %v4032_v55, 4  ;;  %v4080_v47 = vor.u32 %v4079_v53, %v4076_v4  ;;  %v4095_v38 = vrot.slane %v4093_v15, 5  ;;  %v5443_v4 = vld [vmem:[%s6498_s30 + $0xa4] sm:$0x1] }
  0xf2   : > { %v4159_v11 = vshrl.u32 %v5442_v56, 16  ;;  %v7258_v1 = vrot.slane %v4131_v41, 5  ;;  %v4137_v2 = vrot.slane %v4135_v44, 4  ;;  %v4148_v53 = vrot.slane %v4146_v45, 4  ;;  %v6397_v56 = vld [vmem:[%s6498_s30 + $0x2dc] sm:$0xff]  }
  0xf3   : > { %v4057_v24 = vrot.slane %v4056_v61, 4  ;;  %v4038_v25 = vsel %vm6554_vm4, %v4033_v9, %v7192_v29  ;;  %v4081_v16 = vrot.slane %v4080_v47, 4  ;;  %v4165_v14 = vshll.u32 %v5443_v4, 16  ;;  %v5448_v47 = vld [vmem:[%s6498_s30 + $0xb8] sm:$0xf]  ;;  %v6398_v4 = vld [vmem:[%s6498_s30 + $0x2e8] sm:$0xff]  }
  0xf4   : > { %5829 = vmatmul.mubr.msk.bf16.gmra.mrb[16].mxu1 %vm412_vm1, %v6388_v10  ;;  %5983 = vmatmul.mubr.msk.bf16.vlgmr.msra.gmra.mrb[0].mxu0 %vm412_vm1, %v5455_v57  ;;  %v4042_v57 = vor.u32 %v4041_v52, %v7192_v29  ;;  %v4089_v10 = vrot.slane %v4087_v49, 4  ;;  %v4122_v52 = vshrl.u32 %v5438_v17, 16  ;;  %v4072_v29 = vsel %vm6554_vm4, %v4067_v58, %v4071_v63 }
  0xf5   : > { %5832 = vmatprep.mubr.msk.bf16.mxu1 %vm412_vm1, %v6389_v7  ;;  %5986 = vmatprep.mubr.msk.bf16.mxu0 %vm412_vm1, %v5456_v54  ;;  %v4000_v54 = vsel %vm6554_vm4, %v7185_v59, %v7177_v21  ;;  %v4107_v7 = vshll.u32 %v5436_v22, 16  ;;  %v5460_v21 = vcombine.low %v4014_v60, %v4024_v43  ;;  %v4100_v59 = vrot.slane %v4098_v12, 4  ;;  %v6395_v60 = vld [vmem:[%s6498_s30 + $0x2c4] sm:$0xff]   ;;  %v5445_v12 = vld [vmem:[%s6498_s30 + $0xac] sm:$0xf] }
  0xf6   : > { %v4043_v8 = vrot.slane %v4042_v57, 4  ;;  %v5459_v20 = vcombine.low %v3990_v33, %v4000_v54  ;;  %v4090_v3 = vor.u32 %v4089_v10, %v7220_v6  ;;  %v4062_v36 = vsel %vm6554_vm4, %v4057_v24, %v7197_v42  ;;  %v5440_v54 = vld [vmem:[%s6498_s30 + $0x98] sm:$0x1]  ;;  %v5447_v24 = vld [vmem:[%s6498_s30 + $0xb4] sm:$0xf] }
  0xf7   : > { %v7237_v18 = vrot.slane %v4107_v7, 5  ;;  %v4149_v42 = vshll.u32 %v5441_v26, 16  ;;  %v4104_v48 = vor.u32 %v4103_v28, %v4100_v59  ;;  %v5462_v57 = vcombine.low %v4062_v36, %v4072_v29 }
  0xf8   : > { %v4048_v27 = vsel %vm6554_vm4, %v4043_v8, %v4047_v62  ;;  %v4086_v33 = vsel %vm6554_vm4, %v4081_v16, %v7220_v6  ;;  %v7261_v43 = vrot.slane %v4155_v30, 5  ;;  %v4161_v62 = vrot.slane %v4159_v11, 4  ;;  %v5451_v30 = vld [vmem:[%s6498_s30 + $0xc4] sm:$0xf] }
  0xf9   : > { %v4114_v49 = vor.u32 %v4113_v32, %v7237_v18  ;;  %v5461_v55 = vcombine.low %v4038_v25, %v4048_v27  ;;  %v4151_v22 = vrot.slane %v4149_v42, 5  ;;  %v4105_v6 = vrot.slane %v4104_v48, 4 }
  0xfa   : > { %v4141_v8 = vshll.u32 %v5440_v54, 16  ;;  %v4138_v7 = vor.u32 %v4137_v2, %v7258_v1  ;;  %v4170_v58 = vshrl.u32 %v5444_v5, 16  ;;  %v4173_v63 = vshll.u32 %v5444_v5, 16 }
  0xfb   : > { %v4115_v10 = vrot.slane %v4114_v49, 4  ;;  %v4152_v15 = vor.u32 %v4151_v22, %v4148_v53  ;;  %v4162_v17 = vor.u32 %v4161_v62, %v7261_v43  ;;  %v4194_v25 = vshrl.u32 %v5447_v24, 16  ;;  %v6399_v22 = vld [vmem:[%s6498_s30 + $0x2f4] sm:$0xff]  }
  0xfc   : > { %5833 = vmatmul.mubr.msk.bf16.gmra.mrb[20].mxu1 %vm412_vm1, %v6390_v39  ;;  %5987 = vmatmul.mubr.msk.bf16.gmra.mrb[4].mxu0 %vm412_vm1, %v5457_v34  ;;  %v4091_v39 = vrot.slane %v4090_v3, 4  ;;  %v4124_v34 = vrot.slane %v4122_v52, 4  ;;  %v4143_v23 = vrot.slane %v4141_v8, 5  ;;  %v4197_v27 = vshll.u32 %v5447_v24, 16 }
  0xfd   : > { %5836 = vmatprep.mubr.msk.bf16.mxu1 %vm412_vm1, %v6391_v50  ;;  %5990 = vmatprep.mubr.msk.bf16.mxu0 %vm412_vm1, %v5458_v37  ;;  %v4127_v50 = vrot.slane %v4125_v35, 5  ;;  %v6394_v37 = vld [vmem:[%s6498_s30 + $0x24c] sm:$0xff]   ;;  %v4203_v59 = vshll.u32 %v5448_v47, 16  ;;  %v4207_v28 = vshrl.u32 %v5448_v47, 16  ;;  %v4139_v26 = vrot.slane %v4138_v7, 4 }
  0xfe   : > { %v4096_v61 = vsel %vm6554_vm4, %v4091_v39, %v4095_v38  ;;  %v4167_v32 = vrot.slane %v4165_v14, 5  ;;  %v4172_v52 = vrot.slane %v4170_v58, 4  ;;  %v4175_v35 = vrot.slane %v4173_v63, 5  ;;  %v5446_v39 = vld [vmem:[%s6498_s30 + $0xb0] sm:$0x1] }
  0xff   : > { %v4128_v9 = vor.u32 %v4127_v50, %v4124_v34  ;;  %v5463_v13 = vcombine.low %v4086_v33, %v4096_v61  ;;  %v4153_v36 = vrot.slane %v4152_v15, 4  ;;  %v4196_v41 = vrot.slane %v4194_v25, 4  ;;  %v5449_v34 = vld [vmem:[%s6498_s30 + $0xbc] sm:$0x1]  ;;  %v5452_v14 = vld [vmem:[%s6498_s30 + $0xc8] sm:$0x1] }
 0x100   : > { %v4199_v44 = vrot.slane %v4197_v27, 5  ;;  %v4205_v45 = vrot.slane %v4203_v59, 5  ;;  %v4209_v42 = vrot.slane %v4207_v28, 4  ;;  %v4144_v48 = vsel %vm6554_vm4, %v4139_v26, %v4143_v23  ;;  %v6402_v26 = vld [vmem:[%s6498_s30 + $0x318] sm:$0xff]  }
 0x101   : > { %v4129_v3 = vrot.slane %v4128_v9, 4  ;;  %v4176_v49 = vor.u32 %v4175_v35, %v4172_v52  ;;  %v4158_v50 = vsel %vm6554_vm4, %v4153_v36, %v7261_v43  ;;  %v4218_v33 = vshrl.u32 %v5450_v40, 16 }
 0x102   : > { %v4221_v54 = vshll.u32 %v5450_v40, 16  ;;  %v4231_v61 = vshrl.u32 %v5451_v30, 16  ;;  %v4213_v2 = vshll.u32 %v5449_v34, 16 }
 0x103   : > { %v4134_v11 = vsel %vm6554_vm4, %v4129_v3, %v7258_v1  ;;  %v4210_v1 = vor.u32 %v4209_v42, %v4205_v45  ;;  %v4177_v43 = vrot.slane %v4176_v49, 4  ;;  %v6401_v3 = vld [vmem:[%s6498_s30 + $0x30c] sm:$0xff]  }
 0x104   : > { %5837 = vmatmul.mubr.msk.bf16.gmra.mrb[24].mxu1 %vm412_vm1, %v6392_v19  ;;  %5991 = vmatmul.mubr.msk.bf16.gmra.mrb[8].mxu0 %vm412_vm1, %v5459_v20  ;;  %v4179_v19 = vshll.u32 %v5445_v12, 16  ;;  %v4183_v20 = vshrl.u32 %v5445_v12, 16  ;;  %v5465_v53 = vcombine.low %v4134_v11, %v4144_v48  ;;  %v4223_v9 = vrot.slane %v4221_v54, 5  ;;  %v7343_v48 = vld [vmem:[%s7502_s2] ss:$0 sm:$0xff] }
 0x105   : > { %5840 = vmatprep.mubr.msk.bf16.mxu1 %vm412_vm1, %v6393_v46  ;;  %5994 = vmatprep.mubr.msk.bf16.mxu0 %vm412_vm1, %v5460_v21  ;;  %v4110_v46 = vsel %vm6554_vm4, %v4105_v6, %v7237_v18  ;;  %v4120_v21 = vsel %vm6554_vm4, %v4115_v10, %v4119_v0  ;;  %v4163_v18 = vrot.slane %v4162_v17, 4  ;;  %v4200_v0 = vor.u32 %v4199_v44, %v4196_v41 }
 0x106   : > { %v4181_v29 = vrot.slane %v4179_v19, 5  ;;  %v4185_v16 = vrot.slane %v4183_v20, 4  ;;  %v5464_v38 = vcombine.low %v4110_v46, %v4120_v21  ;;  %v4220_v10 = vrot.slane %v4218_v33, 4  ;;  %v6400_v46 = vld [vmem:[%s6498_s30 + $0x300] sm:$0xff]  }
 0x107   : > { %v4233_v12 = vrot.slane %v4231_v61, 4  ;;  %v4211_v24 = vrot.slane %v4210_v1, 4  ;;  %v4215_v7 = vrot.slane %v4213_v2, 5  ;;  %v4237_v17 = vshll.u32 %v5452_v14, 16 }
 0x108   : > { %v4182_v58 = vsel %vm6554_vm4, %v4177_v43, %v4181_v29  ;;  %v4224_v47 = vor.u32 %v4223_v9, %v4220_v10 }
 0x109   : > { %v4216_v20 = vsel %vm6554_vm4, %v4211_v24, %v4215_v7  ;;  %v4239_v59 = vrot.slane %v4237_v17, 5 }
 0x10a   : > { %v4225_v25 = vrot.slane %v4224_v47, 4 }
 0x10c   : > { %5841 = vmatmul.mubr.msk.bf16.gmra.mrb[28].mxu1 %vm412_vm1, %v6394_v37  ;;  %5995 = vmatmul.mubr.msk.bf16.gmra.mrb[12].mxu0 %vm412_vm1, %v5461_v55  ;;  %v4168_v37 = vsel %vm6554_vm4, %v4163_v18, %v4167_v32  ;;  %v4186_v55 = vor.u32 %v4185_v16, %v4181_v29 }
 0x10d   : > { %5862 = vmatprep.mubr.msk.bf16.mxu1 %vm412_vm1, %v6395_v60  ;;  %5998 = vmatprep.mubr.msk.bf16.mxu0 %vm412_vm1, %v5462_v57  ;;  %v4189_v57 = vshll.u32 %v5446_v39, 16  ;;  %v4227_v60 = vshll.u32 %v5451_v30, 16  ;;  %v5466_v62 = vcombine.low %v4158_v50, %v4168_v37  ;;  %v7348_v50 = vld [vmem:[%s7503_s3] ss:$0 sm:$0xff] }
 0x10e   : > { %v4187_v5 = vrot.slane %v4186_v55, 4 }
 0x10f   : > { %v4191_v6 = vrot.slane %v4189_v57, 5  ;;  %v4229_v8 = vrot.slane %v4227_v60, 5 }
 0x111   : > { %v4192_v63 = vsel %vm6554_vm4, %v4187_v5, %v4191_v6  ;;  %v4234_v15 = vor.u32 %v4233_v12, %v4229_v8  ;;  %v4230_v28 = vsel %vm6554_vm4, %v4225_v25, %v4229_v8 }
 0x112   : > { %v5467_v21 = vcombine.low %v4182_v58, %v4192_v63 }
 0x113   : > { %v4235_v27 = vrot.slane %v4234_v15, 4 }
 0x114   : > { %5863 = vmatmul.mubr.msk.bf16.vlgmr.msra.gmra.mrb[16].mxu1 %vm412_vm1, %v6396_v31  ;;  %5999 = vmatmul.mubr.msk.bf16.gmra.mrb[16].mxu0 %vm412_vm1, %v5463_v13  ;;  %v4201_v13 = vrot.slane %v4200_v0, 4 }
 0x115   : > { %5866 = vmatprep.mubr.msk.bf16.mxu1 %vm412_vm1, %v6397_v56  ;;  %6002 = vmatprep.mubr.msk.bf16.mxu0 %vm412_vm1, %v5464_v38  ;;  %v4240_v31 = vsel %vm6554_vm4, %v4235_v27, %v4239_v59 }
 0x116   : > { %v4206_v19 = vsel %vm6554_vm4, %v4201_v13, %v4205_v45  ;;  %v5469_v32 = vcombine.low %v4230_v28, %v4240_v31 }
 0x117   : > { %v5468_v23 = vcombine.low %v4206_v19, %v4216_v20 }
 0x11c   : > { %5867 = vmatmul.mubr.msk.bf16.gmra.mrb[20].mxu1 %vm412_vm1, %v6398_v4  ;;  %6003 = vmatmul.mubr.msk.bf16.gmra.mrb[20].mxu0 %vm412_vm1, %v5465_v53 }
 0x11d   : > { %5870 = vmatprep.mubr.msk.bf16.mxu1 %vm412_vm1, %v6399_v22  ;;  %6006 = vmatprep.mubr.msk.bf16.mxu0 %vm412_vm1, %v5466_v62 }
 0x124   : > { %5871 = vmatmul.mubr.msk.bf16.gmra.mrb[24].mxu1 %vm412_vm1, %v6400_v46  ;;  %6007 = vmatmul.mubr.msk.bf16.gmra.mrb[24].mxu0 %vm412_vm1, %v5467_v21 }
 0x125   : > { %5874 = vmatprep.mubr.msk.bf16.mxu1 %vm412_vm1, %v6401_v3  ;;  %6010 = vmatprep.mubr.msk.bf16.mxu0 %vm412_vm1, %v5468_v23 }
 0x12c   : > { %5875 = vmatmul.mubr.msk.bf16.gmra.mrb[28].mxu1 %vm412_vm1, %v6402_v26  ;;  %6011 = vmatmul.mubr.msk.bf16.gmra.mrb[28].mxu0 %vm412_vm1, %v5469_v32 }
 0x1a7   : > { %v5814_v52 = vpop.f32.mrb[0].mxu1 }
 0x1a8   : > { %v1847_v35 = vpop.f32.mrb[1].mxu1 }
 0x1a9   : > { %v5815_v56 = vpop.f32.mrb[2].mxu1 }
 0x1aa   : > { %v1850_v36 = vpop.f32.mrb[3].mxu1 }
 0x1af   : > { %v5818_v18 = vpop.f32.mrb[4].mxu1 }
 0x1b0   : > { %v1863_v29 = vpop.f32.mrb[5].mxu1 }
 0x1b1   : > { %v5819_v16 = vpop.f32.mrb[6].mxu1 }
 0x1b2   : > { %v1866_v38 = vpop.f32.mrb[7].mxu1 }
 0x1b7   : > { %v5822_v39 = vpop.f32.mrb[8].mxu1 }
 0x1b8   : > { %v7326_v40 = vpop.f32.mrb[9].mxu1 }
 0x1b9   : > { %v7328_v41 = vpop.f32.mrb[10].mxu1 }
 0x1ba   : > { %v7330_v51 = vpop.f32.mrb[11].mxu1 }
 0x1bf   : > { %v7332_v44 = vpop.f32.mrb[12].mxu1 }
 0x1c0   : > { %v7334_v45 = vpop.f32.mrb[13].mxu1 }
 0x1c1   : > { %v7336_v42 = vpop.f32.mrb[14].mxu1 }
 0x1c2   : > { %v7338_v30 = vpop.f32.mrb[15].mxu1 }
 0x1c7   : > { %v5984_v11 = vpop.f32.mrb[0].mxu0 }
 0x1c8   : > { %v6016_v49 = vadd.f32 %v5984_v11, %v5814_v52  ;;  %v4376_v34 = vpop.f32.mrb[1].mxu0 }
 0x1c9   : > { %v6017_v37 = vadd.f32 %v4376_v34, %v1847_v35  ;;  %v5985_v55 = vpop.f32.mrb[2].mxu0 }
 0x1ca   : > { %v4544_v57 = vmul.f32 %v6016_v49, %v7343_v48  ;;  %v6018_v33 = vadd.f32 %v5985_v55, %v5815_v56  ;;  %v4379_v54 = vpop.f32.mrb[3].mxu0 }
 0x1cb   : > { %v4542_v60 = vmul.f32 %v6017_v37, %v7343_v48  ;;  %v6019_v61 = vadd.f32 %v4379_v54, %v1850_v36 }
 0x1cc   : > { %v4583_v0 = vadd.f32 %v7348_v50, %v4544_v57  ;;  %v4545_v1 = vmul.f32 %v6018_v33, %v7343_v48 }
 0x1cd   : > { %v4581_v2 = vadd.f32 %v7348_v50, %v4542_v60  ;;  %v4543_v4 = vmul.f32 %v6019_v61, %v7343_v48 }
 0x1ce   : > { %v4615_v53 = vmax.f32 %v4583_v0, 0.0  ;;  %v4584_v22 = vadd.f32 %v7348_v50, %v4545_v1 }
 0x1cf   : > { %v4613_v62 = vmax.f32 %v4581_v2, 0.0  ;;  %v4582_v43 = vadd.f32 %v7348_v50, %v4543_v4  ;;  %v5988_v5 = vpop.f32.mrb[4].mxu0 }
 0x1d0   : > { %v5525_v6 = vpack.c.bf16 %v4615_v53, %v4615_v53  ;;  %v4616_v10 = vmax.f32 %v4584_v22, 0.0  ;;  %v6020_v9 = vadd.f32 %v5988_v5, %v5818_v18  ;;  %v4392_v8 = vpop.f32.mrb[5].mxu0 }
 0x1d1   : > { %v5523_v12 = vpack.c.bf16 %v4613_v62, %v4613_v62  ;;  %v4614_v13 = vmax.f32 %v4582_v43, 0.0  ;;  %v6021_v24 = vadd.f32 %v4392_v8, %v1863_v29  ;;  %v5989_v7 = vpop.f32.mrb[6].mxu0 }
 0x1d2   : > { %4776 = vst.msk [vmem:[%s7361_s28 + $0x8] sm:$0xf] %vm4773_vm5, %v5525_v6  ;;  %v5526_v14 = vpack.c.bf16 %v4616_v10, %v4616_v10  ;;  %v4548_v58 = vmul.f32 %v6020_v9, %v7343_v48  ;;  %v6022_v63 = vadd.f32 %v5989_v7, %v5819_v16  ;;  %v4395_v47 = vpop.f32.mrb[7].mxu0 }
 0x1d3   : > { %4774 = vst.msk [vmem:[%s7361_s28] sm:$0xf] %vm4773_vm5, %v5523_v12  ;;  %v5524_v15 = vpack.c.bf16 %v4614_v13, %v4614_v13  ;;  %v4546_v17 = vmul.f32 %v6021_v24, %v7343_v48  ;;  %v6023_v19 = vadd.f32 %v4395_v47, %v1866_v38 }
 0x1d4   : > { %4777 = vst.msk [vmem:[%s7361_s28 + $0xc] sm:$0xf] %vm4773_vm5, %v5526_v14  ;;  %v4587_v20 = vadd.f32 %v7348_v50, %v4548_v58  ;;  %v4549_v46 = vmul.f32 %v6022_v63, %v7343_v48 }
 0x1d5   : > { %4775 = vst.msk [vmem:[%s7361_s28 + $0x4] sm:$0xf] %vm4773_vm5, %v5524_v15  ;;  %v4585_v21 = vadd.f32 %v7348_v50, %v4546_v17  ;;  %v4547_v3 = vmul.f32 %v6023_v19, %v7343_v48 }
 0x1d6   : > { %v4619_v23 = vmax.f32 %v4587_v20, 0.0  ;;  %v4588_v25 = vadd.f32 %v7348_v50, %v4549_v46 }
 0x1d7   : > { %v4617_v27 = vmax.f32 %v4585_v21, 0.0  ;;  %v4586_v59 = vadd.f32 %v7348_v50, %v4547_v3  ;;  %v5992_v28 = vpop.f32.mrb[8].mxu0 }
 0x1d8   : > { %v5529_v31 = vpack.c.bf16 %v4619_v23, %v4619_v23  ;;  %v4620_v26 = vmax.f32 %v4588_v25, 0.0  ;;  %v6024_v32 = vadd.f32 %v5992_v28, %v5822_v39  ;;  %v4408_v52 = vpop.f32.mrb[9].mxu0 }
 0x1d9   : > { %v5527_v35 = vpack.c.bf16 %v4617_v27, %v4617_v27  ;;  %v4618_v56 = vmax.f32 %v4586_v59, 0.0  ;;  %v6025_v36 = vadd.f32 %v4408_v52, %v7326_v40  ;;  %v5993_v18 = vpop.f32.mrb[10].mxu0 }
 0x1da   : > { %4780 = vst.msk [vmem:[%s7361_s28 + $0x18] sm:$0xf] %vm4773_vm5, %v5529_v31  ;;  %v5530_v29 = vpack.c.bf16 %v4620_v26, %v4620_v26  ;;  %v4552_v16 = vmul.f32 %v6024_v32, %v7343_v48  ;;  %v6026_v38 = vadd.f32 %v5993_v18, %v7328_v41  ;;  %v4411_v11 = vpop.f32.mrb[11].mxu0 }
 0x1db   : > { %4778 = vst.msk [vmem:[%s7361_s28 + $0x10] sm:$0xf] %vm4773_vm5, %v5527_v35  ;;  %v5528_v49 = vpack.c.bf16 %v4618_v56, %v4618_v56  ;;  %v4550_v39 = vmul.f32 %v6025_v36, %v7343_v48  ;;  %v6027_v34 = vadd.f32 %v4411_v11, %v7330_v51 }
 0x1dc   : > { %4781 = vst.msk [vmem:[%s7361_s28 + $0x1c] sm:$0xf] %vm4773_vm5, %v5530_v29  ;;  %v4591_v40 = vadd.f32 %v7348_v50, %v4552_v16  ;;  %v4553_v37 = vmul.f32 %v6026_v38, %v7343_v48 }
 0x1dd   : > { %4779 = vst.msk [vmem:[%s7361_s28 + $0x14] sm:$0xf] %vm4773_vm5, %v5528_v49  ;;  %v4589_v55 = vadd.f32 %v7348_v50, %v4550_v39  ;;  %v4551_v41 = vmul.f32 %v6027_v34, %v7343_v48 }
 0x1de   : > { %v4623_v57 = vmax.f32 %v4591_v40, 0.0  ;;  %v4592_v33 = vadd.f32 %v7348_v50, %v4553_v37 }
 0x1df   : > { %v4621_v54 = vmax.f32 %v4589_v55, 0.0  ;;  %v4590_v51 = vadd.f32 %v7348_v50, %v4551_v41  ;;  %v5996_v60 = vpop.f32.mrb[12].mxu0 }
 0x1e0   : > { %v5533_v61 = vpack.c.bf16 %v4623_v57, %v4623_v57  ;;  %v4624_v0 = vmax.f32 %v4592_v33, 0.0  ;;  %v6028_v1 = vadd.f32 %v5996_v60, %v7332_v44  ;;  %v4424_v2 = vpop.f32.mrb[13].mxu0 }
 0x1e1   : > { %v5531_v4 = vpack.c.bf16 %v4621_v54, %v4621_v54  ;;  %v4622_v53 = vmax.f32 %v4590_v51, 0.0  ;;  %v6029_v22 = vadd.f32 %v4424_v2, %v7334_v45  ;;  %v5997_v62 = vpop.f32.mrb[14].mxu0 }
 0x1e2   : > { %4784 = vst.msk [vmem:[%s7361_s28 + $0x28] sm:$0xf] %vm4773_vm5, %v5533_v61  ;;  %v5534_v43 = vpack.c.bf16 %v4624_v0, %v4624_v0  ;;  %v4556_v5 = vmul.f32 %v6028_v1, %v7343_v48  ;;  %v6030_v6 = vadd.f32 %v5997_v62, %v7336_v42  ;;  %v4427_v10 = vpop.f32.mrb[15].mxu0 }
 0x1e3   : > { %4782 = vst.msk [vmem:[%s7361_s28 + $0x20] sm:$0xf] %vm4773_vm5, %v5531_v4  ;;  %v5532_v9 = vpack.c.bf16 %v4622_v53, %v4622_v53  ;;  %v4554_v44 = vmul.f32 %v6029_v22, %v7343_v48  ;;  %v6031_v8 = vadd.f32 %v4427_v10, %v7338_v30 }
 0x1e4   : > { %4785 = vst.msk [vmem:[%s7361_s28 + $0x2c] sm:$0xf] %vm4773_vm5, %v5534_v43  ;;  %v4595_v45 = vadd.f32 %v7348_v50, %v4556_v5  ;;  %v4557_v12 = vmul.f32 %v6030_v6, %v7343_v48 }
 0x1e5   : > { %4783 = vst.msk [vmem:[%s7361_s28 + $0x24] sm:$0xf] %vm4773_vm5, %v5532_v9  ;;  %v4593_v13 = vadd.f32 %v7348_v50, %v4554_v44  ;;  %v4555_v42 = vmul.f32 %v6031_v8, %v7343_v48 }
 0x1e6   : > { %v4627_v24 = vmax.f32 %v4595_v45, 0.0  ;;  %v4596_v7 = vadd.f32 %v7348_v50, %v4557_v12 }
 0x1e7   : > { %v5864_v14 = vpop.f32.mrb[16].mxu1  ;;  %v4625_v58 = vmax.f32 %v4593_v13, 0.0  ;;  %v4594_v30 = vadd.f32 %v7348_v50, %v4555_v42  ;;  %v6000_v63 = vpop.f32.mrb[16].mxu0 }
 0x1e8   : > { %v2270_v47 = vpop.f32.mrb[17].mxu1  ;;  %v5537_v15 = vpack.c.bf16 %v4627_v24, %v4627_v24  ;;  %v4628_v17 = vmax.f32 %v4596_v7, 0.0  ;;  %v6032_v19 = vadd.f32 %v6000_v63, %v5864_v14  ;;  %v4440_v20 = vpop.f32.mrb[17].mxu0 }
 0x1e9   : > { %v5865_v46 = vpop.f32.mrb[18].mxu1  ;;  %v5535_v21 = vpack.c.bf16 %v4625_v58, %v4625_v58  ;;  %v4626_v3 = vmax.f32 %v4594_v30, 0.0  ;;  %v6033_v23 = vadd.f32 %v4440_v20, %v2270_v47  ;;  %v6001_v25 = vpop.f32.mrb[18].mxu0 }
 0x1ea   : > { %v2273_v27 = vpop.f32.mrb[19].mxu1  ;;  %4788 = vst.msk [vmem:[%s7361_s28 + $0x38] sm:$0xf] %vm4773_vm5, %v5537_v15  ;;  %v5538_v59 = vpack.c.bf16 %v4628_v17, %v4628_v17  ;;  %v4560_v28 = vmul.f32 %v6032_v19, %v7343_v48  ;;  %v6034_v31 = vadd.f32 %v6001_v25, %v5865_v46  ;;  %v4443_v26 = vpop.f32.mrb[19].mxu0 }
 0x1eb   : > { %4786 = vst.msk [vmem:[%s7361_s28 + $0x30] sm:$0xf] %vm4773_vm5, %v5535_v21  ;;  %v5536_v32 = vpack.c.bf16 %v4626_v3, %v4626_v3  ;;  %v4558_v52 = vmul.f32 %v6033_v23, %v7343_v48  ;;  %v6035_v35 = vadd.f32 %v4443_v26, %v2273_v27 }
 0x1ec   : > { %4789 = vst.msk [vmem:[%s7361_s28 + $0x3c] sm:$0xf] %vm4773_vm5, %v5538_v59  ;;  %v4599_v56 = vadd.f32 %v7348_v50, %v4560_v28  ;;  %v4561_v36 = vmul.f32 %v6034_v31, %v7343_v48 }
 0x1ed   : > { %4787 = vst.msk [vmem:[%s7361_s28 + $0x34] sm:$0xf] %vm4773_vm5, %v5536_v32  ;;  %v4597_v18 = vadd.f32 %v7348_v50, %v4558_v52  ;;  %v4559_v29 = vmul.f32 %v6035_v35, %v7343_v48 }
 0x1ee   : > { %v4631_v16 = vmax.f32 %v4599_v56, 0.0  ;;  %v4600_v38 = vadd.f32 %v7348_v50, %v4561_v36 }
 0x1ef   : > { %v5868_v11 = vpop.f32.mrb[20].mxu1  ;;  %v4629_v49 = vmax.f32 %v4597_v18, 0.0  ;;  %v4598_v39 = vadd.f32 %v7348_v50, %v4559_v29  ;;  %v6004_v34 = vpop.f32.mrb[20].mxu0 }
 0x1f0   : > { %v2286_v40 = vpop.f32.mrb[21].mxu1  ;;  %v5541_v37 = vpack.c.bf16 %v4631_v16, %v4631_v16  ;;  %v4632_v55 = vmax.f32 %v4600_v38, 0.0  ;;  %v6036_v41 = vadd.f32 %v6004_v34, %v5868_v11  ;;  %v4456_v57 = vpop.f32.mrb[21].mxu0 }
 0x1f1   : > { %v5869_v33 = vpop.f32.mrb[22].mxu1  ;;  %v5539_v54 = vpack.c.bf16 %v4629_v49, %v4629_v49  ;;  %v4630_v51 = vmax.f32 %v4598_v39, 0.0  ;;  %v6037_v60 = vadd.f32 %v4456_v57, %v2286_v40  ;;  %v6005_v61 = vpop.f32.mrb[22].mxu0 }
 0x1f2   : > { %v2289_v0 = vpop.f32.mrb[23].mxu1  ;;  %4792 = vst.msk [vmem:[%s7361_s28 + $0x48] sm:$0xf] %vm4773_vm5, %v5541_v37  ;;  %v5542_v1 = vpack.c.bf16 %v4632_v55, %v4632_v55  ;;  %v4564_v2 = vmul.f32 %v6036_v41, %v7343_v48  ;;  %v6038_v4 = vadd.f32 %v6005_v61, %v5869_v33  ;;  %v4459_v53 = vpop.f32.mrb[23].mxu0 }
 0x1f3   : > { %4790 = vst.msk [vmem:[%s7361_s28 + $0x40] sm:$0xf] %vm4773_vm5, %v5539_v54  ;;  %v5540_v22 = vpack.c.bf16 %v4630_v51, %v4630_v51  ;;  %v4562_v62 = vmul.f32 %v6037_v60, %v7343_v48  ;;  %v6039_v43 = vadd.f32 %v4459_v53, %v2289_v0 }
 0x1f4   : > { %4793 = vst.msk [vmem:[%s7361_s28 + $0x4c] sm:$0xf] %vm4773_vm5, %v5542_v1  ;;  %v4603_v5 = vadd.f32 %v7348_v50, %v4564_v2  ;;  %v4565_v6 = vmul.f32 %v6038_v4, %v7343_v48 }
 0x1f5   : > { %4791 = vst.msk [vmem:[%s7361_s28 + $0x44] sm:$0xf] %vm4773_vm5, %v5540_v22  ;;  %v4601_v10 = vadd.f32 %v7348_v50, %v4562_v62  ;;  %v4563_v9 = vmul.f32 %v6039_v43, %v7343_v48 }
 0x1f6   : > { %v4635_v44 = vmax.f32 %v4603_v5, 0.0  ;;  %v4604_v8 = vadd.f32 %v7348_v50, %v4565_v6 }
 0x1f7   : > { %v5872_v45 = vpop.f32.mrb[24].mxu1  ;;  %v4633_v12 = vmax.f32 %v4601_v10, 0.0  ;;  %v4602_v13 = vadd.f32 %v7348_v50, %v4563_v9  ;;  %v6008_v42 = vpop.f32.mrb[24].mxu0 }
 0x1f8   : > { %v2302_v24 = vpop.f32.mrb[25].mxu1  ;;  %v5545_v7 = vpack.c.bf16 %v4635_v44, %v4635_v44  ;;  %v4636_v14 = vmax.f32 %v4604_v8, 0.0  ;;  %v6040_v58 = vadd.f32 %v6008_v42, %v5872_v45  ;;  %v4472_v30 = vpop.f32.mrb[25].mxu0 }
 0x1f9   : > { %v5873_v63 = vpop.f32.mrb[26].mxu1  ;;  %v5543_v47 = vpack.c.bf16 %v4633_v12, %v4633_v12  ;;  %v4634_v15 = vmax.f32 %v4602_v13, 0.0  ;;  %v6041_v17 = vadd.f32 %v4472_v30, %v2302_v24  ;;  %v6009_v19 = vpop.f32.mrb[26].mxu0 }
 0x1fa   : > { %v2305_v20 = vpop.f32.mrb[27].mxu1  ;;  %4796 = vst.msk [vmem:[%s7361_s28 + $0x58] sm:$0xf] %vm4773_vm5, %v5545_v7  ;;  %v5546_v46 = vpack.c.bf16 %v4636_v14, %v4636_v14  ;;  %v4568_v21 = vmul.f32 %v6040_v58, %v7343_v48  ;;  %v6042_v3 = vadd.f32 %v6009_v19, %v5873_v63  ;;  %v4475_v23 = vpop.f32.mrb[27].mxu0 }
 0x1fb   : > { %4794 = vst.msk [vmem:[%s7361_s28 + $0x50] sm:$0xf] %vm4773_vm5, %v5543_v47  ;;  %v5544_v25 = vpack.c.bf16 %v4634_v15, %v4634_v15  ;;  %v4566_v27 = vmul.f32 %v6041_v17, %v7343_v48  ;;  %v6043_v59 = vadd.f32 %v4475_v23, %v2305_v20 }
 0x1fc   : > { %4797 = vst.msk [vmem:[%s7361_s28 + $0x5c] sm:$0xf] %vm4773_vm5, %v5546_v46  ;;  %v4607_v28 = vadd.f32 %v7348_v50, %v4568_v21  ;;  %v4569_v31 = vmul.f32 %v6042_v3, %v7343_v48 }
 0x1fd   : > { %4795 = vst.msk [vmem:[%s7361_s28 + $0x54] sm:$0xf] %vm4773_vm5, %v5544_v25  ;;  %v4605_v26 = vadd.f32 %v7348_v50, %v4566_v27  ;;  %v4567_v32 = vmul.f32 %v6043_v59, %v7343_v48 }
 0x1fe   : > { %v4639_v52 = vmax.f32 %v4607_v28, 0.0  ;;  %v4608_v35 = vadd.f32 %v7348_v50, %v4569_v31 }
 0x1ff   : > { %v5876_v56 = vpop.f32.mrb[28].mxu1  ;;  %v4637_v36 = vmax.f32 %v4605_v26, 0.0  ;;  %v4606_v18 = vadd.f32 %v7348_v50, %v4567_v32  ;;  %v6012_v29 = vpop.f32.mrb[28].mxu0 }
 0x200   : > { %v2318_v16 = vpop.f32.mrb[29].mxu1  ;;  %v5549_v38 = vpack.c.bf16 %v4639_v52, %v4639_v52  ;;  %v4640_v11 = vmax.f32 %v4608_v35, 0.0  ;;  %v6044_v49 = vadd.f32 %v6012_v29, %v5876_v56  ;;  %v4488_v39 = vpop.f32.mrb[29].mxu0 }
 0x201   : > { %v5877_v34 = vpop.f32.mrb[30].mxu1  ;;  %v5547_v40 = vpack.c.bf16 %v4637_v36, %v4637_v36  ;;  %v4638_v37 = vmax.f32 %v4606_v18, 0.0  ;;  %v6045_v55 = vadd.f32 %v4488_v39, %v2318_v16  ;;  %v6013_v41 = vpop.f32.mrb[30].mxu0 }
 0x202   : > { %v2321_v57 = vpop.f32.mrb[31].mxu1  ;;  %4800 = vst.msk [vmem:[%s7361_s28 + $0x68] sm:$0xf] %vm4773_vm5, %v5549_v38  ;;  %v5550_v33 = vpack.c.bf16 %v4640_v11, %v4640_v11  ;;  %v4572_v54 = vmul.f32 %v6044_v49, %v7343_v48  ;;  %v6046_v51 = vadd.f32 %v6013_v41, %v5877_v34  ;;  %v4491_v60 = vpop.f32.mrb[31].mxu0 }
 0x203   : > { %4798 = vst.msk [vmem:[%s7361_s28 + $0x60] sm:$0xf] %vm4773_vm5, %v5547_v40  ;;  %v5548_v61 = vpack.c.bf16 %v4638_v37, %v4638_v37  ;;  %v4570_v0 = vmul.f32 %v6045_v55, %v7343_v48  ;;  %v6047_v1 = vadd.f32 %v4491_v60, %v2321_v57 }
 0x204   : > { %4801 = vst.msk [vmem:[%s7361_s28 + $0x6c] sm:$0xf] %vm4773_vm5, %v5550_v33  ;;  %v4611_v2 = vadd.f32 %v7348_v50, %v4572_v54  ;;  %v4573_v4 = vmul.f32 %v6046_v51, %v7343_v48 }
 0x205   : > { %4799 = vst.msk [vmem:[%s7361_s28 + $0x64] sm:$0xf] %vm4773_vm5, %v5548_v61  ;;  %v4609_v53 = vadd.f32 %v7348_v50, %v4570_v0  ;;  %v4571_v22 = vmul.f32 %v6047_v1, %v7343_v48 }
 0x206   : > { %v4643_v62 = vmax.f32 %v4611_v2, 0.0  ;;  %v4612_v43 = vadd.f32 %v7348_v50, %v4573_v4 }
 0x207   : > { %v4641_v5 = vmax.f32 %v4609_v53, 0.0  ;;  %v4610_v6 = vadd.f32 %v7348_v50, %v4571_v22 }
 0x208   : > { %v5553_v10 = vpack.c.bf16 %v4643_v62, %v4643_v62  ;;  %v4644_v9 = vmax.f32 %v4612_v43, 0.0 }
 0x209   : > { %v5551_v44 = vpack.c.bf16 %v4641_v5, %v4641_v5  ;;  %v4642_v8 = vmax.f32 %v4610_v6, 0.0 }
 0x20a   : > { %4804 = vst.msk [vmem:[%s7361_s28 + $0x78] sm:$0xf] %vm4773_vm5, %v5553_v10  ;;  %v5554_v45 = vpack.c.bf16 %v4644_v9, %v4644_v9 }
 0x20b   : > { %4802 = vst.msk [vmem:[%s7361_s28 + $0x70] sm:$0xf] %vm4773_vm5, %v5551_v44  ;;  %v5552_v12 = vpack.c.bf16 %v4642_v8, %v4642_v8 }
 0x20c   : > { %4805 = vst.msk [vmem:[%s7361_s28 + $0x7c] sm:$0xf] %vm4773_vm5, %v5554_v45 }
 0x20d   : > { %4803 = vst.msk [vmem:[%s7361_s28 + $0x74] sm:$0xf] %vm4773_vm5, %v5552_v12 }
 0x20e PF: > { %s14_s17 = sadd.s32 1, %s6426_s17   ;;  %s7507_s15 = smov %s6422_s16 }
 0x20f   : > { %p11_p5 = scmp.ge.s32.totalorder %s14_s17, 4   ;;  %s7508_s16 = smov %s7510_s18 }
 0x211   :  { %13 = sbr.rel (!%p11_p5) target bundleno = 2 (0x2), region = 88 }

</bundles_post_ra>
